<compile_context>
chip_gen: v7x
topology: tpu7x:2x2x1
jax: 0.10.0
libtpu: 0.0.40
codegen_flags: <defaults>
</compile_context>

<pallas_src>
import functools

import jax
import jax.numpy as jnp
from jax.experimental import pallas as pl
from jax.experimental.pallas import tpu as pltpu

LN_EPS = 1e-5  # channel-wise LayerNorm eps


# ----------------------------------------------------------------------------
# Shared block: LayerNorm(channels) -> Conv1d(k=3, pad=1) -> SiLU -> mask
# Data is channels-first (C, T): channels on sublanes, time on lanes.
# ----------------------------------------------------------------------------
def _ln_conv_silu(h, g, b, w_prev, w_mid, w_next, cb, mrow):
    c = h.shape[0]
    t = h.shape[1]
    # one-pass LN stats over the channel (sublane) axis
    s1 = jnp.sum(h, axis=0, keepdims=True)                    # (1, T)
    s2 = jnp.sum(h * h, axis=0, keepdims=True)                # (1, T)
    mu = s1 / c
    var = jnp.maximum(s2 / c - mu * mu, 0.0)
    hn = (h - mu) * jax.lax.rsqrt(var + LN_EPS) * g + b       # (C, T)

    # neighbour columns via XLU lane rotate; zero the wrapped boundary column
    col = jax.lax.broadcasted_iota(jnp.int32, hn.shape, 1)
    h_prev = jnp.where(col == 0, 0.0, pltpu.roll(hn, shift=1, axis=1))      # x[t-1]
    h_next = jnp.where(col == t - 1, 0.0, pltpu.roll(hn, shift=t - 1, axis=1))  # x[t+1]

    # Conv1d(k=3) as three accumulating MXU dots (no (3C,T) concat buffer)
    y = (jnp.dot(w_mid, hn, preferred_element_type=jnp.float32)
         + jnp.dot(w_prev, h_prev, preferred_element_type=jnp.float32)
         + jnp.dot(w_next, h_next, preferred_element_type=jnp.float32)
         + cb)                                                # (Ch, T)
    y = y * jax.nn.sigmoid(y)                                 # SiLU
    return y * mrow                                           # mask (1, T)


# ----------------------------------------------------------------------------
# Fully fused VarianceAdopter.forward kernel (one grid step per batch element)
# ----------------------------------------------------------------------------
def _va_kernel(x_ref, xm_ref, ym_ref, path_ref, pit_ref, ene_ref,
               g0_ref, b0_ref, w0_ref, cb0_ref,
               g1_ref, b1_ref, w1_ref, cb1_ref,
               wo_ref, bo_ref,
               xo_ref, dur_ref, pp_ref, ep_ref):
    x = x_ref[...]            # (C, Tx)
    xm = xm_ref[...]          # (1, Tx)
    ym = ym_ref[...]          # (1, Ty)

    def predict(i, h, mrow):
        h = _ln_conv_silu(h, g0_ref[i], b0_ref[i],
                          w0_ref[i, 0], w0_ref[i, 1], w0_ref[i, 2],
                          cb0_ref[i], mrow)
        h = _ln_conv_silu(h, g1_ref[i], b1_ref[i],
                          w1_ref[i, 0], w1_ref[i, 1], w1_ref[i, 2],
                          cb1_ref[i], mrow)
        out = jnp.dot(wo_ref[i], h, preferred_element_type=jnp.float32) + bo_ref[i]
        return out * mrow                                     # (1, T)

    # duration predictor on the raw x
    dur_ref[...] = predict(0, x, xm).astype(dur_ref.dtype)

    # length regulator, layout-native in NCT: (C,Tx) @ (Tx,Ty) -> (C,Ty).
    # x_reg stays in VMEM/registers; never written to HBM.
    x_reg = jnp.dot(x, path_ref[...], preferred_element_type=jnp.float32)

    # pitch / energy predictors on the regulated features
    pp_ref[...] = predict(1, x_reg, ym).astype(pp_ref.dtype)
    ep_ref[...] = predict(2, x_reg, ym).astype(ep_ref.dtype)

    # x += pitch + energy  (ground truth, broadcast over channels), NCT output
    xo_ref[...] = (x_reg + pit_ref[...] + ene_ref[...]).astype(xo_ref.dtype)


def variance_adopter_forward(x, x_mask, y_mask, pitch, energy, path, params):
    """NCT-layout inputs, exactly as the PyTorch module:
       x:[B,Cin,Tx]  x_mask:[B,1,Tx]  y_mask:[B,1,Ty]
       pitch/energy:[B,1,Ty]  path:[B,Tx,Ty]
       returns (x_out [B,Cin,Ty], (dur [B,1,Tx], pitch_pred [B,1,Ty], energy_pred [B,1,Ty]))."""
    B, C, Tx = x.shape
    Ty = path.shape[2]

    args = (x, x_mask, y_mask, path, pitch, energy,
            params["g0"], params["b0"], params["w0"], params["cb0"],
            params["g1"], params["b1"], params["w1"], params["cb1"],
            params["wo"], params["bo"])

    def batch_spec(shape):
        n = len(shape)
        return pl.BlockSpec((None,) + tuple(shape),
                            lambda b, _n=n: (b,) + (0,) * _n)

    def full_spec(a):
        return pl.BlockSpec(a.shape, lambda b, _n=a.ndim: (0,) * _n)

    in_specs = ([batch_spec((C, Tx)),      # x
                 batch_spec((1, Tx)),      # x_mask
                 batch_spec((1, Ty)),      # y_mask
                 batch_spec((Tx, Ty)),     # path
                 batch_spec((1, Ty)),      # pitch
                 batch_spec((1, Ty))]      # energy
                + [full_spec(a) for a in args[6:15]]            # stacked params
                + [pl.BlockSpec(memory_space=pltpu.MemorySpace.SMEM)])  # bo (3,)

    out_shape = (jax.ShapeDtypeStruct((B, C, Ty), x.dtype),
                 jax.ShapeDtypeStruct((B, 1, Tx), x.dtype),
                 jax.ShapeDtypeStruct((B, 1, Ty), x.dtype),
                 jax.ShapeDtypeStruct((B, 1, Ty), x.dtype))
    out_specs = (batch_spec((C, Ty)),
                 batch_spec((1, Tx)),
                 batch_spec((1, Ty)),
                 batch_spec((1, Ty)))

    x_out, dur, pp, ep = pl.pallas_call(
        _va_kernel,
        out_shape=out_shape,
        grid=(B,),
        in_specs=in_specs,
        out_specs=out_specs,
        compiler_params=pltpu.CompilerParams(
            dimension_semantics=("parallel",),
            vmem_limit_bytes=64 << 20),
    )(*args)
    return x_out, (dur, pp, ep)


# ----------------------------------------------------------------------------
# Parameter init (per-predictor, torch-like shapes) and stacking for the kernel
# ----------------------------------------------------------------------------
def init_predictor_params(key, in_channels, channels):
    k = jax.random.split(key, 8)
    return {
        # channel-wise LayerNorm affine params, shape (C, 1) in NCT
        "g0": 1.0 + 0.1 * jax.random.normal(k[0], (in_channels, 1), jnp.float32),
        "b0": 0.1 * jax.random.normal(k[1], (in_channels, 1), jnp.float32),
        # conv weights (tap, C_out, C_in); tap 0 -> x[t-1], 1 -> x[t], 2 -> x[t+1]
        "w0": 0.1 * jax.random.normal(k[2], (3, channels, in_channels), jnp.float32),
        "cb0": 0.01 * jax.random.normal(k[3], (channels, 1), jnp.float32),
        "g1": 1.0 + 0.1 * jax.random.normal(k[4], (channels, 1), jnp.float32),
        "b1": 0.1 * jax.random.normal(k[5], (channels, 1), jnp.float32),
        "w1": 0.1 * jax.random.normal(k[6], (3, channels, channels), jnp.float32),
        "cb1": 0.01 * jax.random.normal(k[7], (channels, 1), jnp.float32),
        "wo": 0.1 * jax.random.normal(k[0], (1, channels), jnp.float32),
        "bo": jnp.float32(0.03),
    }


def stack_predictor_params(p_dur, p_pitch, p_energy):
    """Stack the three predictors' params on a leading axis (0=dur,1=pitch,2=energy)."""
    out = {k: jnp.stack([p_dur[k], p_pitch[k], p_energy[k]], axis=0)
           for k in p_dur if k != "bo"}
    out["bo"] = jnp.stack([p_dur["bo"], p_pitch["bo"], p_energy["bo"]], axis=0)  # (3,)
    return out


# ----------------------------------------------------------------------------
# Pure-JAX reference (NCT layout, mirrors the PyTorch module)
# ----------------------------------------------------------------------------
def _vp_ref(x, mask, p):
    def layer(h, g, b, w, cb):
        mu = jnp.mean(h, axis=1, keepdims=True)
        var = jnp.mean((h - mu) ** 2, axis=1, keepdims=True)
        hn = (h - mu) / jnp.sqrt(var + LN_EPS) * g[None] + b[None]
        hp = jnp.pad(hn, ((0, 0), (0, 0), (1, 1)))
        y = (jnp.einsum("oc,bct->bot", w[0], hp[:, :, :-2])
             + jnp.einsum("oc,bct->bot", w[1], hp[:, :, 1:-1])
             + jnp.einsum("oc,bct->bot", w[2], hp[:, :, 2:])
             + cb[None])
        y = y * jax.nn.sigmoid(y)
        return y * mask

    h = layer(x, p["g0"], p["b0"], p["w0"], p["cb0"])
    h = layer(h, p["g1"], p["b1"], p["w1"], p["cb1"])
    out = jnp.einsum("oc,bct->bot", p["wo"], h) + p["bo"]
    return out * mask


def _ref_forward(x, x_mask, y_mask, pitch, energy, path, raw):
    dur = _vp_ref(x, x_mask, raw["dur"])
    x_reg = jnp.einsum("bct,bts->bcs", x, path)
    pit = _vp_ref(x_reg, y_mask, raw["pitch"])
    ene = _vp_ref(x_reg, y_mask, raw["energy"])
    x_out = x_reg + pitch + energy
    return x_out, (dur, pit, ene)


if __name__ == "__main__":
    B, Cin, Ch, Tx, Ty = 2, 32, 32, 16, 24
    key = jax.random.PRNGKey(0)
    k_x, k_p, k_e, k_dur, k_pit, k_ene = jax.random.split(key, 6)

    x = jax.random.normal(k_x, (B, Cin, Tx), jnp.float32)
    pitch = 0.5 * jax.random.normal(k_p, (B, 1, Ty), jnp.float32)
    energy = 0.5 * jax.random.normal(k_e, (B, 1, Ty), jnp.float32)

    x_lens = jnp.array([Tx, Tx - 4])
    y_lens = jnp.array([Ty, Ty - 6])
    x_mask = (jnp.arange(Tx)[None, None, :] < x_lens[:, None, None]).astype(jnp.float32)
    y_mask = (jnp.arange(Ty)[None, None, :] < y_lens[:, None, None]).astype(jnp.float32)

    # simple monotonic alignment path [B, Tx, Ty]
    src_idx = (jnp.arange(Ty) * Tx) // Ty
    path = jax.nn.one_hot(src_idx, Tx, dtype=jnp.float32).T[None]   # [1, Tx, Ty]
    path = jnp.tile(path, (B, 1, 1))
    path = path * jnp.transpose(x_mask, (0, 2, 1)) * y_mask

    raw_params = {
        "dur": init_predictor_params(k_dur, Cin, Ch),
        "pitch": init_predictor_params(k_pit, Cin, Ch),
        "energy": init_predictor_params(k_ene, Cin, Ch),
    }
    kernel_params = stack_predictor_params(
        raw_params["dur"], raw_params["pitch"], raw_params["energy"])

    fwd = jax.jit(functools.partial(variance_adopter_forward, params=kernel_params))
    x_out, (dur_pred, pitch_pred, energy_pred) = fwd(
        x, x_mask, y_mask, pitch, energy, path)
    jax.block_until_ready((x_out, dur_pred, pitch_pred, energy_pred))

    # correctness check against the pure-JAX reference
    x_ref, (dur_ref, pit_ref, ene_ref) = _ref_forward(
        x, x_mask, y_mask, pitch, energy, path, raw_params)
    for got, ref in ((x_out, x_ref), (dur_pred, dur_ref),
                     (pitch_pred, pit_ref), (energy_pred, ene_ref)):
        assert jnp.allclose(got, ref, atol=2e-3, rtol=2e-3), "mismatch vs reference"

    assert x_out.shape == (B, Cin, Ty)
    assert dur_pred.shape == (B, 1, Tx)
    assert pitch_pred.shape == (B, 1, Ty) and energy_pred.shape == (B, 1, Ty)

    print("KERNEL_OK")
</pallas_src>

<mosaic_0001>
module attributes {stable_mosaic.version = 11 : i64} {
  func.func @_va_kernel(%arg0: i32, %arg1: memref<1x32x16xf32, #tpu.memory_space<vmem>>, %arg2: memref<1x1x16xf32, #tpu.memory_space<vmem>>, %arg3: memref<1x1x24xf32, #tpu.memory_space<vmem>>, %arg4: memref<1x16x24xf32, #tpu.memory_space<vmem>>, %arg5: memref<1x1x24xf32, #tpu.memory_space<vmem>>, %arg6: memref<1x1x24xf32, #tpu.memory_space<vmem>>, %arg7: memref<3x32x1xf32, #tpu.memory_space<vmem>>, %arg8: memref<3x32x1xf32, #tpu.memory_space<vmem>>, %arg9: memref<3x3x32x32xf32, #tpu.memory_space<vmem>>, %arg10: memref<3x32x1xf32, #tpu.memory_space<vmem>>, %arg11: memref<3x32x1xf32, #tpu.memory_space<vmem>>, %arg12: memref<3x32x1xf32, #tpu.memory_space<vmem>>, %arg13: memref<3x3x32x32xf32, #tpu.memory_space<vmem>>, %arg14: memref<3x32x1xf32, #tpu.memory_space<vmem>>, %arg15: memref<3x1x32xf32, #tpu.memory_space<vmem>>, %arg16: memref<3xf32, #tpu.memory_space<smem>>, %arg17: memref<1x32x24xf32, #tpu.memory_space<vmem>>, %arg18: memref<1x1x16xf32, #tpu.memory_space<vmem>>, %arg19: memref<1x1x24xf32, #tpu.memory_space<vmem>>, %arg20: memref<1x1x24xf32, #tpu.memory_space<vmem>>) attributes {dimension_semantics = [#tpu.dimension_semantics<parallel>], iteration_bounds = array<i64: 2>, scalar_prefetch = 0 : i64, scratch_operands = 0 : i64, tpu.core_type = #tpu.core_type<tc>, window_params = [{transform_indices = @transform_0, window_bounds = array<i64: 1, 32, 16>}, {transform_indices = @transform_1, window_bounds = array<i64: 1, 1, 16>}, {transform_indices = @transform_2, window_bounds = array<i64: 1, 1, 24>}, {transform_indices = @transform_3, window_bounds = array<i64: 1, 16, 24>}, {transform_indices = @transform_4, window_bounds = array<i64: 1, 1, 24>}, {transform_indices = @transform_5, window_bounds = array<i64: 1, 1, 24>}, {pipeline_mode = #tpu.pipeline_mode<synchronous>, transform_indices = @transform_6, window_bounds = array<i64: 3, 32, 1>}, {pipeline_mode = #tpu.pipeline_mode<synchronous>, transform_indices = @transform_7, window_bounds = array<i64: 3, 32, 1>}, {pipeline_mode = #tpu.pipeline_mode<synchronous>, transform_indices = @transform_8, window_bounds = array<i64: 3, 3, 32, 32>}, {pipeline_mode = #tpu.pipeline_mode<synchronous>, transform_indices = @transform_9, window_bounds = array<i64: 3, 32, 1>}, {pipeline_mode = #tpu.pipeline_mode<synchronous>, transform_indices = @transform_10, window_bounds = array<i64: 3, 32, 1>}, {pipeline_mode = #tpu.pipeline_mode<synchronous>, transform_indices = @transform_11, window_bounds = array<i64: 3, 32, 1>}, {pipeline_mode = #tpu.pipeline_mode<synchronous>, transform_indices = @transform_12, window_bounds = array<i64: 3, 3, 32, 32>}, {pipeline_mode = #tpu.pipeline_mode<synchronous>, transform_indices = @transform_13, window_bounds = array<i64: 3, 32, 1>}, {pipeline_mode = #tpu.pipeline_mode<synchronous>, transform_indices = @transform_14, window_bounds = array<i64: 3, 1, 32>}, {transform_indices = @transform_15, window_bounds = array<i64: 3>}, {transform_indices = @transform_16, window_bounds = array<i64: 1, 32, 24>}, {transform_indices = @transform_17, window_bounds = array<i64: 1, 1, 16>}, {transform_indices = @transform_18, window_bounds = array<i64: 1, 1, 24>}, {transform_indices = @transform_19, window_bounds = array<i64: 1, 1, 24>}]} {
    %c0 = arith.constant 0 : index
    %c0_0 = arith.constant 0 : index
    %c0_1 = arith.constant 0 : index
    %0 = vector.load %arg1[%c0, %c0_0, %c0_1] : memref<1x32x16xf32, #tpu.memory_space<vmem>>, vector<1x32x16xf32>
    %1 = vector.shape_cast %0 : vector<1x32x16xf32> to vector<32x16xf32>
    %c0_2 = arith.constant 0 : index
    %c0_3 = arith.constant 0 : index
    %c0_4 = arith.constant 0 : index
    %2 = vector.load %arg2[%c0_2, %c0_3, %c0_4] : memref<1x1x16xf32, #tpu.memory_space<vmem>>, vector<1x1x16xf32>
    %3 = vector.shape_cast %2 : vector<1x1x16xf32> to vector<1x16xf32>
    %c0_5 = arith.constant 0 : index
    %c0_6 = arith.constant 0 : index
    %c0_7 = arith.constant 0 : index
    %4 = vector.load %arg3[%c0_5, %c0_6, %c0_7] : memref<1x1x24xf32, #tpu.memory_space<vmem>>, vector<1x1x24xf32>
    %5 = vector.shape_cast %4 : vector<1x1x24xf32> to vector<1x24xf32>
    %c0_8 = arith.constant 0 : index
    %c0_9 = arith.constant 0 : index
    %c0_10 = arith.constant 0 : index
    %6 = vector.load %arg7[%c0_8, %c0_9, %c0_10] : memref<3x32x1xf32, #tpu.memory_space<vmem>>, vector<1x32x1xf32>
    %7 = vector.shape_cast %6 : vector<1x32x1xf32> to vector<32x1xf32>
    %c0_11 = arith.constant 0 : index
    %c0_12 = arith.constant 0 : index
    %c0_13 = arith.constant 0 : index
    %8 = vector.load %arg8[%c0_11, %c0_12, %c0_13] : memref<3x32x1xf32, #tpu.memory_space<vmem>>, vector<1x32x1xf32>
    %9 = vector.shape_cast %8 : vector<1x32x1xf32> to vector<32x1xf32>
    %c0_14 = arith.constant 0 : index
    %c0_15 = arith.constant 0 : index
    %c0_16 = arith.constant 0 : index
    %c0_17 = arith.constant 0 : index
    %10 = vector.load %arg9[%c0_14, %c0_15, %c0_16, %c0_17] : memref<3x3x32x32xf32, #tpu.memory_space<vmem>>, vector<1x1x32x32xf32>
    %11 = vector.shape_cast %10 : vector<1x1x32x32xf32> to vector<32x32xf32>
    %c0_18 = arith.constant 0 : index
    %c1 = arith.constant 1 : index
    %c0_19 = arith.constant 0 : index
    %c0_20 = arith.constant 0 : index
    %12 = vector.load %arg9[%c0_18, %c1, %c0_19, %c0_20] : memref<3x3x32x32xf32, #tpu.memory_space<vmem>>, vector<1x1x32x32xf32>
    %13 = vector.shape_cast %12 : vector<1x1x32x32xf32> to vector<32x32xf32>
    %c0_21 = arith.constant 0 : index
    %c2 = arith.constant 2 : index
    %c0_22 = arith.constant 0 : index
    %c0_23 = arith.constant 0 : index
    %14 = vector.load %arg9[%c0_21, %c2, %c0_22, %c0_23] : memref<3x3x32x32xf32, #tpu.memory_space<vmem>>, vector<1x1x32x32xf32>
    %15 = vector.shape_cast %14 : vector<1x1x32x32xf32> to vector<32x32xf32>
    %c0_24 = arith.constant 0 : index
    %c0_25 = arith.constant 0 : index
    %c0_26 = arith.constant 0 : index
    %16 = vector.load %arg10[%c0_24, %c0_25, %c0_26] : memref<3x32x1xf32, #tpu.memory_space<vmem>>, vector<1x32x1xf32>
    %17 = vector.shape_cast %16 : vector<1x32x1xf32> to vector<32x1xf32>
    %cst = arith.constant dense<0.000000e+00> : vector<16xf32>
    %18 = vector.multi_reduction <add>, %1, %cst [0] : vector<32x16xf32> to vector<16xf32>
    %19 = vector.shape_cast %18 : vector<16xf32> to vector<1x16xf32>
    %20 = arith.mulf %1, %1 : vector<32x16xf32>
    %cst_27 = arith.constant dense<0.000000e+00> : vector<16xf32>
    %21 = vector.multi_reduction <add>, %20, %cst_27 [0] : vector<32x16xf32> to vector<16xf32>
    %22 = vector.shape_cast %21 : vector<16xf32> to vector<1x16xf32>
    %cst_28 = arith.constant 3.200000e+01 : f32
    %23 = vector.broadcast %cst_28 : f32 to vector<1x16xf32>
    %24 = arith.divf %19, %23 : vector<1x16xf32>
    %cst_29 = arith.constant 3.200000e+01 : f32
    %25 = vector.broadcast %cst_29 : f32 to vector<1x16xf32>
    %26 = arith.divf %22, %25 : vector<1x16xf32>
    %27 = arith.mulf %24, %24 : vector<1x16xf32>
    %28 = arith.subf %26, %27 : vector<1x16xf32>
    %cst_30 = arith.constant 0.000000e+00 : f32
    %29 = vector.broadcast %cst_30 : f32 to vector<1x16xf32>
    %30 = arith.maximumf %28, %29 : vector<1x16xf32>
    %31 = vector.broadcast %24 : vector<1x16xf32> to vector<32x16xf32>
    %32 = arith.subf %1, %31 : vector<32x16xf32>
    %cst_31 = arith.constant 9.99999974E-6 : f32
    %33 = vector.broadcast %cst_31 : f32 to vector<1x16xf32>
    %34 = arith.addf %30, %33 : vector<1x16xf32>
    %35 = math.rsqrt %34 : vector<1x16xf32>
    %36 = vector.broadcast %35 : vector<1x16xf32> to vector<32x16xf32>
    %37 = arith.mulf %32, %36 : vector<32x16xf32>
    %38 = vector.broadcast %7 : vector<32x1xf32> to vector<32x16xf32>
    %39 = arith.mulf %37, %38 : vector<32x16xf32>
    %40 = vector.broadcast %9 : vector<32x1xf32> to vector<32x16xf32>
    %41 = arith.addf %39, %40 : vector<32x16xf32>
    %42 = tpu.iota {dimensions = array<i32: 1>} : vector<32x16xi32>
    %c0_i32 = arith.constant 0 : i32
    %43 = vector.broadcast %c0_i32 : i32 to vector<32x16xi32>
    %44 = arith.cmpi eq, %42, %43 : vector<32x16xi32>
    %c1_i32 = arith.constant 1 : i32
    %45 = tpu.dynamic_rotate %41 by %c1_i32 dim 1 : vector<32x16xf32>, i32 -> vector<32x16xf32>
    %cst_32 = arith.constant 0.000000e+00 : f32
    %46 = vector.broadcast %cst_32 : f32 to vector<32x16xf32>
    %47 = arith.select %44, %46, %45 : vector<32x16xi1>, vector<32x16xf32>
    %c15_i32 = arith.constant 15 : i32
    %48 = vector.broadcast %c15_i32 : i32 to vector<32x16xi32>
    %49 = arith.cmpi eq, %42, %48 : vector<32x16xi32>
    %c15_i32_33 = arith.constant 15 : i32
    %50 = tpu.dynamic_rotate %41 by %c15_i32_33 dim 1 : vector<32x16xf32>, i32 -> vector<32x16xf32>
    %cst_34 = arith.constant 0.000000e+00 : f32
    %51 = vector.broadcast %cst_34 : f32 to vector<32x16xf32>
    %52 = arith.select %49, %51, %50 : vector<32x16xi1>, vector<32x16xf32>
    %cst_35 = arith.constant dense<0.000000e+00> : vector<32x16xf32>
    %53 = tpu.matmul %13, %41, %cst_35 {dimension_numbers = #tpu.dot_dimension_numbers<[1], [0], [0], [1], [0, 0, 1, 1], [], []>} : vector<32x32xf32>, vector<32x16xf32>, vector<32x16xf32> -> vector<32x16xf32>
    %cst_36 = arith.constant dense<0.000000e+00> : vector<32x16xf32>
    %54 = tpu.matmul %11, %47, %cst_36 {dimension_numbers = #tpu.dot_dimension_numbers<[1], [0], [0], [1], [0, 0, 1, 1], [], []>} : vector<32x32xf32>, vector<32x16xf32>, vector<32x16xf32> -> vector<32x16xf32>
    %55 = arith.addf %53, %54 : vector<32x16xf32>
    %cst_37 = arith.constant dense<0.000000e+00> : vector<32x16xf32>
    %56 = tpu.matmul %15, %52, %cst_37 {dimension_numbers = #tpu.dot_dimension_numbers<[1], [0], [0], [1], [0, 0, 1, 1], [], []>} : vector<32x32xf32>, vector<32x16xf32>, vector<32x16xf32> -> vector<32x16xf32>
    %57 = arith.addf %55, %56 : vector<32x16xf32>
    %58 = vector.broadcast %17 : vector<32x1xf32> to vector<32x16xf32>
    %59 = arith.addf %57, %58 : vector<32x16xf32>
    %60 = arith.negf %59 : vector<32x16xf32>
    %61 = math.exp %60 : vector<32x16xf32>
    %cst_38 = arith.constant 1.000000e+00 : f32
    %62 = vector.broadcast %cst_38 : f32 to vector<32x16xf32>
    %63 = arith.addf %62, %61 : vector<32x16xf32>
    %64 = arith.divf %62, %63 : vector<32x16xf32>
    %65 = arith.mulf %59, %64 : vector<32x16xf32>
    %66 = vector.broadcast %3 : vector<1x16xf32> to vector<32x16xf32>
    %67 = arith.mulf %65, %66 : vector<32x16xf32>
    %c0_39 = arith.constant 0 : index
    %c0_40 = arith.constant 0 : index
    %c0_41 = arith.constant 0 : index
    %68 = vector.load %arg11[%c0_39, %c0_40, %c0_41] : memref<3x32x1xf32, #tpu.memory_space<vmem>>, vector<1x32x1xf32>
    %69 = vector.shape_cast %68 : vector<1x32x1xf32> to vector<32x1xf32>
    %c0_42 = arith.constant 0 : index
    %c0_43 = arith.constant 0 : index
    %c0_44 = arith.constant 0 : index
    %70 = vector.load %arg12[%c0_42, %c0_43, %c0_44] : memref<3x32x1xf32, #tpu.memory_space<vmem>>, vector<1x32x1xf32>
    %71 = vector.shape_cast %70 : vector<1x32x1xf32> to vector<32x1xf32>
    %c0_45 = arith.constant 0 : index
    %c0_46 = arith.constant 0 : index
    %c0_47 = arith.constant 0 : index
    %c0_48 = arith.constant 0 : index
    %72 = vector.load %arg13[%c0_45, %c0_46, %c0_47, %c0_48] : memref<3x3x32x32xf32, #tpu.memory_space<vmem>>, vector<1x1x32x32xf32>
    %73 = vector.shape_cast %72 : vector<1x1x32x32xf32> to vector<32x32xf32>
    %c0_49 = arith.constant 0 : index
    %c1_50 = arith.constant 1 : index
    %c0_51 = arith.constant 0 : index
    %c0_52 = arith.constant 0 : index
    %74 = vector.load %arg13[%c0_49, %c1_50, %c0_51, %c0_52] : memref<3x3x32x32xf32, #tpu.memory_space<vmem>>, vector<1x1x32x32xf32>
    %75 = vector.shape_cast %74 : vector<1x1x32x32xf32> to vector<32x32xf32>
    %c0_53 = arith.constant 0 : index
    %c2_54 = arith.constant 2 : index
    %c0_55 = arith.constant 0 : index
    %c0_56 = arith.constant 0 : index
    %76 = vector.load %arg13[%c0_53, %c2_54, %c0_55, %c0_56] : memref<3x3x32x32xf32, #tpu.memory_space<vmem>>, vector<1x1x32x32xf32>
    %77 = vector.shape_cast %76 : vector<1x1x32x32xf32> to vector<32x32xf32>
    %c0_57 = arith.constant 0 : index
    %c0_58 = arith.constant 0 : index
    %c0_59 = arith.constant 0 : index
    %78 = vector.load %arg14[%c0_57, %c0_58, %c0_59] : memref<3x32x1xf32, #tpu.memory_space<vmem>>, vector<1x32x1xf32>
    %79 = vector.shape_cast %78 : vector<1x32x1xf32> to vector<32x1xf32>
    %cst_60 = arith.constant dense<0.000000e+00> : vector<16xf32>
    %80 = vector.multi_reduction <add>, %67, %cst_60 [0] : vector<32x16xf32> to vector<16xf32>
    %81 = vector.shape_cast %80 : vector<16xf32> to vector<1x16xf32>
    %82 = arith.mulf %67, %67 : vector<32x16xf32>
    %cst_61 = arith.constant dense<0.000000e+00> : vector<16xf32>
    %83 = vector.multi_reduction <add>, %82, %cst_61 [0] : vector<32x16xf32> to vector<16xf32>
    %84 = vector.shape_cast %83 : vector<16xf32> to vector<1x16xf32>
    %cst_62 = arith.constant 3.200000e+01 : f32
    %85 = vector.broadcast %cst_62 : f32 to vector<1x16xf32>
    %86 = arith.divf %81, %85 : vector<1x16xf32>
    %cst_63 = arith.constant 3.200000e+01 : f32
    %87 = vector.broadcast %cst_63 : f32 to vector<1x16xf32>
    %88 = arith.divf %84, %87 : vector<1x16xf32>
    %89 = arith.mulf %86, %86 : vector<1x16xf32>
    %90 = arith.subf %88, %89 : vector<1x16xf32>
    %cst_64 = arith.constant 0.000000e+00 : f32
    %91 = vector.broadcast %cst_64 : f32 to vector<1x16xf32>
    %92 = arith.maximumf %90, %91 : vector<1x16xf32>
    %93 = vector.broadcast %86 : vector<1x16xf32> to vector<32x16xf32>
    %94 = arith.subf %67, %93 : vector<32x16xf32>
    %cst_65 = arith.constant 9.99999974E-6 : f32
    %95 = vector.broadcast %cst_65 : f32 to vector<1x16xf32>
    %96 = arith.addf %92, %95 : vector<1x16xf32>
    %97 = math.rsqrt %96 : vector<1x16xf32>
    %98 = vector.broadcast %97 : vector<1x16xf32> to vector<32x16xf32>
    %99 = arith.mulf %94, %98 : vector<32x16xf32>
    %100 = vector.broadcast %69 : vector<32x1xf32> to vector<32x16xf32>
    %101 = arith.mulf %99, %100 : vector<32x16xf32>
    %102 = vector.broadcast %71 : vector<32x1xf32> to vector<32x16xf32>
    %103 = arith.addf %101, %102 : vector<32x16xf32>
    %104 = tpu.iota {dimensions = array<i32: 1>} : vector<32x16xi32>
    %c0_i32_66 = arith.constant 0 : i32
    %105 = vector.broadcast %c0_i32_66 : i32 to vector<32x16xi32>
    %106 = arith.cmpi eq, %104, %105 : vector<32x16xi32>
    %c1_i32_67 = arith.constant 1 : i32
    %107 = tpu.dynamic_rotate %103 by %c1_i32_67 dim 1 : vector<32x16xf32>, i32 -> vector<32x16xf32>
    %cst_68 = arith.constant 0.000000e+00 : f32
    %108 = vector.broadcast %cst_68 : f32 to vector<32x16xf32>
    %109 = arith.select %106, %108, %107 : vector<32x16xi1>, vector<32x16xf32>
    %c15_i32_69 = arith.constant 15 : i32
    %110 = vector.broadcast %c15_i32_69 : i32 to vector<32x16xi32>
    %111 = arith.cmpi eq, %104, %110 : vector<32x16xi32>
    %c15_i32_70 = arith.constant 15 : i32
    %112 = tpu.dynamic_rotate %103 by %c15_i32_70 dim 1 : vector<32x16xf32>, i32 -> vector<32x16xf32>
    %cst_71 = arith.constant 0.000000e+00 : f32
    %113 = vector.broadcast %cst_71 : f32 to vector<32x16xf32>
    %114 = arith.select %111, %113, %112 : vector<32x16xi1>, vector<32x16xf32>
    %cst_72 = arith.constant dense<0.000000e+00> : vector<32x16xf32>
    %115 = tpu.matmul %75, %103, %cst_72 {dimension_numbers = #tpu.dot_dimension_numbers<[1], [0], [0], [1], [0, 0, 1, 1], [], []>} : vector<32x32xf32>, vector<32x16xf32>, vector<32x16xf32> -> vector<32x16xf32>
    %cst_73 = arith.constant dense<0.000000e+00> : vector<32x16xf32>
    %116 = tpu.matmul %73, %109, %cst_73 {dimension_numbers = #tpu.dot_dimension_numbers<[1], [0], [0], [1], [0, 0, 1, 1], [], []>} : vector<32x32xf32>, vector<32x16xf32>, vector<32x16xf32> -> vector<32x16xf32>
    %117 = arith.addf %115, %116 : vector<32x16xf32>
    %cst_74 = arith.constant dense<0.000000e+00> : vector<32x16xf32>
    %118 = tpu.matmul %77, %114, %cst_74 {dimension_numbers = #tpu.dot_dimension_numbers<[1], [0], [0], [1], [0, 0, 1, 1], [], []>} : vector<32x32xf32>, vector<32x16xf32>, vector<32x16xf32> -> vector<32x16xf32>
    %119 = arith.addf %117, %118 : vector<32x16xf32>
    %120 = vector.broadcast %79 : vector<32x1xf32> to vector<32x16xf32>
    %121 = arith.addf %119, %120 : vector<32x16xf32>
    %122 = arith.negf %121 : vector<32x16xf32>
    %123 = math.exp %122 : vector<32x16xf32>
    %cst_75 = arith.constant 1.000000e+00 : f32
    %124 = vector.broadcast %cst_75 : f32 to vector<32x16xf32>
    %125 = arith.addf %124, %123 : vector<32x16xf32>
    %126 = arith.divf %124, %125 : vector<32x16xf32>
    %127 = arith.mulf %121, %126 : vector<32x16xf32>
    %128 = vector.broadcast %3 : vector<1x16xf32> to vector<32x16xf32>
    %129 = arith.mulf %127, %128 : vector<32x16xf32>
    %c0_76 = arith.constant 0 : index
    %c0_77 = arith.constant 0 : index
    %c0_78 = arith.constant 0 : index
    %130 = vector.load %arg15[%c0_76, %c0_77, %c0_78] : memref<3x1x32xf32, #tpu.memory_space<vmem>>, vector<1x1x32xf32>
    %131 = vector.shape_cast %130 : vector<1x1x32xf32> to vector<1x32xf32>
    %cst_79 = arith.constant dense<0.000000e+00> : vector<1x16xf32>
    %132 = tpu.matmul %131, %129, %cst_79 {dimension_numbers = #tpu.dot_dimension_numbers<[1], [0], [0], [1], [0, 0, 1, 1], [], []>} : vector<1x32xf32>, vector<32x16xf32>, vector<1x16xf32> -> vector<1x16xf32>
    %c0_80 = arith.constant 0 : index
    %133 = memref.load %arg16[%c0_80] : memref<3xf32, #tpu.memory_space<smem>>
    %134 = vector.broadcast %133 : f32 to vector<1x16xf32>
    %135 = arith.addf %132, %134 : vector<1x16xf32>
    %136 = arith.mulf %135, %3 : vector<1x16xf32>
    %c0_81 = arith.constant 0 : index
    %c0_82 = arith.constant 0 : index
    %c0_83 = arith.constant 0 : index
    %137 = vector.load %arg18[%c0_81, %c0_82, %c0_83] : memref<1x1x16xf32, #tpu.memory_space<vmem>>, vector<1x1x16xf32>
    %138 = vector.shape_cast %137 : vector<1x1x16xf32> to vector<1x16xf32>
    %139 = vector.shape_cast %136 : vector<1x16xf32> to vector<1x1x16xf32>
    tpu.vector_store %arg18[%c0_81, %c0_82, %c0_83], %139 {strides = array<i32>} : memref<1x1x16xf32, #tpu.memory_space<vmem>>, vector<1x1x16xf32>,
    %c0_84 = arith.constant 0 : index
    %c0_85 = arith.constant 0 : index
    %c0_86 = arith.constant 0 : index
    %140 = vector.load %arg4[%c0_84, %c0_85, %c0_86] : memref<1x16x24xf32, #tpu.memory_space<vmem>>, vector<1x16x24xf32>
    %141 = vector.shape_cast %140 : vector<1x16x24xf32> to vector<16x24xf32>
    %cst_87 = arith.constant dense<0.000000e+00> : vector<32x24xf32>
    %142 = tpu.matmul %1, %141, %cst_87 {dimension_numbers = #tpu.dot_dimension_numbers<[1], [0], [0], [1], [0, 0, 1, 1], [], []>} : vector<32x16xf32>, vector<16x24xf32>, vector<32x24xf32> -> vector<32x24xf32>
    %c1_88 = arith.constant 1 : index
    %c0_89 = arith.constant 0 : index
    %c0_90 = arith.constant 0 : index
    %143 = vector.load %arg7[%c1_88, %c0_89, %c0_90] : memref<3x32x1xf32, #tpu.memory_space<vmem>>, vector<1x32x1xf32>
    %144 = vector.shape_cast %143 : vector<1x32x1xf32> to vector<32x1xf32>
    %c1_91 = arith.constant 1 : index
    %c0_92 = arith.constant 0 : index
    %c0_93 = arith.constant 0 : index
    %145 = vector.load %arg8[%c1_91, %c0_92, %c0_93] : memref<3x32x1xf32, #tpu.memory_space<vmem>>, vector<1x32x1xf32>
    %146 = vector.shape_cast %145 : vector<1x32x1xf32> to vector<32x1xf32>
    %c1_94 = arith.constant 1 : index
    %c0_95 = arith.constant 0 : index
    %c0_96 = arith.constant 0 : index
    %c0_97 = arith.constant 0 : index
    %147 = vector.load %arg9[%c1_94, %c0_95, %c0_96, %c0_97] : memref<3x3x32x32xf32, #tpu.memory_space<vmem>>, vector<1x1x32x32xf32>
    %148 = vector.shape_cast %147 : vector<1x1x32x32xf32> to vector<32x32xf32>
    %c1_98 = arith.constant 1 : index
    %c1_99 = arith.constant 1 : index
    %c0_100 = arith.constant 0 : index
    %c0_101 = arith.constant 0 : index
    %149 = vector.load %arg9[%c1_98, %c1_99, %c0_100, %c0_101] : memref<3x3x32x32xf32, #tpu.memory_space<vmem>>, vector<1x1x32x32xf32>
    %150 = vector.shape_cast %149 : vector<1x1x32x32xf32> to vector<32x32xf32>
    %c1_102 = arith.constant 1 : index
    %c2_103 = arith.constant 2 : index
    %c0_104 = arith.constant 0 : index
    %c0_105 = arith.constant 0 : index
    %151 = vector.load %arg9[%c1_102, %c2_103, %c0_104, %c0_105] : memref<3x3x32x32xf32, #tpu.memory_space<vmem>>, vector<1x1x32x32xf32>
    %152 = vector.shape_cast %151 : vector<1x1x32x32xf32> to vector<32x32xf32>
    %c1_106 = arith.constant 1 : index
    %c0_107 = arith.constant 0 : index
    %c0_108 = arith.constant 0 : index
    %153 = vector.load %arg10[%c1_106, %c0_107, %c0_108] : memref<3x32x1xf32, #tpu.memory_space<vmem>>, vector<1x32x1xf32>
    %154 = vector.shape_cast %153 : vector<1x32x1xf32> to vector<32x1xf32>
    %cst_109 = arith.constant dense<0.000000e+00> : vector<24xf32>
    %155 = vector.multi_reduction <add>, %142, %cst_109 [0] : vector<32x24xf32> to vector<24xf32>
    %156 = vector.shape_cast %155 : vector<24xf32> to vector<1x24xf32>
    %157 = arith.mulf %142, %142 : vector<32x24xf32>
    %cst_110 = arith.constant dense<0.000000e+00> : vector<24xf32>
    %158 = vector.multi_reduction <add>, %157, %cst_110 [0] : vector<32x24xf32> to vector<24xf32>
    %159 = vector.shape_cast %158 : vector<24xf32> to vector<1x24xf32>
    %cst_111 = arith.constant 3.200000e+01 : f32
    %160 = vector.broadcast %cst_111 : f32 to vector<1x24xf32>
    %161 = arith.divf %156, %160 : vector<1x24xf32>
    %cst_112 = arith.constant 3.200000e+01 : f32
    %162 = vector.broadcast %cst_112 : f32 to vector<1x24xf32>
    %163 = arith.divf %159, %162 : vector<1x24xf32>
    %164 = arith.mulf %161, %161 : vector<1x24xf32>
    %165 = arith.subf %163, %164 : vector<1x24xf32>
    %cst_113 = arith.constant 0.000000e+00 : f32
    %166 = vector.broadcast %cst_113 : f32 to vector<1x24xf32>
    %167 = arith.maximumf %165, %166 : vector<1x24xf32>
    %168 = vector.broadcast %161 : vector<1x24xf32> to vector<32x24xf32>
    %169 = arith.subf %142, %168 : vector<32x24xf32>
    %cst_114 = arith.constant 9.99999974E-6 : f32
    %170 = vector.broadcast %cst_114 : f32 to vector<1x24xf32>
    %171 = arith.addf %167, %170 : vector<1x24xf32>
    %172 = math.rsqrt %171 : vector<1x24xf32>
    %173 = vector.broadcast %172 : vector<1x24xf32> to vector<32x24xf32>
    %174 = arith.mulf %169, %173 : vector<32x24xf32>
    %175 = vector.broadcast %144 : vector<32x1xf32> to vector<32x24xf32>
    %176 = arith.mulf %174, %175 : vector<32x24xf32>
    %177 = vector.broadcast %146 : vector<32x1xf32> to vector<32x24xf32>
    %178 = arith.addf %176, %177 : vector<32x24xf32>
    %179 = tpu.iota {dimensions = array<i32: 1>} : vector<32x24xi32>
    %c0_i32_115 = arith.constant 0 : i32
    %180 = vector.broadcast %c0_i32_115 : i32 to vector<32x24xi32>
    %181 = arith.cmpi eq, %179, %180 : vector<32x24xi32>
    %c1_i32_116 = arith.constant 1 : i32
    %182 = tpu.dynamic_rotate %178 by %c1_i32_116 dim 1 : vector<32x24xf32>, i32 -> vector<32x24xf32>
    %cst_117 = arith.constant 0.000000e+00 : f32
    %183 = vector.broadcast %cst_117 : f32 to vector<32x24xf32>
    %184 = arith.select %181, %183, %182 : vector<32x24xi1>, vector<32x24xf32>
    %c23_i32 = arith.constant 23 : i32
    %185 = vector.broadcast %c23_i32 : i32 to vector<32x24xi32>
    %186 = arith.cmpi eq, %179, %185 : vector<32x24xi32>
    %c23_i32_118 = arith.constant 23 : i32
    %187 = tpu.dynamic_rotate %178 by %c23_i32_118 dim 1 : vector<32x24xf32>, i32 -> vector<32x24xf32>
    %cst_119 = arith.constant 0.000000e+00 : f32
    %188 = vector.broadcast %cst_119 : f32 to vector<32x24xf32>
    %189 = arith.select %186, %188, %187 : vector<32x24xi1>, vector<32x24xf32>
    %cst_120 = arith.constant dense<0.000000e+00> : vector<32x24xf32>
    %190 = tpu.matmul %150, %178, %cst_120 {dimension_numbers = #tpu.dot_dimension_numbers<[1], [0], [0], [1], [0, 0, 1, 1], [], []>} : vector<32x32xf32>, vector<32x24xf32>, vector<32x24xf32> -> vector<32x24xf32>
    %cst_121 = arith.constant dense<0.000000e+00> : vector<32x24xf32>
    %191 = tpu.matmul %148, %184, %cst_121 {dimension_numbers = #tpu.dot_dimension_numbers<[1], [0], [0], [1], [0, 0, 1, 1], [], []>} : vector<32x32xf32>, vector<32x24xf32>, vector<32x24xf32> -> vector<32x24xf32>
    %192 = arith.addf %190, %191 : vector<32x24xf32>
    %cst_122 = arith.constant dense<0.000000e+00> : vector<32x24xf32>
    %193 = tpu.matmul %152, %189, %cst_122 {dimension_numbers = #tpu.dot_dimension_numbers<[1], [0], [0], [1], [0, 0, 1, 1], [], []>} : vector<32x32xf32>, vector<32x24xf32>, vector<32x24xf32> -> vector<32x24xf32>
    %194 = arith.addf %192, %193 : vector<32x24xf32>
    %195 = vector.broadcast %154 : vector<32x1xf32> to vector<32x24xf32>
    %196 = arith.addf %194, %195 : vector<32x24xf32>
    %197 = arith.negf %196 : vector<32x24xf32>
    %198 = math.exp %197 : vector<32x24xf32>
    %cst_123 = arith.constant 1.000000e+00 : f32
    %199 = vector.broadcast %cst_123 : f32 to vector<32x24xf32>
    %200 = arith.addf %199, %198 : vector<32x24xf32>
    %201 = arith.divf %199, %200 : vector<32x24xf32>
    %202 = arith.mulf %196, %201 : vector<32x24xf32>
    %203 = vector.broadcast %5 : vector<1x24xf32> to vector<32x24xf32>
    %204 = arith.mulf %202, %203 : vector<32x24xf32>
    %c1_124 = arith.constant 1 : index
    %c0_125 = arith.constant 0 : index
    %c0_126 = arith.constant 0 : index
    %205 = vector.load %arg11[%c1_124, %c0_125, %c0_126] : memref<3x32x1xf32, #tpu.memory_space<vmem>>, vector<1x32x1xf32>
    %206 = vector.shape_cast %205 : vector<1x32x1xf32> to vector<32x1xf32>
    %c1_127 = arith.constant 1 : index
    %c0_128 = arith.constant 0 : index
    %c0_129 = arith.constant 0 : index
    %207 = vector.load %arg12[%c1_127, %c0_128, %c0_129] : memref<3x32x1xf32, #tpu.memory_space<vmem>>, vector<1x32x1xf32>
    %208 = vector.shape_cast %207 : vector<1x32x1xf32> to vector<32x1xf32>
    %c1_130 = arith.constant 1 : index
    %c0_131 = arith.constant 0 : index
    %c0_132 = arith.constant 0 : index
    %c0_133 = arith.constant 0 : index
    %209 = vector.load %arg13[%c1_130, %c0_131, %c0_132, %c0_133] : memref<3x3x32x32xf32, #tpu.memory_space<vmem>>, vector<1x1x32x32xf32>
    %210 = vector.shape_cast %209 : vector<1x1x32x32xf32> to vector<32x32xf32>
    %c1_134 = arith.constant 1 : index
    %c1_135 = arith.constant 1 : index
    %c0_136 = arith.constant 0 : index
    %c0_137 = arith.constant 0 : index
    %211 = vector.load %arg13[%c1_134, %c1_135, %c0_136, %c0_137] : memref<3x3x32x32xf32, #tpu.memory_space<vmem>>, vector<1x1x32x32xf32>
    %212 = vector.shape_cast %211 : vector<1x1x32x32xf32> to vector<32x32xf32>
    %c1_138 = arith.constant 1 : index
    %c2_139 = arith.constant 2 : index
    %c0_140 = arith.constant 0 : index
    %c0_141 = arith.constant 0 : index
    %213 = vector.load %arg13[%c1_138, %c2_139, %c0_140, %c0_141] : memref<3x3x32x32xf32, #tpu.memory_space<vmem>>, vector<1x1x32x32xf32>
    %214 = vector.shape_cast %213 : vector<1x1x32x32xf32> to vector<32x32xf32>
    %c1_142 = arith.constant 1 : index
    %c0_143 = arith.constant 0 : index
    %c0_144 = arith.constant 0 : index
    %215 = vector.load %arg14[%c1_142, %c0_143, %c0_144] : memref<3x32x1xf32, #tpu.memory_space<vmem>>, vector<1x32x1xf32>
    %216 = vector.shape_cast %215 : vector<1x32x1xf32> to vector<32x1xf32>
    %cst_145 = arith.constant dense<0.000000e+00> : vector<24xf32>
    %217 = vector.multi_reduction <add>, %204, %cst_145 [0] : vector<32x24xf32> to vector<24xf32>
    %218 = vector.shape_cast %217 : vector<24xf32> to vector<1x24xf32>
    %219 = arith.mulf %204, %204 : vector<32x24xf32>
    %cst_146 = arith.constant dense<0.000000e+00> : vector<24xf32>
    %220 = vector.multi_reduction <add>, %219, %cst_146 [0] : vector<32x24xf32> to vector<24xf32>
    %221 = vector.shape_cast %220 : vector<24xf32> to vector<1x24xf32>
    %cst_147 = arith.constant 3.200000e+01 : f32
    %222 = vector.broadcast %cst_147 : f32 to vector<1x24xf32>
    %223 = arith.divf %218, %222 : vector<1x24xf32>
    %cst_148 = arith.constant 3.200000e+01 : f32
    %224 = vector.broadcast %cst_148 : f32 to vector<1x24xf32>
    %225 = arith.divf %221, %224 : vector<1x24xf32>
    %226 = arith.mulf %223, %223 : vector<1x24xf32>
    %227 = arith.subf %225, %226 : vector<1x24xf32>
    %cst_149 = arith.constant 0.000000e+00 : f32
    %228 = vector.broadcast %cst_149 : f32 to vector<1x24xf32>
    %229 = arith.maximumf %227, %228 : vector<1x24xf32>
    %230 = vector.broadcast %223 : vector<1x24xf32> to vector<32x24xf32>
    %231 = arith.subf %204, %230 : vector<32x24xf32>
    %cst_150 = arith.constant 9.99999974E-6 : f32
    %232 = vector.broadcast %cst_150 : f32 to vector<1x24xf32>
    %233 = arith.addf %229, %232 : vector<1x24xf32>
    %234 = math.rsqrt %233 : vector<1x24xf32>
    %235 = vector.broadcast %234 : vector<1x24xf32> to vector<32x24xf32>
    %236 = arith.mulf %231, %235 : vector<32x24xf32>
    %237 = vector.broadcast %206 : vector<32x1xf32> to vector<32x24xf32>
    %238 = arith.mulf %236, %237 : vector<32x24xf32>
    %239 = vector.broadcast %208 : vector<32x1xf32> to vector<32x24xf32>
    %240 = arith.addf %238, %239 : vector<32x24xf32>
    %241 = tpu.iota {dimensions = array<i32: 1>} : vector<32x24xi32>
    %c0_i32_151 = arith.constant 0 : i32
    %242 = vector.broadcast %c0_i32_151 : i32 to vector<32x24xi32>
    %243 = arith.cmpi eq, %241, %242 : vector<32x24xi32>
    %c1_i32_152 = arith.constant 1 : i32
    %244 = tpu.dynamic_rotate %240 by %c1_i32_152 dim 1 : vector<32x24xf32>, i32 -> vector<32x24xf32>
    %cst_153 = arith.constant 0.000000e+00 : f32
    %245 = vector.broadcast %cst_153 : f32 to vector<32x24xf32>
    %246 = arith.select %243, %245, %244 : vector<32x24xi1>, vector<32x24xf32>
    %c23_i32_154 = arith.constant 23 : i32
    %247 = vector.broadcast %c23_i32_154 : i32 to vector<32x24xi32>
    %248 = arith.cmpi eq, %241, %247 : vector<32x24xi32>
    %c23_i32_155 = arith.constant 23 : i32
    %249 = tpu.dynamic_rotate %240 by %c23_i32_155 dim 1 : vector<32x24xf32>, i32 -> vector<32x24xf32>
    %cst_156 = arith.constant 0.000000e+00 : f32
    %250 = vector.broadcast %cst_156 : f32 to vector<32x24xf32>
    %251 = arith.select %248, %250, %249 : vector<32x24xi1>, vector<32x24xf32>
    %cst_157 = arith.constant dense<0.000000e+00> : vector<32x24xf32>
    %252 = tpu.matmul %212, %240, %cst_157 {dimension_numbers = #tpu.dot_dimension_numbers<[1], [0], [0], [1], [0, 0, 1, 1], [], []>} : vector<32x32xf32>, vector<32x24xf32>, vector<32x24xf32> -> vector<32x24xf32>
    %cst_158 = arith.constant dense<0.000000e+00> : vector<32x24xf32>
    %253 = tpu.matmul %210, %246, %cst_158 {dimension_numbers = #tpu.dot_dimension_numbers<[1], [0], [0], [1], [0, 0, 1, 1], [], []>} : vector<32x32xf32>, vector<32x24xf32>, vector<32x24xf32> -> vector<32x24xf32>
    %254 = arith.addf %252, %253 : vector<32x24xf32>
    %cst_159 = arith.constant dense<0.000000e+00> : vector<32x24xf32>
    %255 = tpu.matmul %214, %251, %cst_159 {dimension_numbers = #tpu.dot_dimension_numbers<[1], [0], [0], [1], [0, 0, 1, 1], [], []>} : vector<32x32xf32>, vector<32x24xf32>, vector<32x24xf32> -> vector<32x24xf32>
    %256 = arith.addf %254, %255 : vector<32x24xf32>
    %257 = vector.broadcast %216 : vector<32x1xf32> to vector<32x24xf32>
    %258 = arith.addf %256, %257 : vector<32x24xf32>
    %259 = arith.negf %258 : vector<32x24xf32>
    %260 = math.exp %259 : vector<32x24xf32>
    %cst_160 = arith.constant 1.000000e+00 : f32
    %261 = vector.broadcast %cst_160 : f32 to vector<32x24xf32>
    %262 = arith.addf %261, %260 : vector<32x24xf32>
    %263 = arith.divf %261, %262 : vector<32x24xf32>
    %264 = arith.mulf %258, %263 : vector<32x24xf32>
    %265 = vector.broadcast %5 : vector<1x24xf32> to vector<32x24xf32>
    %266 = arith.mulf %264, %265 : vector<32x24xf32>
    %c1_161 = arith.constant 1 : index
    %c0_162 = arith.constant 0 : index
    %c0_163 = arith.constant 0 : index
    %267 = vector.load %arg15[%c1_161, %c0_162, %c0_163] : memref<3x1x32xf32, #tpu.memory_space<vmem>>, vector<1x1x32xf32>
    %268 = vector.shape_cast %267 : vector<1x1x32xf32> to vector<1x32xf32>
    %cst_164 = arith.constant dense<0.000000e+00> : vector<1x24xf32>
    %269 = tpu.matmul %268, %266, %cst_164 {dimension_numbers = #tpu.dot_dimension_numbers<[1], [0], [0], [1], [0, 0, 1, 1], [], []>} : vector<1x32xf32>, vector<32x24xf32>, vector<1x24xf32> -> vector<1x24xf32>
    %c1_165 = arith.constant 1 : index
    %270 = memref.load %arg16[%c1_165] : memref<3xf32, #tpu.memory_space<smem>>
    %271 = vector.broadcast %270 : f32 to vector<1x24xf32>
    %272 = arith.addf %269, %271 : vector<1x24xf32>
    %273 = arith.mulf %272, %5 : vector<1x24xf32>
    %c0_166 = arith.constant 0 : index
    %c0_167 = arith.constant 0 : index
    %c0_168 = arith.constant 0 : index
    %274 = vector.load %arg19[%c0_166, %c0_167, %c0_168] : memref<1x1x24xf32, #tpu.memory_space<vmem>>, vector<1x1x24xf32>
    %275 = vector.shape_cast %274 : vector<1x1x24xf32> to vector<1x24xf32>
    %276 = vector.shape_cast %273 : vector<1x24xf32> to vector<1x1x24xf32>
    tpu.vector_store %arg19[%c0_166, %c0_167, %c0_168], %276 {strides = array<i32>} : memref<1x1x24xf32, #tpu.memory_space<vmem>>, vector<1x1x24xf32>,
    %c2_169 = arith.constant 2 : index
    %c0_170 = arith.constant 0 : index
    %c0_171 = arith.constant 0 : index
    %277 = vector.load %arg7[%c2_169, %c0_170, %c0_171] : memref<3x32x1xf32, #tpu.memory_space<vmem>>, vector<1x32x1xf32>
    %278 = vector.shape_cast %277 : vector<1x32x1xf32> to vector<32x1xf32>
    %c2_172 = arith.constant 2 : index
    %c0_173 = arith.constant 0 : index
    %c0_174 = arith.constant 0 : index
    %279 = vector.load %arg8[%c2_172, %c0_173, %c0_174] : memref<3x32x1xf32, #tpu.memory_space<vmem>>, vector<1x32x1xf32>
    %280 = vector.shape_cast %279 : vector<1x32x1xf32> to vector<32x1xf32>
    %c2_175 = arith.constant 2 : index
    %c0_176 = arith.constant 0 : index
    %c0_177 = arith.constant 0 : index
    %c0_178 = arith.constant 0 : index
    %281 = vector.load %arg9[%c2_175, %c0_176, %c0_177, %c0_178] : memref<3x3x32x32xf32, #tpu.memory_space<vmem>>, vector<1x1x32x32xf32>
    %282 = vector.shape_cast %281 : vector<1x1x32x32xf32> to vector<32x32xf32>
    %c2_179 = arith.constant 2 : index
    %c1_180 = arith.constant 1 : index
    %c0_181 = arith.constant 0 : index
    %c0_182 = arith.constant 0 : index
    %283 = vector.load %arg9[%c2_179, %c1_180, %c0_181, %c0_182] : memref<3x3x32x32xf32, #tpu.memory_space<vmem>>, vector<1x1x32x32xf32>
    %284 = vector.shape_cast %283 : vector<1x1x32x32xf32> to vector<32x32xf32>
    %c2_183 = arith.constant 2 : index
    %c2_184 = arith.constant 2 : index
    %c0_185 = arith.constant 0 : index
    %c0_186 = arith.constant 0 : index
    %285 = vector.load %arg9[%c2_183, %c2_184, %c0_185, %c0_186] : memref<3x3x32x32xf32, #tpu.memory_space<vmem>>, vector<1x1x32x32xf32>
    %286 = vector.shape_cast %285 : vector<1x1x32x32xf32> to vector<32x32xf32>
    %c2_187 = arith.constant 2 : index
    %c0_188 = arith.constant 0 : index
    %c0_189 = arith.constant 0 : index
    %287 = vector.load %arg10[%c2_187, %c0_188, %c0_189] : memref<3x32x1xf32, #tpu.memory_space<vmem>>, vector<1x32x1xf32>
    %288 = vector.shape_cast %287 : vector<1x32x1xf32> to vector<32x1xf32>
    %cst_190 = arith.constant dense<0.000000e+00> : vector<24xf32>
    %289 = vector.multi_reduction <add>, %142, %cst_190 [0] : vector<32x24xf32> to vector<24xf32>
    %290 = vector.shape_cast %289 : vector<24xf32> to vector<1x24xf32>
    %291 = arith.mulf %142, %142 : vector<32x24xf32>
    %cst_191 = arith.constant dense<0.000000e+00> : vector<24xf32>
    %292 = vector.multi_reduction <add>, %291, %cst_191 [0] : vector<32x24xf32> to vector<24xf32>
    %293 = vector.shape_cast %292 : vector<24xf32> to vector<1x24xf32>
    %cst_192 = arith.constant 3.200000e+01 : f32
    %294 = vector.broadcast %cst_192 : f32 to vector<1x24xf32>
    %295 = arith.divf %290, %294 : vector<1x24xf32>
    %cst_193 = arith.constant 3.200000e+01 : f32
    %296 = vector.broadcast %cst_193 : f32 to vector<1x24xf32>
    %297 = arith.divf %293, %296 : vector<1x24xf32>
    %298 = arith.mulf %295, %295 : vector<1x24xf32>
    %299 = arith.subf %297, %298 : vector<1x24xf32>
    %cst_194 = arith.constant 0.000000e+00 : f32
    %300 = vector.broadcast %cst_194 : f32 to vector<1x24xf32>
    %301 = arith.maximumf %299, %300 : vector<1x24xf32>
    %302 = vector.broadcast %295 : vector<1x24xf32> to vector<32x24xf32>
    %303 = arith.subf %142, %302 : vector<32x24xf32>
    %cst_195 = arith.constant 9.99999974E-6 : f32
    %304 = vector.broadcast %cst_195 : f32 to vector<1x24xf32>
    %305 = arith.addf %301, %304 : vector<1x24xf32>
    %306 = math.rsqrt %305 : vector<1x24xf32>
    %307 = vector.broadcast %306 : vector<1x24xf32> to vector<32x24xf32>
    %308 = arith.mulf %303, %307 : vector<32x24xf32>
    %309 = vector.broadcast %278 : vector<32x1xf32> to vector<32x24xf32>
    %310 = arith.mulf %308, %309 : vector<32x24xf32>
    %311 = vector.broadcast %280 : vector<32x1xf32> to vector<32x24xf32>
    %312 = arith.addf %310, %311 : vector<32x24xf32>
    %313 = tpu.iota {dimensions = array<i32: 1>} : vector<32x24xi32>
    %c0_i32_196 = arith.constant 0 : i32
    %314 = vector.broadcast %c0_i32_196 : i32 to vector<32x24xi32>
    %315 = arith.cmpi eq, %313, %314 : vector<32x24xi32>
    %c1_i32_197 = arith.constant 1 : i32
    %316 = tpu.dynamic_rotate %312 by %c1_i32_197 dim 1 : vector<32x24xf32>, i32 -> vector<32x24xf32>
    %cst_198 = arith.constant 0.000000e+00 : f32
    %317 = vector.broadcast %cst_198 : f32 to vector<32x24xf32>
    %318 = arith.select %315, %317, %316 : vector<32x24xi1>, vector<32x24xf32>
    %c23_i32_199 = arith.constant 23 : i32
    %319 = vector.broadcast %c23_i32_199 : i32 to vector<32x24xi32>
    %320 = arith.cmpi eq, %313, %319 : vector<32x24xi32>
    %c23_i32_200 = arith.constant 23 : i32
    %321 = tpu.dynamic_rotate %312 by %c23_i32_200 dim 1 : vector<32x24xf32>, i32 -> vector<32x24xf32>
    %cst_201 = arith.constant 0.000000e+00 : f32
    %322 = vector.broadcast %cst_201 : f32 to vector<32x24xf32>
    %323 = arith.select %320, %322, %321 : vector<32x24xi1>, vector<32x24xf32>
    %cst_202 = arith.constant dense<0.000000e+00> : vector<32x24xf32>
    %324 = tpu.matmul %284, %312, %cst_202 {dimension_numbers = #tpu.dot_dimension_numbers<[1], [0], [0], [1], [0, 0, 1, 1], [], []>} : vector<32x32xf32>, vector<32x24xf32>, vector<32x24xf32> -> vector<32x24xf32>
    %cst_203 = arith.constant dense<0.000000e+00> : vector<32x24xf32>
    %325 = tpu.matmul %282, %318, %cst_203 {dimension_numbers = #tpu.dot_dimension_numbers<[1], [0], [0], [1], [0, 0, 1, 1], [], []>} : vector<32x32xf32>, vector<32x24xf32>, vector<32x24xf32> -> vector<32x24xf32>
    %326 = arith.addf %324, %325 : vector<32x24xf32>
    %cst_204 = arith.constant dense<0.000000e+00> : vector<32x24xf32>
    %327 = tpu.matmul %286, %323, %cst_204 {dimension_numbers = #tpu.dot_dimension_numbers<[1], [0], [0], [1], [0, 0, 1, 1], [], []>} : vector<32x32xf32>, vector<32x24xf32>, vector<32x24xf32> -> vector<32x24xf32>
    %328 = arith.addf %326, %327 : vector<32x24xf32>
    %329 = vector.broadcast %288 : vector<32x1xf32> to vector<32x24xf32>
    %330 = arith.addf %328, %329 : vector<32x24xf32>
    %331 = arith.negf %330 : vector<32x24xf32>
    %332 = math.exp %331 : vector<32x24xf32>
    %cst_205 = arith.constant 1.000000e+00 : f32
    %333 = vector.broadcast %cst_205 : f32 to vector<32x24xf32>
    %334 = arith.addf %333, %332 : vector<32x24xf32>
    %335 = arith.divf %333, %334 : vector<32x24xf32>
    %336 = arith.mulf %330, %335 : vector<32x24xf32>
    %337 = vector.broadcast %5 : vector<1x24xf32> to vector<32x24xf32>
    %338 = arith.mulf %336, %337 : vector<32x24xf32>
    %c2_206 = arith.constant 2 : index
    %c0_207 = arith.constant 0 : index
    %c0_208 = arith.constant 0 : index
    %339 = vector.load %arg11[%c2_206, %c0_207, %c0_208] : memref<3x32x1xf32, #tpu.memory_space<vmem>>, vector<1x32x1xf32>
    %340 = vector.shape_cast %339 : vector<1x32x1xf32> to vector<32x1xf32>
    %c2_209 = arith.constant 2 : index
    %c0_210 = arith.constant 0 : index
    %c0_211 = arith.constant 0 : index
    %341 = vector.load %arg12[%c2_209, %c0_210, %c0_211] : memref<3x32x1xf32, #tpu.memory_space<vmem>>, vector<1x32x1xf32>
    %342 = vector.shape_cast %341 : vector<1x32x1xf32> to vector<32x1xf32>
    %c2_212 = arith.constant 2 : index
    %c0_213 = arith.constant 0 : index
    %c0_214 = arith.constant 0 : index
    %c0_215 = arith.constant 0 : index
    %343 = vector.load %arg13[%c2_212, %c0_213, %c0_214, %c0_215] : memref<3x3x32x32xf32, #tpu.memory_space<vmem>>, vector<1x1x32x32xf32>
    %344 = vector.shape_cast %343 : vector<1x1x32x32xf32> to vector<32x32xf32>
    %c2_216 = arith.constant 2 : index
    %c1_217 = arith.constant 1 : index
    %c0_218 = arith.constant 0 : index
    %c0_219 = arith.constant 0 : index
    %345 = vector.load %arg13[%c2_216, %c1_217, %c0_218, %c0_219] : memref<3x3x32x32xf32, #tpu.memory_space<vmem>>, vector<1x1x32x32xf32>
    %346 = vector.shape_cast %345 : vector<1x1x32x32xf32> to vector<32x32xf32>
    %c2_220 = arith.constant 2 : index
    %c2_221 = arith.constant 2 : index
    %c0_222 = arith.constant 0 : index
    %c0_223 = arith.constant 0 : index
    %347 = vector.load %arg13[%c2_220, %c2_221, %c0_222, %c0_223] : memref<3x3x32x32xf32, #tpu.memory_space<vmem>>, vector<1x1x32x32xf32>
    %348 = vector.shape_cast %347 : vector<1x1x32x32xf32> to vector<32x32xf32>
    %c2_224 = arith.constant 2 : index
    %c0_225 = arith.constant 0 : index
    %c0_226 = arith.constant 0 : index
    %349 = vector.load %arg14[%c2_224, %c0_225, %c0_226] : memref<3x32x1xf32, #tpu.memory_space<vmem>>, vector<1x32x1xf32>
    %350 = vector.shape_cast %349 : vector<1x32x1xf32> to vector<32x1xf32>
    %cst_227 = arith.constant dense<0.000000e+00> : vector<24xf32>
    %351 = vector.multi_reduction <add>, %338, %cst_227 [0] : vector<32x24xf32> to vector<24xf32>
    %352 = vector.shape_cast %351 : vector<24xf32> to vector<1x24xf32>
    %353 = arith.mulf %338, %338 : vector<32x24xf32>
    %cst_228 = arith.constant dense<0.000000e+00> : vector<24xf32>
    %354 = vector.multi_reduction <add>, %353, %cst_228 [0] : vector<32x24xf32> to vector<24xf32>
    %355 = vector.shape_cast %354 : vector<24xf32> to vector<1x24xf32>
    %cst_229 = arith.constant 3.200000e+01 : f32
    %356 = vector.broadcast %cst_229 : f32 to vector<1x24xf32>
    %357 = arith.divf %352, %356 : vector<1x24xf32>
    %cst_230 = arith.constant 3.200000e+01 : f32
    %358 = vector.broadcast %cst_230 : f32 to vector<1x24xf32>
    %359 = arith.divf %355, %358 : vector<1x24xf32>
    %360 = arith.mulf %357, %357 : vector<1x24xf32>
    %361 = arith.subf %359, %360 : vector<1x24xf32>
    %cst_231 = arith.constant 0.000000e+00 : f32
    %362 = vector.broadcast %cst_231 : f32 to vector<1x24xf32>
    %363 = arith.maximumf %361, %362 : vector<1x24xf32>
    %364 = vector.broadcast %357 : vector<1x24xf32> to vector<32x24xf32>
    %365 = arith.subf %338, %364 : vector<32x24xf32>
    %cst_232 = arith.constant 9.99999974E-6 : f32
    %366 = vector.broadcast %cst_232 : f32 to vector<1x24xf32>
    %367 = arith.addf %363, %366 : vector<1x24xf32>
    %368 = math.rsqrt %367 : vector<1x24xf32>
    %369 = vector.broadcast %368 : vector<1x24xf32> to vector<32x24xf32>
    %370 = arith.mulf %365, %369 : vector<32x24xf32>
    %371 = vector.broadcast %340 : vector<32x1xf32> to vector<32x24xf32>
    %372 = arith.mulf %370, %371 : vector<32x24xf32>
    %373 = vector.broadcast %342 : vector<32x1xf32> to vector<32x24xf32>
    %374 = arith.addf %372, %373 : vector<32x24xf32>
    %375 = tpu.iota {dimensions = array<i32: 1>} : vector<32x24xi32>
    %c0_i32_233 = arith.constant 0 : i32
    %376 = vector.broadcast %c0_i32_233 : i32 to vector<32x24xi32>
    %377 = arith.cmpi eq, %375, %376 : vector<32x24xi32>
    %c1_i32_234 = arith.constant 1 : i32
    %378 = tpu.dynamic_rotate %374 by %c1_i32_234 dim 1 : vector<32x24xf32>, i32 -> vector<32x24xf32>
    %cst_235 = arith.constant 0.000000e+00 : f32
    %379 = vector.broadcast %cst_235 : f32 to vector<32x24xf32>
    %380 = arith.select %377, %379, %378 : vector<32x24xi1>, vector<32x24xf32>
    %c23_i32_236 = arith.constant 23 : i32
    %381 = vector.broadcast %c23_i32_236 : i32 to vector<32x24xi32>
    %382 = arith.cmpi eq, %375, %381 : vector<32x24xi32>
    %c23_i32_237 = arith.constant 23 : i32
    %383 = tpu.dynamic_rotate %374 by %c23_i32_237 dim 1 : vector<32x24xf32>, i32 -> vector<32x24xf32>
    %cst_238 = arith.constant 0.000000e+00 : f32
    %384 = vector.broadcast %cst_238 : f32 to vector<32x24xf32>
    %385 = arith.select %382, %384, %383 : vector<32x24xi1>, vector<32x24xf32>
    %cst_239 = arith.constant dense<0.000000e+00> : vector<32x24xf32>
    %386 = tpu.matmul %346, %374, %cst_239 {dimension_numbers = #tpu.dot_dimension_numbers<[1], [0], [0], [1], [0, 0, 1, 1], [], []>} : vector<32x32xf32>, vector<32x24xf32>, vector<32x24xf32> -> vector<32x24xf32>
    %cst_240 = arith.constant dense<0.000000e+00> : vector<32x24xf32>
    %387 = tpu.matmul %344, %380, %cst_240 {dimension_numbers = #tpu.dot_dimension_numbers<[1], [0], [0], [1], [0, 0, 1, 1], [], []>} : vector<32x32xf32>, vector<32x24xf32>, vector<32x24xf32> -> vector<32x24xf32>
    %388 = arith.addf %386, %387 : vector<32x24xf32>
    %cst_241 = arith.constant dense<0.000000e+00> : vector<32x24xf32>
    %389 = tpu.matmul %348, %385, %cst_241 {dimension_numbers = #tpu.dot_dimension_numbers<[1], [0], [0], [1], [0, 0, 1, 1], [], []>} : vector<32x32xf32>, vector<32x24xf32>, vector<32x24xf32> -> vector<32x24xf32>
    %390 = arith.addf %388, %389 : vector<32x24xf32>
    %391 = vector.broadcast %350 : vector<32x1xf32> to vector<32x24xf32>
    %392 = arith.addf %390, %391 : vector<32x24xf32>
    %393 = arith.negf %392 : vector<32x24xf32>
    %394 = math.exp %393 : vector<32x24xf32>
    %cst_242 = arith.constant 1.000000e+00 : f32
    %395 = vector.broadcast %cst_242 : f32 to vector<32x24xf32>
    %396 = arith.addf %395, %394 : vector<32x24xf32>
    %397 = arith.divf %395, %396 : vector<32x24xf32>
    %398 = arith.mulf %392, %397 : vector<32x24xf32>
    %399 = vector.broadcast %5 : vector<1x24xf32> to vector<32x24xf32>
    %400 = arith.mulf %398, %399 : vector<32x24xf32>
    %c2_243 = arith.constant 2 : index
    %c0_244 = arith.constant 0 : index
    %c0_245 = arith.constant 0 : index
    %401 = vector.load %arg15[%c2_243, %c0_244, %c0_245] : memref<3x1x32xf32, #tpu.memory_space<vmem>>, vector<1x1x32xf32>
    %402 = vector.shape_cast %401 : vector<1x1x32xf32> to vector<1x32xf32>
    %cst_246 = arith.constant dense<0.000000e+00> : vector<1x24xf32>
    %403 = tpu.matmul %402, %400, %cst_246 {dimension_numbers = #tpu.dot_dimension_numbers<[1], [0], [0], [1], [0, 0, 1, 1], [], []>} : vector<1x32xf32>, vector<32x24xf32>, vector<1x24xf32> -> vector<1x24xf32>
    %c2_247 = arith.constant 2 : index
    %404 = memref.load %arg16[%c2_247] : memref<3xf32, #tpu.memory_space<smem>>
    %405 = vector.broadcast %404 : f32 to vector<1x24xf32>
    %406 = arith.addf %403, %405 : vector<1x24xf32>
    %407 = arith.mulf %406, %5 : vector<1x24xf32>
    %c0_248 = arith.constant 0 : index
    %c0_249 = arith.constant 0 : index
    %c0_250 = arith.constant 0 : index
    %408 = vector.load %arg20[%c0_248, %c0_249, %c0_250] : memref<1x1x24xf32, #tpu.memory_space<vmem>>, vector<1x1x24xf32>
    %409 = vector.shape_cast %408 : vector<1x1x24xf32> to vector<1x24xf32>
    %410 = vector.shape_cast %407 : vector<1x24xf32> to vector<1x1x24xf32>
    tpu.vector_store %arg20[%c0_248, %c0_249, %c0_250], %410 {strides = array<i32>} : memref<1x1x24xf32, #tpu.memory_space<vmem>>, vector<1x1x24xf32>,
    %c0_251 = arith.constant 0 : index
    %c0_252 = arith.constant 0 : index
    %c0_253 = arith.constant 0 : index
    %411 = vector.load %arg5[%c0_251, %c0_252, %c0_253] : memref<1x1x24xf32, #tpu.memory_space<vmem>>, vector<1x1x24xf32>
    %412 = vector.shape_cast %411 : vector<1x1x24xf32> to vector<1x24xf32>
    %413 = vector.broadcast %412 : vector<1x24xf32> to vector<32x24xf32>
    %414 = arith.addf %142, %413 : vector<32x24xf32>
    %c0_254 = arith.constant 0 : index
    %c0_255 = arith.constant 0 : index
    %c0_256 = arith.constant 0 : index
    %415 = vector.load %arg6[%c0_254, %c0_255, %c0_256] : memref<1x1x24xf32, #tpu.memory_space<vmem>>, vector<1x1x24xf32>
    %416 = vector.shape_cast %415 : vector<1x1x24xf32> to vector<1x24xf32>
    %417 = vector.broadcast %416 : vector<1x24xf32> to vector<32x24xf32>
    %418 = arith.addf %414, %417 : vector<32x24xf32>
    %c0_257 = arith.constant 0 : index
    %c0_258 = arith.constant 0 : index
    %c0_259 = arith.constant 0 : index
    %419 = vector.load %arg17[%c0_257, %c0_258, %c0_259] : memref<1x32x24xf32, #tpu.memory_space<vmem>>, vector<1x32x24xf32>
    %420 = vector.shape_cast %419 : vector<1x32x24xf32> to vector<32x24xf32>
    %421 = vector.shape_cast %418 : vector<32x24xf32> to vector<1x32x24xf32>
    tpu.vector_store %arg17[%c0_257, %c0_258, %c0_259], %421 {strides = array<i32>} : memref<1x32x24xf32, #tpu.memory_space<vmem>>, vector<1x32x24xf32>,
    return
  }
  func.func @transform_0(%arg0: i32) -> (i32, i32, i32) {
    %c0_i32 = arith.constant 0 : i32
    %c0_i32_0 = arith.constant 0 : i32
    %c0_i32_1 = arith.constant 0 : i32
    return %arg0, %c0_i32, %c0_i32_0 : i32, i32, i32
  }
  func.func @transform_1(%arg0: i32) -> (i32, i32, i32) {
    %c0_i32 = arith.constant 0 : i32
    %c0_i32_0 = arith.constant 0 : i32
    %c0_i32_1 = arith.constant 0 : i32
    return %arg0, %c0_i32, %c0_i32_0 : i32, i32, i32
  }
  func.func @transform_2(%arg0: i32) -> (i32, i32, i32) {
    %c0_i32 = arith.constant 0 : i32
    %c0_i32_0 = arith.constant 0 : i32
    %c0_i32_1 = arith.constant 0 : i32
    return %arg0, %c0_i32, %c0_i32_0 : i32, i32, i32
  }
  func.func @transform_3(%arg0: i32) -> (i32, i32, i32) {
    %c0_i32 = arith.constant 0 : i32
    %c0_i32_0 = arith.constant 0 : i32
    %c0_i32_1 = arith.constant 0 : i32
    return %arg0, %c0_i32, %c0_i32_0 : i32, i32, i32
  }
  func.func @transform_4(%arg0: i32) -> (i32, i32, i32) {
    %c0_i32 = arith.constant 0 : i32
    %c0_i32_0 = arith.constant 0 : i32
    %c0_i32_1 = arith.constant 0 : i32
    return %arg0, %c0_i32, %c0_i32_0 : i32, i32, i32
  }
  func.func @transform_5(%arg0: i32) -> (i32, i32, i32) {
    %c0_i32 = arith.constant 0 : i32
    %c0_i32_0 = arith.constant 0 : i32
    %c0_i32_1 = arith.constant 0 : i32
    return %arg0, %c0_i32, %c0_i32_0 : i32, i32, i32
  }
  func.func @transform_6(%arg0: i32) -> (i32, i32, i32) {
    %c0_i32 = arith.constant 0 : i32
    %c0_i32_0 = arith.constant 0 : i32
    %c0_i32_1 = arith.constant 0 : i32
    %c0_i32_2 = arith.constant 0 : i32
    return %c0_i32, %c0_i32_0, %c0_i32_1 : i32, i32, i32
  }
  func.func @transform_7(%arg0: i32) -> (i32, i32, i32) {
    %c0_i32 = arith.constant 0 : i32
    %c0_i32_0 = arith.constant 0 : i32
    %c0_i32_1 = arith.constant 0 : i32
    %c0_i32_2 = arith.constant 0 : i32
    return %c0_i32, %c0_i32_0, %c0_i32_1 : i32, i32, i32
  }
  func.func @transform_8(%arg0: i32) -> (i32, i32, i32, i32) {
    %c0_i32 = arith.constant 0 : i32
    %c0_i32_0 = arith.constant 0 : i32
    %c0_i32_1 = arith.constant 0 : i32
    %c0_i32_2 = arith.constant 0 : i32
    %c0_i32_3 = arith.constant 0 : i32
    return %c0_i32, %c0_i32_0, %c0_i32_1, %c0_i32_2 : i32, i32, i32, i32
  }
  func.func @transform_9(%arg0: i32) -> (i32, i32, i32) {
    %c0_i32 = arith.constant 0 : i32
    %c0_i32_0 = arith.constant 0 : i32
    %c0_i32_1 = arith.constant 0 : i32
    %c0_i32_2 = arith.constant 0 : i32
    return %c0_i32, %c0_i32_0, %c0_i32_1 : i32, i32, i32
  }
  func.func @transform_10(%arg0: i32) -> (i32, i32, i32) {
    %c0_i32 = arith.constant 0 : i32
    %c0_i32_0 = arith.constant 0 : i32
    %c0_i32_1 = arith.constant 0 : i32
    %c0_i32_2 = arith.constant 0 : i32
    return %c0_i32, %c0_i32_0, %c0_i32_1 : i32, i32, i32
  }
  func.func @transform_11(%arg0: i32) -> (i32, i32, i32) {
    %c0_i32 = arith.constant 0 : i32
    %c0_i32_0 = arith.constant 0 : i32
    %c0_i32_1 = arith.constant 0 : i32
    %c0_i32_2 = arith.constant 0 : i32
    return %c0_i32, %c0_i32_0, %c0_i32_1 : i32, i32, i32
  }
  func.func @transform_12(%arg0: i32) -> (i32, i32, i32, i32) {
    %c0_i32 = arith.constant 0 : i32
    %c0_i32_0 = arith.constant 0 : i32
    %c0_i32_1 = arith.constant 0 : i32
    %c0_i32_2 = arith.constant 0 : i32
    %c0_i32_3 = arith.constant 0 : i32
    return %c0_i32, %c0_i32_0, %c0_i32_1, %c0_i32_2 : i32, i32, i32, i32
  }
  func.func @transform_13(%arg0: i32) -> (i32, i32, i32) {
    %c0_i32 = arith.constant 0 : i32
    %c0_i32_0 = arith.constant 0 : i32
    %c0_i32_1 = arith.constant 0 : i32
    %c0_i32_2 = arith.constant 0 : i32
    return %c0_i32, %c0_i32_0, %c0_i32_1 : i32, i32, i32
  }
  func.func @transform_14(%arg0: i32) -> (i32, i32, i32) {
    %c0_i32 = arith.constant 0 : i32
    %c0_i32_0 = arith.constant 0 : i32
    %c0_i32_1 = arith.constant 0 : i32
    %c0_i32_2 = arith.constant 0 : i32
    return %c0_i32, %c0_i32_0, %c0_i32_1 : i32, i32, i32
  }
  func.func @transform_15(%arg0: i32) -> i32 {
    %c0_i32 = arith.constant 0 : i32
    %c0_i32_0 = arith.constant 0 : i32
    return %c0_i32 : i32
  }
  func.func @transform_16(%arg0: i32) -> (i32, i32, i32) {
    %c0_i32 = arith.constant 0 : i32
    %c0_i32_0 = arith.constant 0 : i32
    %c0_i32_1 = arith.constant 0 : i32
    return %arg0, %c0_i32, %c0_i32_0 : i32, i32, i32
  }
  func.func @transform_17(%arg0: i32) -> (i32, i32, i32) {
    %c0_i32 = arith.constant 0 : i32
    %c0_i32_0 = arith.constant 0 : i32
    %c0_i32_1 = arith.constant 0 : i32
    return %arg0, %c0_i32, %c0_i32_0 : i32, i32, i32
  }
  func.func @transform_18(%arg0: i32) -> (i32, i32, i32) {
    %c0_i32 = arith.constant 0 : i32
    %c0_i32_0 = arith.constant 0 : i32
    %c0_i32_1 = arith.constant 0 : i32
    return %arg0, %c0_i32, %c0_i32_0 : i32, i32, i32
  }
  func.func @transform_19(%arg0: i32) -> (i32, i32, i32) {
    %c0_i32 = arith.constant 0 : i32
    %c0_i32_0 = arith.constant 0 : i32
    %c0_i32_1 = arith.constant 0 : i32
    return %arg0, %c0_i32, %c0_i32_0 : i32, i32, i32
  }
}

</mosaic_0001>

<bundles_post_ra>
// kernel: variance_adopter_forward.1
= control target key start
LH: loop header
LB: loop body
LE: loop exit
PB: predicated region body
PF: predicated region fallthrough
CT: control target
= control target key end

     0   :  { %s8580_s0 = inlined_call_operand.hbm [shape: f32[2,32,16], index: 0, kind: input, shape index: {}]   ;;  %s8581_s1 = inlined_call_operand.hbm [shape: f32[2,1,16], index: 1, kind: input, shape index: {}]   ;;  %s8582_s2 = inlined_call_operand.hbm [shape: f32[2,1,24], index: 2, kind: input, shape index: {}]   ;;  %s8583_s3 = inlined_call_operand.hbm [shape: f32[2,16,24], index: 3, kind: input, shape index: {}]   ;;  %s8584_s4 = inlined_call_operand.hbm [shape: f32[2,1,24], index: 4, kind: input, shape index: {}]   ;;  %s8585_s5 = inlined_call_operand.hbm [shape: f32[2,1,24], index: 5, kind: input, shape index: {}]   ;;  %s8586_s6 = inlined_call_operand.hbm [shape: f32[3,32,1], index: 6, kind: input, shape index: {}]   ;;  %s8587_s7 = inlined_call_operand.hbm [shape: f32[3,32,1], index: 7, kind: input, shape index: {}]   ;;  %s8588_s8 = inlined_call_operand.hbm [shape: f32[3,3,32,32], index: 8, kind: input, shape index: {}]   ;;  %s8589_s9 = inlined_call_operand.hbm [shape: f32[3,32,1], index: 9, kind: input, shape index: {}]   ;;  %s8590_s10 = inlined_call_operand.hbm [shape: f32[3,32,1], index: 10, kind: input, shape index: {}]   ;;  %s8591_s11 = inlined_call_operand.hbm [shape: f32[3,32,1], index: 11, kind: input, shape index: {}]   ;;  %s8592_s12 = inlined_call_operand.hbm [shape: f32[3,3,32,32], index: 12, kind: input, shape index: {}]   ;;  %s8593_s13 = inlined_call_operand.hbm [shape: f32[3,32,1], index: 13, kind: input, shape index: {}]   ;;  %s8594_s14 = inlined_call_operand.hbm [shape: f32[3,1,32], index: 14, kind: input, shape index: {}]   ;;  %s8595_s15 = inlined_call_operand.hbm [shape: f32[3], index: 15, kind: input, shape index: {}]   ;;  %s8596_s16 = inlined_call_operand.hbm [shape: f32[2,32,24], index: 16, kind: output, shape index: {0}]   ;;  %s8597_s17 = inlined_call_operand.hbm [shape: f32[2,1,16], index: 17, kind: output, shape index: {1}]   ;;  %s8598_s18 = inlined_call_operand.hbm [shape: f32[2,1,24], index: 18, kind: output, shape index: {2}]   ;;  %s8599_s19 = inlined_call_operand.hbm [shape: f32[2,1,24], index: 19, kind: output, shape index: {3}]  }
   0x1   :  { %8642 = sst [smem:[#allocation55_spill]] %s8580_s0 }
   0x2   :  { %8643 = sst [smem:[#allocation56_spill]] %s8581_s1 }
   0x3   :  { %8644 = sst [smem:[#allocation57_spill]] %s8582_s2 }
   0x4   :  { %8645 = sst [smem:[#allocation58_spill]] %s8583_s3 }
   0x5   :  { %8646 = sst [smem:[#allocation59_spill]] %s8584_s4 }
   0x6   :  { %8647 = sst [smem:[#allocation60_spill]] %s8585_s5 }
   0x7   :  { %8648 = sst [smem:[#allocation61_spill]] %s8586_s6 }
   0x8   :  { %8649 = sst [smem:[#allocation62_spill]] %s8587_s7 }
   0x9   :  { %8650 = sst [smem:[#allocation63_spill]] %s8589_s9 }
   0xa   :  { %8651 = sst [smem:[#allocation64_spill]] %s8591_s11 }
   0xb   :  { %8652 = sst [smem:[#allocation65_spill]] %s8593_s13 }
   0xc   :  { %8653 = sst [smem:[#allocation66_spill]] %s8596_s16 }
   0xd   :  { %8654 = sst [smem:[#allocation67_spill]] %s8597_s17 }
   0xe   :  { %8655 = sst [smem:[#allocation68_spill]] %s8598_s18 }
   0xf   :  { %8656 = sst [smem:[#allocation69_spill]] %s8599_s19 }
  0x10   :  { %25 = vsyncpa [#allocation3], 0 }
  0x11   :  { %27 = vsyncpa [#allocation3 + $0x1], 0 }
  0x12   :  { %28 = vsyncpa [#allocation7], 0 }
  0x13   :  { %30 = vsyncpa [#allocation7 + $0x1], 0 }
  0x14   :  { %31 = vsyncpa [#allocation10], 0 }
  0x15   :  { %33 = vsyncpa [#allocation10 + $0x1], 0 }
  0x16   :  { %34 = vsyncpa [#allocation13], 0 }
  0x17   :  { %36 = vsyncpa [#allocation13 + $0x1], 0 }
  0x18   :  { %37 = vsyncpa [#allocation16], 0 }
  0x19   :  { %38 = vsyncpa [#allocation19], 0 }
  0x1a   :  { %39 = vsyncpa [#allocation22], 0 }
  0x1b   :  { %40 = vsyncpa [#allocation25], 0 }
  0x1c   :  { %41 = vsyncpa [#allocation5], 0 }
  0x1d   :  { %42 = vsyncpa [#allocation4], 0 }
  0x1e   :  { %44 = vsyncpa [#allocation4 + $0x1], 0 }
  0x1f   :  { %45 = vsyncpa [#allocation30], 0 }
  0x20   :  { %47 = vsyncpa [#allocation30 + $0x1], 0 }
  0x21   :  { %48 = vsyncpa [#allocation33], 0 }
  0x22   :  { %50 = vsyncpa [#allocation33 + $0x1], 0  ;;  %s7218_s0 = smov 0   ;;  %s7220_s30 = smov 0  }
  0x23   :  { %s7222_s20 = smov 0   ;;  %s7224_s21 = smov 0  }
  0x24 LB: > { %8657 = sst [smem:[#allocation47_spill]] %s7069_s0  ;;  %s7083_s1 = smov [#allocation14]   ;;  %s7081_s21 = sphi %s7224_s21, %s8730_s21   ;;  %s7077_s20 = sphi %s7222_s20, %s8732_s20   ;;  %s7073_s30 = sphi %s7220_s30, %s8734_s30   ;;  %s7069_s0 = sphi %s7218_s0, %s8733_s0  }
  0x25   : > { %8658 = sst [smem:[#allocation48_spill]] %s7077_s20  ;;  %s543_s22 = sshll.u32 %s7083_s1, 4  ;;  %s7244_s22 = int_to_ptr.vmem [resolvable:$true] %s543_s22 }
  0x26   : > { %s7239_s2 = sadd.s32 4294967295, %s7081_s21   ;;  %p4915_p0 = scmp.ge.s32.totalorder %s7081_s21, 1 }
  0x27   : > { %8659 = sst [smem:[#allocation49_spill]] %s7239_s2  ;;  %p8611_p1 = scmp.eq.s32.totalorder %s7239_s2, 0 }
  0x28   : > { %p531_p2 = scmp.lt.s32.totalorder %s7081_s21, 3  ;;  %s7084_s24 = smov [#allocation15]  }
  0x29   : > { %s556_s25 = sshll.u32 %s7084_s24, 4  ;;  %s7085_s26 = smov [#allocation18]   ;;  %s7259_s25 = int_to_ptr.vmem [resolvable:$true] %s556_s25 }
  0x2a   : > { %p7246_p3 = pnand %p4915_p0, %p531_p2  ;;  %s582_s27 = sshll.u32 %s7085_s26, 4  ;;  %s7261_s27 = int_to_ptr.vmem [resolvable:$true] %s582_s27 }
  0x2b   : > { %s8663_s6 = sld [smem:[#allocation61_spill]] }
  0x2c   : > { %s8660_s23 = scalar_select %p7246_p3, 1, 0 }
  0x2d   : > { %p5950_p5 = pneg %p7246_p3 }
  0x2e   : > { %8661 = sst [smem:[#allocation50_spill]] %s8660_s23 }
  0x2f   : > { %p7255_p6 = pnand %p5950_p5, %p8611_p1 }
  0x31   : > { %s8662_s3 = scalar_select %p7255_p6, 1, 0 }
  0x32   : > { %s6442_s1 = scalar_lea.hbm %s8663_s6, 1536  ;;  %p7271_p8 = pneg %p7255_p6 }
  0x33   : > { %p6443_p7 = scmp.ne.s32.totalorder %s8663_s6, %s6442_s1  ;;  %p6449_p11 = scmp.lt.u32.totalorder %s6442_s1, %s8663_s6 }
  0x34   : > { %s8664_s24 = scalar_select %p7271_p8, 1, 0 }
  0x35   : > { %p6445_p9 = pnand %p7271_p8, %p6443_p7 }
  0x37   : > { %p6446_p10 = pneg %p6445_p9 }
  0x39   : > { %p6451_p12 = pnand %p6449_p11, %p6446_p10 }
  0x3b   : > { %6454 = shalt.err (!%p6451_p12)
}
  0x3c   : > { %s6455_s18 = scalar_lea.vmem %s7244_s22, 1536  ;;  %p6463_p5 = scmp.lt.s32.totalorder %s7244_s22, %s7244_s22 }
  0x3d   : > { %p6456_p13 = scmp.ne.s32.totalorder %s7244_s22, %s6455_s18  ;;  %p6464_p4 = scmp.lt.s32.totalorder %s6455_s18, %s6455_s18 }
  0x3f   : > { %p6458_p0 = pnand %p6456_p13, %p7271_p8  ;;  %p6465_p7 = por %p6464_p4, %p6463_p5 }
  0x41   : > { %p6459_p2 = pneg %p6458_p0 }
  0x43   : > { %p6466_p9 = pnand %p6465_p7, %p6459_p2 }
  0x45   : > { %6469 = shalt.err (!%p6466_p9)
}
  0x46   : > { %s8614_s19 = smov 128   ;;  %s8616_s16 = smov 8  }
  0x47   : > { %5953 = dma.hbm_to_vmem [thread:$0]  (!%p7255_p6), %s8663_s6, 1536, %s7244_s22, [#allocation13], %s8614_s19, %s8614_s19, %s8616_s16  }
  0x48   : > { %s8665_s7 = sld [smem:[#allocation62_spill]] }
  0x4e   : > { %s6470_s18 = scalar_lea.hbm %s8665_s7, 1536 }
  0x4f   : > { %p6471_p4 = scmp.ne.s32.totalorder %s8665_s7, %s6470_s18  ;;  %p6477_p12 = scmp.lt.u32.totalorder %s6470_s18, %s8665_s7 }
  0x51   : > { %p6473_p10 = pnand %p6471_p4, %p7271_p8 }
  0x53   : > { %p6474_p11 = pneg %p6473_p10 }
  0x55   : > { %p6479_p13 = pnand %p6477_p12, %p6474_p11 }
  0x57   : > { %6482 = shalt.err (!%p6479_p13)
}
  0x58   : > { %s6483_s22 = scalar_lea.vmem %s7259_s25, 1536  ;;  %p6491_p7 = scmp.lt.s32.totalorder %s7259_s25, %s7259_s25 }
  0x59   : > { %p6484_p0 = scmp.ne.s32.totalorder %s7259_s25, %s6483_s22  ;;  %p6492_p9 = scmp.lt.s32.totalorder %s6483_s22, %s6483_s22 }
  0x5b   : > { %p6486_p2 = pnand %p6484_p0, %p7271_p8  ;;  %p6493_p4 = por %p6492_p9, %p6491_p7 }
  0x5d   : > { %p6487_p5 = pneg %p6486_p2 }
  0x5f   : > { %p6494_p10 = pnand %p6493_p4, %p6487_p5 }
  0x61   : > { %6497 = shalt.err (!%p6494_p10)
}
  0x62   : > { %5956 = dma.hbm_to_vmem [thread:$0]  (!%p7255_p6), %s8665_s7, 1536, %s7259_s25, [#allocation16], %s8614_s19, %s8614_s19, %s8616_s16  }
  0x63   : > { %s8666_s9 = sld [smem:[#allocation63_spill]] }
  0x69   : > { %s6498_s28 = scalar_lea.hbm %s8666_s9, 1536 }
  0x6a   : > { %p6499_p11 = scmp.ne.s32.totalorder %s8666_s9, %s6498_s28  ;;  %p6505_p0 = scmp.lt.u32.totalorder %s6498_s28, %s8666_s9 }
  0x6c   : > { %p6501_p12 = pnand %p6499_p11, %p7271_p8 }
  0x6e   : > { %p6502_p13 = pneg %p6501_p12 }
  0x70   : > { %p6507_p2 = pnand %p6505_p0, %p6502_p13 }
  0x72   : > { %6510 = shalt.err (!%p6507_p2)
}
  0x73   : > { %s6511_s25 = scalar_lea.vmem %s7261_s27, 1536  ;;  %p6519_p4 = scmp.lt.s32.totalorder %s7261_s27, %s7261_s27 }
  0x74   : > { %p6512_p5 = scmp.ne.s32.totalorder %s7261_s27, %s6511_s25  ;;  %p6520_p10 = scmp.lt.s32.totalorder %s6511_s25, %s6511_s25 }
  0x76   : > { %p6514_p7 = pnand %p6512_p5, %p7271_p8  ;;  %p6521_p11 = por %p6520_p10, %p6519_p4 }
  0x78   : > { %p6515_p9 = pneg %p6514_p7 }
  0x7a   : > { %p6522_p12 = pnand %p6521_p11, %p6515_p9 }
  0x7c   : > { %6525 = shalt.err (!%p6522_p12)
}
  0x7d   : > { %5962 = dma.hbm_to_vmem [thread:$0]  (!%p7255_p6), %s8666_s9, 1536, %s7261_s27, [#allocation19], %s8614_s19, %s8614_s19, %s8616_s16  }
  0x7e   : > { %s7088_s5 = smov [#allocation21]   ;;  %s7089_s23 = smov [#allocation24]  }
  0x7f   : > { %s608_s17 = sshll.u32 %s7088_s5, 4  ;;  %s634_s28 = sshll.u32 %s7089_s23, 4  ;;  %s609_s17 = int_to_ptr.vmem [resolvable:$true] %s608_s17  ;;  %s635_s28 = int_to_ptr.vmem [resolvable:$true] %s634_s28 }
  0x80   : > { %s8667_s11 = sld [smem:[#allocation64_spill]] }
  0x86   : > { %s6526_s26 = scalar_lea.hbm %s8667_s11, 1536 }
  0x87   : > { %p6527_p13 = scmp.ne.s32.totalorder %s8667_s11, %s6526_s26  ;;  %p6533_p5 = scmp.lt.u32.totalorder %s6526_s26, %s8667_s11 }
  0x89   : > { %p6529_p0 = pnand %p6527_p13, %p7271_p8 }
  0x8b   : > { %p6530_p2 = pneg %p6529_p0 }
  0x8d   : > { %p6535_p7 = pnand %p6533_p5, %p6530_p2 }
  0x8f   : > { %6538 = shalt.err (!%p6535_p7)
}
  0x90   : > { %s6539_s27 = scalar_lea.vmem %s609_s17, 1536  ;;  %p6547_p11 = scmp.lt.s32.totalorder %s609_s17, %s609_s17 }
  0x91   : > { %p6540_p9 = scmp.ne.s32.totalorder %s609_s17, %s6539_s27  ;;  %p6548_p12 = scmp.lt.s32.totalorder %s6539_s27, %s6539_s27 }
  0x93   : > { %p6542_p4 = pnand %p6540_p9, %p7271_p8  ;;  %p6549_p1 = por %p6548_p12, %p6547_p11 }
  0x95   : > { %p6543_p10 = pneg %p6542_p4 }
  0x97   : > { %p6550_p3 = pnand %p6549_p1, %p6543_p10 }
  0x99   : > { %6553 = shalt.err (!%p6550_p3)
}
  0x9a   : > { %5968 = dma.hbm_to_vmem [thread:$0]  (!%p7255_p6), %s8667_s11, 1536, %s609_s17, [#allocation22], %s8614_s19, %s8614_s19, %s8616_s16  }
  0x9b   : > { %s8668_s13 = sld [smem:[#allocation65_spill]] }
  0xa1   : > { %s6554_s29 = scalar_lea.hbm %s8668_s13, 1536 }
  0xa2   : > { %p6555_p1 = scmp.ne.s32.totalorder %s8668_s13, %s6554_s29  ;;  %p6561_p0 = scmp.lt.u32.totalorder %s6554_s29, %s8668_s13 }
  0xa4   : > { %p6557_p3 = pnand %p6555_p1, %p7271_p8 }
  0xa6   : > { %p6558_p13 = pneg %p6557_p3 }
  0xa8   : > { %p6563_p2 = pnand %p6561_p0, %p6558_p13 }
  0xaa   : > { %6566 = shalt.err (!%p6563_p2)
}
  0xab   : > { %s6567_s22 = scalar_lea.vmem %s635_s28, 1536  ;;  %p6575_p4 = scmp.lt.s32.totalorder %s635_s28, %s635_s28 }
  0xac   : > { %p6568_p5 = scmp.ne.s32.totalorder %s635_s28, %s6567_s22  ;;  %p6576_p10 = scmp.lt.s32.totalorder %s6567_s22, %s6567_s22 }
  0xae   : > { %p6570_p7 = pnand %p6568_p5, %p7271_p8  ;;  %p6577_p11 = por %p6576_p10, %p6575_p4 }
  0xb0   : > { %p6571_p9 = pneg %p6570_p7 }
  0xb2   : > { %p6578_p12 = pnand %p6577_p11, %p6571_p9 }
  0xb4   : > { %6581 = shalt.err (!%p6578_p12)
}
  0xb5   : > { %5974 = dma.hbm_to_vmem [thread:$0]  (!%p7255_p6), %s8668_s13, 1536, %s635_s28, [#allocation25], %s8614_s19, %s8614_s19, %s8616_s16  }
  0xb6   : > { %s8613_s6 = sadd.s32 4294967294, %s7081_s21   ;;  %s7391_s4 = sadd.s32 1, %s7081_s21  }
  0xb7   : > { %8669 = sst [smem:[#allocation51_spill]] %s7391_s4  ;;  %s63_s5 = sadd.s32 1, %s7077_s20 }
  0xb8   : > { %s60_s23 = ssub.s32 %s7081_s21, %s7391_s4  ;;  %p70_p1 = scmp.ne.s32.totalorder %s7077_s20, %s7073_s30 }
  0xb9   : > { %p61_p3 = scmp.eq.s32.totalorder %s60_s23, 0  ;;  %p71_p13 = scmp.eq.s32.totalorder %s7081_s21, 0 }
  0xba   : > { %p76_p0 = scmp.ne.s32.totalorder %s7073_s30, %s7069_s0  ;;  %p440_p2 = scmp.eq.s32.totalorder %s7239_s2, 1 }
  0xbb   : > { %s7403_s29 = scalar_select %p61_p3, %s7077_s20, %s63_s5  }
  0xbc   : > { %p72_p5 = por %p71_p13, %p70_p1  ;;  %p8671_p7 = scmp.eq.s32.totalorder %s7239_s2, 0 }
  0xbd   : > { %8670 = sst [smem:[#allocation52_spill]] %s7403_s29  ;;  %p7411_p4 = por %p440_p2, %p70_p1 }
  0xbe   : > { %p7407_p9 = por %p8671_p7, %p76_p0  ;;  %p446_p10 = scmp.eq.s32.totalorder %s8613_s6, 1 }
  0xbf   : > { %s8673_s1 = scalar_select %p7411_p4, 1, 0 }
  0xc0   : > { %s8672_s28 = scalar_select %p7407_p9, 1, 0 }
  0xc1   : > { %8674 = sst [smem:[#allocation53_spill]] %s8673_s1  ;;  %p6023_p11 = scmp.lt.s32.totalorder %s7081_s21, 2 }
  0xc2   : > { %s7419_s26 = sand.u32 1, %s7077_s20   ;;  %p7421_p12 = por %p446_p10, %p76_p0 }
  0xc3   : > { %s7426_s25 = sand.u32 1, %s7081_s21   ;;  %p7428_p3 = pnand %p6023_p11, %p72_p5 }
  0xc4   : > { %s8675_s18 = scalar_select %p7421_p12, 1, 0 }
  0xc5   : > { %s8677_s22 = scalar_select %p7428_p3, 1, 0 }
  0xc6   : > { %8676 = sst [smem:[#allocation54_spill]] %s8675_s18  ;;  %s7433_s17 = sshll.u32 %s7081_s21, 4 }
  0xc7   : > { %s8678_s23 = sld [smem:[#allocation56_spill]]  ;;  %s694_s19 = scalar_lea.vmem [#allocation6], %s7419_s26 }
  0xc8   : > { %s701_s16 = sshll.u32 %s694_s19, 4  ;;  %s8629_s9 = scalar_lea.sflag [#allocation7], %s7426_s25  ;;  %s7442_s16 = int_to_ptr.vmem [resolvable:$true] %s701_s16 }
  0xc9   : > { %p7450_p13 = pneg %p7428_p3 }
  0xcb   : > { %s8679_s13 = scalar_select %p7450_p13, 1, 0 }
  0xcd   : > { %s7439_s6 = scalar_lea.hbm %s8678_s23, %s7433_s17  ;;  %s6587_s29 = scalar_lea.hbm %s8678_s23, 32 }
  0xce   : > { %s6582_s11 = scalar_lea.hbm %s7439_s6, 16  ;;  %p6588_p5 = scmp.lt.u32.totalorder %s7439_s6, %s8678_s23 }
  0xcf   : > { %p6583_p1 = scmp.ne.s32.totalorder %s7439_s6, %s6582_s11  ;;  %p6589_p7 = scmp.lt.u32.totalorder %s6587_s29, %s6582_s11 }
  0xd0   : > { %p6591_p11 = scmp.lt.u32.totalorder %s6582_s11, %s7439_s6 }
  0xd1   : > { %p6585_p0 = pnand %p7450_p13, %p6583_p1  ;;  %p6590_p10 = por %p6589_p7, %p6588_p5 }
  0xd3   : > { %p6586_p2 = pneg %p6585_p0  ;;  %p6592_p12 = por %p6591_p11, %p6590_p10 }
  0xd5   : > { %p6593_p4 = pnand %p6592_p12, %p6586_p2 }
  0xd7   : > { %6596 = shalt.err (!%p6593_p4)
}
  0xd8   : > { %s6597_s7 = scalar_lea.vmem %s7442_s16, 16  ;;  %s7090_s27 = smov [#allocation6]  }
  0xd9   : > { %p6598_p1 = scmp.ne.s32.totalorder %s7442_s16, %s6597_s7  ;;  %s6602_s5 = sshll.u32 %s7090_s27, 4  ;;  %s6603_s5 = int_to_ptr.vmem [resolvable:$false] %s6602_s5 }
  0xda   : > { %s6604_s20 = scalar_lea.vmem %s6603_s5, 32  ;;  %p6605_p6 = scmp.lt.s32.totalorder %s7442_s16, %s6603_s5 }
  0xdb   : > { %p6600_p0 = pnand %p6598_p1, %p7450_p13  ;;  %p6606_p8 = scmp.lt.s32.totalorder %s6604_s20, %s6597_s7 }
  0xdd   : > { %p6601_p9 = pneg %p6600_p0  ;;  %p6607_p5 = por %p6606_p8, %p6605_p6 }
  0xdf   : > { %p6608_p7 = pnand %p6607_p5, %p6601_p9 }
  0xe1   : > { %6611 = shalt.err (!%p6608_p7)
}
  0xe2   : > { %5987 = dma.hbm_to_vmem [thread:$0]  (!%p7428_p3), %s7439_s6, 16, %s7442_s16, %s8629_s9  }
  0xe3   : > { %s5163_s11 = sshll.u32 %s7081_s21, 8  ;;  %s8680_s27 = sld [smem:[#allocation58_spill]] }
  0xe4   : > { %s8681_s7 = sshll.u32 %s7419_s26, 4  ;;  %s726_s4 = scalar_lea.sflag [#allocation10], %s7426_s25 }
  0xe5   : > { %s729_s20 = scalar_lea.vmem [#allocation9], %s8681_s7 }
  0xe6   : > { %s736_s23 = sshll.u32 %s729_s20, 4  ;;  %s7483_s23 = int_to_ptr.vmem [resolvable:$true] %s736_s23 }
  0xe9   : > { %s7479_s5 = scalar_lea.hbm %s8680_s27, %s5163_s11  ;;  %s6617_s11 = scalar_lea.hbm %s8680_s27, 512 }
  0xea   : > { %s6612_s18 = scalar_lea.hbm %s7479_s5, 256  ;;  %p6618_p4 = scmp.lt.u32.totalorder %s7479_s5, %s8680_s27 }
  0xeb   : > { %p6613_p6 = scmp.ne.s32.totalorder %s7479_s5, %s6612_s18  ;;  %p6619_p12 = scmp.lt.u32.totalorder %s6617_s11, %s6612_s18 }
  0xec   : > { %p6621_p10 = scmp.lt.u32.totalorder %s6612_s18, %s7479_s5 }
  0xed   : > { %p6615_p8 = pnand %p6613_p6, %p7450_p13  ;;  %p6620_p2 = por %p6619_p12, %p6618_p4 }
  0xef   : > { %p6616_p9 = pneg %p6615_p8  ;;  %p6622_p11 = por %p6621_p10, %p6620_p2 }
  0xf1   : > { %p6623_p1 = pnand %p6622_p11, %p6616_p9 }
  0xf3   : > { %6626 = shalt.err (!%p6623_p1)
}
  0xf4   : > { %s6627_s7 = scalar_lea.vmem %s7483_s23, 256  ;;  %s7091_s20 = smov [#allocation9]  }
  0xf5   : > { %p6628_p0 = scmp.ne.s32.totalorder %s7483_s23, %s6627_s7  ;;  %s6632_s16 = sshll.u32 %s7091_s20, 4  ;;  %s6633_s16 = int_to_ptr.vmem [resolvable:$false] %s6632_s16 }
  0xf6   : > { %s6634_s6 = scalar_lea.vmem %s6633_s16, 512  ;;  %p6635_p6 = scmp.lt.s32.totalorder %s7483_s23, %s6633_s16 }
  0xf7   : > { %p6630_p5 = pnand %p6628_p0, %p7450_p13  ;;  %p6636_p8 = scmp.lt.s32.totalorder %s6634_s6, %s6627_s7 }
  0xf9   : > { %p6631_p7 = pneg %p6630_p5  ;;  %p6637_p4 = por %p6636_p8, %p6635_p6 }
  0xfb   : > { %p6638_p12 = pnand %p6637_p4, %p6631_p7 }
  0xfd   : > { %6641 = shalt.err (!%p6638_p12)
}
  0xfe   : > { %s8682_s18 = smov 8   ;;  %s8683_s11 = smov 128  }
  0xff   : > { %5993 = dma.hbm_to_vmem [thread:$0]  (!%p7428_p3), %s7479_s5, 256, %s7483_s23, %s726_s4, %s8683_s11, %s8683_s11, %s8682_s18  }
 0x100   : > { %s7092_s29 = smov [#allocation17]   ;;  %s7093_s20 = smov [#allocation20]  }
 0x101   : > { %s569_s19 = sshll.u32 %s7092_s29, 4  ;;  %s595_s16 = sshll.u32 %s7093_s20, 4  ;;  %s570_s19 = int_to_ptr.vmem [resolvable:$true] %s569_s19  ;;  %s596_s16 = int_to_ptr.vmem [resolvable:$true] %s595_s16 }
 0x102   : > { %s6642_s9 = scalar_lea.hbm %s8588_s8, 4608  ;;  %p8684_p2 = scmp.ne.s32.totalorder %s8664_s24, 0 }
 0x103   : > { %p6643_p9 = scmp.ne.s32.totalorder %s8588_s8, %s6642_s9  ;;  %p6649_p1 = scmp.lt.u32.totalorder %s6642_s9, %s8588_s8 }
 0x105   : > { %p6645_p10 = pnand %p6643_p9, %p8684_p2 }
 0x107   : > { %p6646_p11 = pneg %p6645_p10 }
 0x109   : > { %p6651_p0 = pnand %p6649_p1, %p6646_p11 }
 0x10b   : > { %6654 = shalt.err (!%p6651_p0)
}
 0x10c   : > { %s6655_s23 = scalar_lea.vmem %s570_s19, 4608  ;;  %p6663_p8 = scmp.lt.s32.totalorder %s570_s19, %s570_s19 }
 0x10d   : > { %p6656_p5 = scmp.ne.s32.totalorder %s570_s19, %s6655_s23  ;;  %p6664_p4 = scmp.lt.s32.totalorder %s6655_s23, %s6655_s23 }
 0x10f   : > { %p6658_p7 = pnand %p6656_p5, %p8684_p2  ;;  %p6665_p12 = por %p6664_p4, %p6663_p8 }
 0x111   : > { %p6659_p6 = pneg %p6658_p7 }
 0x113   : > { %p6666_p3 = pnand %p6665_p12, %p6659_p6 }
 0x115   : > { %6669 = shalt.err (!%p6666_p3)
}
 0x116   : > { %p8685_p9 = scmp.ne.s32.totalorder %s8662_s3, 0  ;;  %s6670_s27 = scalar_lea.hbm %s8590_s10, 1536 }
 0x117   : > { %p6671_p10 = scmp.ne.s32.totalorder %s8590_s10, %s6670_s27  ;;  %p6677_p1 = scmp.lt.u32.totalorder %s6670_s27, %s8590_s10 }
 0x118   : > { %5959 = dma.hbm_to_vmem [thread:$0]  (!%p8685_p9), %s8588_s8, 4608, %s570_s19, [#allocation16], %s8683_s11, %s8683_s11, %s8682_s18  }
 0x119   : > { %p6673_p3 = pnand %p6671_p10, %p8684_p2 }
 0x11b   : > { %p6674_p11 = pneg %p6673_p3 }
 0x11d   : > { %p6679_p0 = pnand %p6677_p1, %p6674_p11 }
 0x11f   : > { %6682 = shalt.err (!%p6679_p0)
}
 0x120   : > { %s6683_s6 = scalar_lea.vmem %s596_s16, 1536  ;;  %p6691_p8 = scmp.lt.s32.totalorder %s596_s16, %s596_s16 }
 0x121   : > { %p6684_p5 = scmp.ne.s32.totalorder %s596_s16, %s6683_s6  ;;  %p6692_p4 = scmp.lt.s32.totalorder %s6683_s6, %s6683_s6 }
 0x123   : > { %p6686_p7 = pnand %p6684_p5, %p8684_p2  ;;  %p6693_p12 = por %p6692_p4, %p6691_p8 }
 0x125   : > { %p6687_p6 = pneg %p6686_p7 }
 0x127   : > { %p6694_p13 = pnand %p6693_p12, %p6687_p6 }
 0x129   : > { %6697 = shalt.err (!%p6694_p13)
}
 0x12a   : > { %5965 = dma.hbm_to_vmem [thread:$0]  (!%p8685_p9), %s8590_s10, 1536, %s596_s16, [#allocation19], %s8683_s11, %s8683_s11, %s8682_s18  }
 0x12b   : > { %s7094_s0 = smov [#allocation23]   ;;  %s7095_s2 = smov [#allocation26]  }
 0x12c   : > { %s621_s9 = sshll.u32 %s7094_s0, 4  ;;  %s647_s1 = sshll.u32 %s7095_s2, 4  ;;  %s622_s9 = int_to_ptr.vmem [resolvable:$true] %s621_s9  ;;  %s648_s1 = int_to_ptr.vmem [resolvable:$true] %s647_s1 }
 0x12d   : > { %s6698_s29 = scalar_lea.hbm %s8592_s12, 4608 }
 0x12e   : > { %p6699_p13 = scmp.ne.s32.totalorder %s8592_s12, %s6698_s29  ;;  %p6705_p11 = scmp.lt.u32.totalorder %s6698_s29, %s8592_s12 }
 0x130   : > { %p6701_p10 = pnand %p6699_p13, %p8684_p2 }
 0x132   : > { %p6702_p3 = pneg %p6701_p10 }
 0x134   : > { %p6707_p1 = pnand %p6705_p11, %p6702_p3 }
 0x136   : > { %6710 = shalt.err (!%p6707_p1)
}
 0x137   : > { %s6711_s16 = scalar_lea.vmem %s622_s9, 4608  ;;  %p6719_p6 = scmp.lt.s32.totalorder %s622_s9, %s622_s9 }
 0x138   : > { %p6712_p0 = scmp.ne.s32.totalorder %s622_s9, %s6711_s16  ;;  %p6720_p8 = scmp.lt.s32.totalorder %s6711_s16, %s6711_s16 }
 0x13a   : > { %p6714_p5 = pnand %p6712_p0, %p8684_p2  ;;  %p6721_p4 = por %p6720_p8, %p6719_p6 }
 0x13c   : > { %p6715_p7 = pneg %p6714_p5 }
 0x13e   : > { %p6722_p12 = pnand %p6721_p4, %p6715_p7 }
 0x140   : > { %6725 = shalt.err (!%p6722_p12)
}
 0x141   : > { %5971 = dma.hbm_to_vmem [thread:$0]  (!%p8685_p9), %s8592_s12, 4608, %s622_s9, [#allocation22], %s8683_s11, %s8683_s11, %s8682_s18  }
 0x142   : > { %s6726_s5 = scalar_lea.hbm %s8594_s14, 48 }
 0x143   : > { %p6727_p13 = scmp.ne.s32.totalorder %s8594_s14, %s6726_s5  ;;  %p6733_p11 = scmp.lt.u32.totalorder %s6726_s5, %s8594_s14 }
 0x145   : > { %p6729_p10 = pnand %p6727_p13, %p8684_p2 }
 0x147   : > { %p6730_p3 = pneg %p6729_p10 }
 0x149   : > { %p6735_p1 = pnand %p6733_p11, %p6730_p3 }
 0x14b   : > { %6738 = shalt.err (!%p6735_p1)
}
 0x14c   : > { %s6739_s19 = scalar_lea.vmem %s648_s1, 48  ;;  %s6746_s9 = scalar_lea.vmem %s648_s1, 64 }
 0x14d   : > { %p6740_p0 = scmp.ne.s32.totalorder %s648_s1, %s6739_s19  ;;  %p6747_p6 = scmp.lt.s32.totalorder %s648_s1, %s648_s1 }
 0x14e   : > { %p6748_p8 = scmp.lt.s32.totalorder %s6746_s9, %s6739_s19 }
 0x14f   : > { %p6742_p5 = pnand %p6740_p0, %p8684_p2 }
 0x150   : > { %p6749_p4 = por %p6748_p8, %p6747_p6 }
 0x151   : > { %p6743_p7 = pneg %p6742_p5 }
 0x153   : > { %p6750_p12 = pnand %p6749_p4, %p6743_p7 }
 0x155   : > { %6753 = shalt.err (!%p6750_p12)
}
 0x156   : > { %s7096_s16 = smov 16   ;;  %s7097_s23 = smov 1  }
 0x157   : > { %5977 = dma.hbm_to_vmem [thread:$0]  (!%p8685_p9), %s8594_s14, 48, %s648_s1, [#allocation25], %s7096_s16, %s7096_s16, %s7097_s23  }
 0x158   : > { %s6754_s29 = scalar_lea.hbm %s8595_s15, 16 }
 0x159   : > { %p6755_p13 = scmp.ne.s32.totalorder %s8595_s15, %s6754_s29  ;;  %p6761_p11 = scmp.lt.u32.totalorder %s6754_s29, %s8595_s15 }
 0x15b   : > { %p6757_p10 = pnand %p6755_p13, %p8684_p2 }
 0x15d   : > { %p6758_p3 = pneg %p6757_p10 }
 0x15f   : > { %p6763_p1 = pnand %p6761_p11, %p6758_p3 }
 0x161   : > { %6766 = shalt.err (!%p6763_p1)
}
 0x162   : > { %s7098_s9 = smov [#allocation27]   ;;  %s4927_s24 = sshll.u32 %s7419_s26, 5 }
 0x163   : > { %5980 = dma.hbm_to_smem (!%p8685_p9), %s8595_s15, 16, %s7098_s9, [#allocation5]  }
 0x164   : > { %s5162_s23 = sshll.u32 %s7081_s21, 9  ;;  %s8686_s27 = sld [smem:[#allocation55_spill]] }
 0x165   : > { %s674_s3 = scalar_lea.vmem [#allocation2], %s4927_s24  ;;  %s671_s20 = scalar_lea.sflag [#allocation3], %s7419_s26 }
 0x166   : > { %s681_s29 = sshll.u32 %s674_s3, 4  ;;  %p8687_p0 = scmp.ne.s32.totalorder %s8679_s13, 0  ;;  %s7616_s29 = int_to_ptr.vmem [resolvable:$true] %s681_s29 }
 0x16a   : > { %s7614_s5 = scalar_lea.hbm %s8686_s27, %s5162_s23  ;;  %s6772_s9 = scalar_lea.hbm %s8686_s27, 1024 }
 0x16b   : > { %s6767_s7 = scalar_lea.hbm %s7614_s5, 512  ;;  %p6773_p7 = scmp.lt.u32.totalorder %s7614_s5, %s8686_s27 }
 0x16c   : > { %p6768_p2 = scmp.ne.s32.totalorder %s7614_s5, %s6767_s7  ;;  %p6774_p6 = scmp.lt.u32.totalorder %s6772_s9, %s6767_s7 }
 0x16d   : > { %p6776_p4 = scmp.lt.u32.totalorder %s6767_s7, %s7614_s5 }
 0x16e   : > { %p6770_p9 = pnand %p6768_p2, %p8687_p0  ;;  %p6775_p8 = por %p6774_p6, %p6773_p7 }
 0x170   : > { %p6771_p5 = pneg %p6770_p9  ;;  %p6777_p12 = por %p6776_p4, %p6775_p8 }
 0x172   : > { %p6778_p13 = pnand %p6777_p12, %p6771_p5 }
 0x174   : > { %6781 = shalt.err (!%p6778_p13)
}
 0x175   : > { %s6782_s24 = scalar_lea.vmem %s7616_s29, 512  ;;  %s7099_s23 = smov [#allocation2]  }
 0x176   : > { %p6783_p10 = scmp.ne.s32.totalorder %s7616_s29, %s6782_s24  ;;  %s6787_s0 = sshll.u32 %s7099_s23, 4  ;;  %s6788_s0 = int_to_ptr.vmem [resolvable:$false] %s6787_s0 }
 0x177   : > { %s6789_s2 = scalar_lea.vmem %s6788_s0, 1024  ;;  %p6790_p1 = scmp.lt.s32.totalorder %s7616_s29, %s6788_s0 }
 0x178   : > { %p6785_p3 = pnand %p6783_p10, %p8687_p0  ;;  %p6791_p2 = scmp.lt.s32.totalorder %s6789_s2, %s6782_s24 }
 0x17a   : > { %p6786_p11 = pneg %p6785_p3  ;;  %p6792_p9 = por %p6791_p2, %p6790_p1 }
 0x17c   : > { %p6793_p7 = pnand %p6792_p9, %p6786_p11 }
 0x17e   : > { %6796 = shalt.err (!%p6793_p7)
}
 0x17f   : > { %p8688_p5 = scmp.ne.s32.totalorder %s8677_s22, 0  ;;  %s8689_s6 = sld [smem:[#allocation57_spill]] }
 0x180   : > { %s711_s9 = scalar_lea.vmem [#allocation8], %s7419_s26 }
 0x181   : > { %5984 = dma.hbm_to_vmem [thread:$0]  (!%p8688_p5), %s7614_s5, 512, %s7616_s29, %s671_s20, %s8683_s11, %s8683_s11, %s8682_s18  }
 0x182   : > { %s718_s1 = sshll.u32 %s711_s9, 4  ;;  %s719_s1 = int_to_ptr.vmem [resolvable:$true] %s718_s1 }
 0x185   : > { %s7649_s19 = scalar_lea.hbm %s8689_s6, %s7433_s17  ;;  %s6802_s18 = scalar_lea.hbm %s8689_s6, 32 }
 0x186   : > { %s6797_s16 = scalar_lea.hbm %s7649_s19, 16  ;;  %p6803_p12 = scmp.lt.u32.totalorder %s7649_s19, %s8689_s6 }
 0x187   : > { %p6798_p6 = scmp.ne.s32.totalorder %s7649_s19, %s6797_s16  ;;  %p6804_p13 = scmp.lt.u32.totalorder %s6802_s18, %s6797_s16 }
 0x188   : > { %p6806_p3 = scmp.lt.u32.totalorder %s6797_s16, %s7649_s19 }
 0x189   : > { %p6800_p8 = pnand %p6798_p6, %p8687_p0  ;;  %p6805_p10 = por %p6804_p13, %p6803_p12 }
 0x18b   : > { %p6801_p4 = pneg %p6800_p8  ;;  %p6807_p11 = por %p6806_p3, %p6805_p10 }
 0x18d   : > { %p6808_p1 = pnand %p6807_p11, %p6801_p4 }
 0x18f   : > { %6811 = shalt.err (!%p6808_p1)
}
 0x190   : > { %s6812_s29 = scalar_lea.vmem %s719_s1, 16  ;;  %s7100_s20 = smov [#allocation8]  }
 0x191   : > { %p6813_p2 = scmp.ne.s32.totalorder %s719_s1, %s6812_s29  ;;  %s6817_s0 = sshll.u32 %s7100_s20, 4  ;;  %s6818_s0 = int_to_ptr.vmem [resolvable:$false] %s6817_s0 }
 0x192   : > { %s6819_s2 = scalar_lea.vmem %s6818_s0, 32  ;;  %p6820_p6 = scmp.lt.s32.totalorder %s719_s1, %s6818_s0 }
 0x193   : > { %p6815_p9 = pnand %p6813_p2, %p8687_p0  ;;  %p6821_p8 = scmp.lt.s32.totalorder %s6819_s2, %s6812_s29 }
 0x195   : > { %p6816_p7 = pneg %p6815_p9  ;;  %p6822_p5 = por %p6821_p8, %p6820_p6 }
 0x197   : > { %p6823_p12 = pnand %p6822_p5, %p6816_p7 }
 0x199   : > { %6826 = shalt.err (!%p6823_p12)
}
 0x19a   : > { %p8690_p13 = scmp.ne.s32.totalorder %s8677_s22, 0  ;;  %s8691_s3 = scalar_lea.sflag [#allocation7], %s7426_s25 }
 0x19b   : > { %s8692_s16 = sld [smem:[#allocation59_spill]]  ;;  %s749_s23 = scalar_lea.vmem [#allocation11], %s7419_s26 }
 0x19c   : > { %5990 = dma.hbm_to_vmem [thread:$0]  (!%p8690_p13), %s7649_s19, 16, %s719_s1, %s8691_s3  }
 0x19d   : > { %s756_s18 = sshll.u32 %s749_s23, 4  ;;  %s757_s18 = int_to_ptr.vmem [resolvable:$true] %s756_s18 }
 0x1a1   : > { %s7675_s24 = scalar_lea.hbm %s8692_s16, %s7433_s17  ;;  %s6832_s19 = scalar_lea.hbm %s8692_s16, 32 }
 0x1a2   : > { %s6827_s11 = scalar_lea.hbm %s7675_s24, 16  ;;  %p6833_p3 = scmp.lt.u32.totalorder %s7675_s24, %s8692_s16 }
 0x1a3   : > { %p6828_p5 = scmp.ne.s32.totalorder %s7675_s24, %s6827_s11  ;;  %p6834_p11 = scmp.lt.u32.totalorder %s6832_s19, %s6827_s11 }
 0x1a4   : > { %p6836_p2 = scmp.lt.u32.totalorder %s6827_s11, %s7675_s24 }
 0x1a5   : > { %p6830_p4 = pnand %p6828_p5, %p8687_p0  ;;  %p6835_p1 = por %p6834_p11, %p6833_p3 }
 0x1a7   : > { %p6831_p10 = pneg %p6830_p4  ;;  %p6837_p9 = por %p6836_p2, %p6835_p1 }
 0x1a9   : > { %p6838_p7 = pnand %p6837_p9, %p6831_p10 }
 0x1ab   : > { %6841 = shalt.err (!%p6838_p7)
}
 0x1ac   : > { %s6842_s0 = scalar_lea.vmem %s757_s18, 16  ;;  %s7101_s2 = smov [#allocation11]  }
 0x1ad   : > { %p6843_p6 = scmp.ne.s32.totalorder %s757_s18, %s6842_s0  ;;  %s6847_s3 = sshll.u32 %s7101_s2, 4  ;;  %s6848_s3 = int_to_ptr.vmem [resolvable:$false] %s6847_s3 }
 0x1ae   : > { %s6849_s7 = scalar_lea.vmem %s6848_s3, 32  ;;  %p6850_p5 = scmp.lt.s32.totalorder %s757_s18, %s6848_s3 }
 0x1af   : > { %p6845_p8 = pnand %p6843_p6, %p8687_p0  ;;  %p6851_p4 = scmp.lt.s32.totalorder %s6849_s7, %s6842_s0 }
 0x1b1   : > { %p6846_p12 = pneg %p6845_p8  ;;  %p6852_p13 = por %p6851_p4, %p6850_p5 }
 0x1b3   : > { %p6853_p3 = pnand %p6852_p13, %p6846_p12 }
 0x1b5   : > { %6856 = shalt.err (!%p6853_p3)
}
 0x1b6   : > { %p8693_p11 = scmp.ne.s32.totalorder %s8677_s22, 0  ;;  %s8694_s11 = sld [smem:[#allocation60_spill]] }
 0x1b7   : > { %s766_s29 = scalar_lea.vmem [#allocation12], %s7419_s26  ;;  %s764_s1 = scalar_lea.sflag [#allocation13], %s7426_s25 }
 0x1b8   : > { %5996 = dma.hbm_to_vmem [thread:$0]  (!%p8693_p11), %s7675_s24, 16, %s757_s18, %s726_s4  }
 0x1b9   : > { %s773_s19 = sshll.u32 %s766_s29, 4  ;;  %s774_s19 = int_to_ptr.vmem [resolvable:$true] %s773_s19 }
 0x1bc   : > { %s7701_s5 = scalar_lea.hbm %s8694_s11, %s7433_s17  ;;  %s6862_s24 = scalar_lea.hbm %s8694_s11, 32 }
 0x1bd   : > { %s6857_s20 = scalar_lea.hbm %s7701_s5, 16  ;;  %p6863_p2 = scmp.lt.u32.totalorder %s7701_s5, %s8694_s11 }
 0x1be   : > { %p6858_p13 = scmp.ne.s32.totalorder %s7701_s5, %s6857_s20  ;;  %p6864_p9 = scmp.lt.u32.totalorder %s6862_s24, %s6857_s20 }
 0x1bf   : > { %p6866_p6 = scmp.lt.u32.totalorder %s6857_s20, %s7701_s5 }
 0x1c0   : > { %p6860_p10 = pnand %p6858_p13, %p8687_p0  ;;  %p6865_p7 = por %p6864_p9, %p6863_p2 }
 0x1c2   : > { %p6861_p1 = pneg %p6860_p10  ;;  %p6867_p8 = por %p6866_p6, %p6865_p7 }
 0x1c4   : > { %p6868_p12 = pnand %p6867_p8, %p6861_p1 }
 0x1c6   : > { %6871 = shalt.err (!%p6868_p12)
}
 0x1c7   : > { %s6872_s26 = scalar_lea.vmem %s774_s19, 16  ;;  %s7102_s25 = smov [#allocation12]  }
 0x1c8   : > { %p6873_p5 = scmp.ne.s32.totalorder %s774_s19, %s6872_s26  ;;  %s6877_s2 = sshll.u32 %s7102_s25, 4  ;;  %s6878_s2 = int_to_ptr.vmem [resolvable:$false] %s6877_s2 }
 0x1c9   : > { %s6879_s3 = scalar_lea.vmem %s6878_s2, 32  ;;  %p6880_p13 = scmp.lt.s32.totalorder %s774_s19, %s6878_s2 }
 0x1ca   : > { %p6875_p4 = pnand %p6873_p5, %p8687_p0  ;;  %p6881_p10 = scmp.lt.s32.totalorder %s6879_s3, %s6872_s26 }
 0x1cc   : > { %p6876_p3 = pneg %p6875_p4  ;;  %p6882_p11 = por %p6881_p10, %p6880_p13 }
 0x1ce   : > { %p6883_p2 = pnand %p6882_p11, %p6876_p3 }
 0x1d0   : > { %6886 = shalt.err (!%p6883_p2)
}
 0x1d1   : > { %p8695_p9 = scmp.ne.s32.totalorder %s8677_s22, 0  ;;  %s8696_s7 = sld [smem:[#allocation50_spill]] }
 0x1d3   : > { %5999 = dma.hbm_to_vmem [thread:$0]  (!%p8695_p9), %s7701_s5, 16, %s774_s19, %s764_s1  }
 0x1d7   : > { %p8697_p1 = scmp.ne.s32.totalorder %s8696_s7, 0 }
 0x1d8   : > { %s7725_s13 = sand.u32 (!%p8697_p1), 1, %s7073_s30   ;;  %p8698_p0 = scmp.ne.s32.totalorder (!%p8697_p1), %s8672_s28, 0 }
 0x1d9   : > { %782 = sbr.rel (%p8697_p1) target bundleno = 4241 (0x1091), region = 84  ;;  %s4938_s9 = sshll.u32 (!%p8697_p1), %s7725_s13, 5 }
 0x1da   : > { %s785_s23 = scalar_lea.sflag (!%p8697_p1), [#allocation3], %s7725_s13  ;;  %s7731_s29 = scalar_lea.vmem (!%p8697_p1), [#allocation2], %s4938_s9 }
 0x1e0   : > { %7016 = dma.done.wait (%p8698_p0), %s785_s23, 512  }
 0x1e1   : > { %7018 = vsyncadd (%p8698_p0), %s785_s23, 4294966784  ;;  %s8699_s22 = sld [smem:[#allocation49_spill]]  ;;  %s796_s1 = scalar_lea.vmem [#allocation6], %s7725_s13 }
 0x1e7   : > { %s7738_s5 = sand.u32 1, %s8699_s22  }
 0x1e8   : > { %s794_s19 = scalar_lea.sflag [#allocation7], %s7738_s5 }
 0x1e9   : > { %7020 = dma.done.wait (%p8698_p0), %s794_s19, 32  }
 0x1ea   : > { %7022 = vsyncadd (%p8698_p0), %s794_s19, 4294967264  ;;  %s4939_s20 = sshll.u32 %s7725_s13, 4  ;;  %s804_s0 = scalar_lea.vmem [#allocation8], %s7725_s13 }
 0x1eb   : > { %s810_s4 = scalar_lea.sflag [#allocation10], %s7738_s5  ;;  %s7749_s24 = scalar_lea.vmem [#allocation9], %s4939_s20 }
 0x1ec   : > { %7024 = dma.done.wait (%p8698_p0), %s810_s4, 272  }
 0x1ed   : > { %7026 = vsyncadd (%p8698_p0), %s810_s4, 4294967024  ;;  %s821_s18 = scalar_lea.vmem [#allocation11], %s7725_s13  ;;  %s827_s17 = scalar_lea.sflag [#allocation13], %s7738_s5 }
 0x1ee   : > { %s829_s26 = scalar_lea.vmem [#allocation12], %s7725_s13 }
 0x1ef   : > { %7028 = dma.done.wait (%p8698_p0), %s827_s17, 16  }
 0x1f0   : > { %7030 = vsyncadd (%p8698_p0), %s827_s17, 4294967280  ;;  %p8700_p11 = scmp.eq.s32.totalorder %s8699_s22, 0 }
 0x1f2   : > { %7032 = dma.done.wait (%p8700_p11), [#allocation13], 1536   ;;  %p8701_p7 = pmov %p8700_p11 }
 0x1f4   : > { %7034 = vsyncadd (%p8701_p7), [#allocation13], 4294965760  ;;  %p8702_p6 = pmov %p8701_p7 }
 0x1f6   : > { %7036 = dma.done.wait (%p8702_p6), [#allocation16], 6144   ;;  %p8703_p8 = pmov %p8702_p6 }
 0x1f7   : > { %p8704_p12 = pmov %p8702_p6 }
 0x1f8   : > { %7038 = vsyncadd (%p8703_p8), [#allocation16], 4294961152 }
 0x1f9   : > { %7040 = dma.done.wait (%p8704_p12), [#allocation19], 3072   ;;  %p8705_p5 = pmov %p8702_p6 }
 0x1fb   : > { %7042 = vsyncadd (%p8705_p5), [#allocation19], 4294964224  ;;  %p8706_p4 = pmov %p8705_p5 }
 0x1fd   : > { %7044 = dma.done.wait (%p8706_p4), [#allocation22], 6144   ;;  %p8707_p3 = pmov %p8706_p4 }
 0x1ff   : > { %7046 = vsyncadd (%p8707_p3), [#allocation22], 4294961152  ;;  %p8708_p13 = pmov %p8707_p3 }
 0x200   : > { %p8709_p10 = pmov %p8707_p3 }
 0x201   : > { %7048 = dma.done.wait (%p8708_p13), [#allocation25], 1584  }
 0x202   : > { %7050 = vsyncadd (%p8709_p10), [#allocation25], 4294965712  ;;  %p8710_p2 = pmov %p8707_p3 }
 0x204   : > { %7052 = dma.done.wait (%p8710_p2), [#allocation5], 16   ;;  %p8711_p9 = pmov %p8710_p2 }
 0x206   : > { %7054 = vsyncadd (%p8711_p9), [#allocation5], 4294967280 }
 0x207   : > { %874 = sfence }
 0x208   : > { %v968_v0 = vld [vmem:[#allocation15] sm:$0xff]  ;;  %v7103_v2 = vmov 0   ;;  %v969_v3 = vld [vmem:[#allocation15 + $0x8] sm:$0xff]  ;;  %v967_v5 = vld [vmem:[#allocation14 + $0x18] sm:$0xff]  ;;  %vm990_vm0 = vcmask 130048   ;;  %s7104_s28 = smov 16  }
 0x209   : > { %v964_v1 = vld [vmem:[#allocation14] sm:$0xff]  ;;  %6093 = vset.pattern.permute.xlu1 %v7103_v2  ;;  %6092 = vset.pattern.permute.xlu0 %v7103_v2  ;;  %v965_v4 = vld [vmem:[#allocation14 + $0x8] sm:$0xff]  ;;  %v966_v6 = vld [vmem:[#allocation14 + $0x10] sm:$0xff]  ;;  %vm1088_vm1 = vcmask 1047680   ;;  %vm1150_vm2 = vcmask 261120   ;;  %s7105_s25 = smov 113  }
 0x20a   : > { %1063 = vperm.xlu1 %6093, %v968_v0   ;;  %1039 = vperm.xlu0 %6092, %v964_v1   ;;  %v971_v7 = vld [vmem:[#allocation15 + $0x18] sm:$0xff]  ;;  %v970_v8 = vld [vmem:[#allocation15 + $0x10] sm:$0xff]  ;;  %v7790_v10 = vld [vmem:[%s7731_s29 + $0x8] sm:$0xff]  ;;  %s7106_s2 = smov 127   ;;  %vm2246_vm7 = vcmask 195584   ;;  %s8031_s3 = scalar_lea.vmem [#allocation28], %s4938_s9 }
 0x20b   : > { %v7787_v9 = vld [vmem:[%s7731_s29] sm:$0xff]  ;;  %v992_v12 = vsel %vm990_vm0, %v7790_v10, 0.0  ;;  %v1005_v14 = vmul.f32 %v7790_v10, %v7790_v10  ;;  %v7801_v15 = vld [vmem:[%s7731_s29 + $0x10] sm:$0xff]  ;;  %v7810_v21 = vld [vmem:[%s7731_s29 + $0x18] sm:$0xff]  ;;  %s7107_s7 = smov 24   ;;  %vm2340_vm8 = vcmask 1047744  }
 0x20c   : > { %v991_v11 = vsel %vm990_vm0, %v7787_v9, 0.0  ;;  %v1004_v13 = vmul.f32 %v7787_v9, %v7787_v9  ;;  %v994_v17 = vsel %vm990_vm0, %v7801_v15, 0.0  ;;  %v1006_v18 = vmul.f32 %v7801_v15, %v7801_v15  ;;  %s7111_s9 = smov 105   ;;  %s2039_s23 = sld [smem:[#allocation27]] }
 0x20d   : > { %v993_v16 = vadd.f32 %v992_v12, %v991_v11  ;;  %v1009_v20 = vsel %vm990_vm0, %v1005_v14, 0.0  ;;  %v996_v24 = vsel %vm990_vm0, %v7810_v21, 0.0  ;;  %v1007_v25 = vmul.f32 %v7810_v21, %v7810_v21  ;;  %s945_s29 = scalar_lea.vmem [#allocation29], %s7725_s13  ;;  %s5084_s19 = sld [smem:[#allocation27 + $0x1]] }
 0x20e   : > { %1068 = vperm.xlu1 %6093, %v969_v3   ;;  %1044 = vperm.xlu0 %6092, %v965_v4   ;;  %v1008_v19 = vsel %vm990_vm0, %v1004_v13, 0.0  ;;  %v1011_v26 = vsel %vm990_vm0, %v1006_v18, 0.0  ;;  %vm7109_vm9 = vmmov 0   ;;  %vm2115_vm12 = vcmask 122880   ;;  %s8718_s20 = sld [smem:[#allocation53_spill]] }
 0x20f   : > { %v995_v22 = vadd.f32 %v994_v17, %v993_v16  ;;  %v1010_v23 = vadd.f32 %v1009_v20, %v1008_v19  ;;  %v1013_v29 = vsel %vm990_vm0, %v1007_v25, 0.0  ;;  %vm3371_vm13 = vcmask 188416  }
 0x211   : > { %v997_v27 = vadd.f32 %v996_v24, %v995_v22  ;;  %v1012_v28 = vadd.f32 %v1011_v26, %v1010_v23 }
 0x212   : > { %1054 = vperm.xlu1 %6093, %v967_v5   ;;  %1049 = vperm.xlu0 %6092, %v966_v6  }
 0x213   : > { %v998_v30 = vrot.slane %v997_v27, 4  ;;  %v1014_v31 = vadd.f32 %v1013_v29, %v1012_v28 }
 0x214   : > { %p8720_p0 = scmp.ne.s32.totalorder %s8718_s20, 0 }
 0x215   : > { %v999_v32 = vadd.f32 %v998_v30, %v997_v27  ;;  %v1015_v33 = vrot.slane %v1014_v31, 4 }
 0x216   : > { %1078 = vperm.xlu1 %6093, %v971_v7   ;;  %1073 = vperm.xlu0 %6092, %v970_v8  }
 0x217   : > { %v1000_v34 = vrot.slane %v999_v32, 2  ;;  %v1016_v35 = vadd.f32 %v1015_v33, %v1014_v31 }
 0x219   : > { %v1001_v36 = vadd.f32 %v1000_v34, %v999_v32  ;;  %v1017_v37 = vrot.slane %v1016_v35, 2  ;;  %v972_v34 = vld [vmem:[#allocation17] sm:$0xff] }
 0x21a   : > { %5341 = vmatprep.mubr.msk.f32.mxu0 %vm1150_vm2, %v972_v34 }
 0x21b   : > { %v1002_v38 = vrot.slane %v1001_v36, 1  ;;  %v1018_v39 = vadd.f32 %v1017_v37, %v1016_v35 }
 0x21d   : > { %v1003_v40 = vadd.f32 %v1002_v38, %v1001_v36  ;;  %v1019_v41 = vrot.slane %v1018_v39, 1 }
 0x21f   : > { %v1020_v42 = vadd.f32 %v1019_v41, %v1018_v39  ;;  %v1022_v43 = vmul.f32 0.03125, %v1003_v40  ;;  %v986_v41 = vld [vmem:[#allocation18] sm:$0xff] }
 0x221   : > { %v1023_v44 = vmul.f32 0.03125, %v1020_v42  ;;  %v1024_v45 = vmul.f32 %v1022_v43, %v1022_v43  ;;  %v1027_v49 = vsub.f32 %v7787_v9, %v1022_v43  ;;  %v1028_v51 = vsub.f32 %v7790_v10, %v1022_v43  ;;  %v988_v42 = vld [vmem:[#allocation18 + $0x10] sm:$0xff] }
 0x222   : > { %v1030_v57 = vsub.f32 %v7810_v21, %v1022_v43  ;;  %v1029_v58 = vsub.f32 %v7801_v15, %v1022_v43  ;;  %v987_v43 = vld [vmem:[#allocation18 + $0x8] sm:$0xff] }
 0x223   : > { %v1025_v46 = vsub.f32 %v1023_v44, %v1024_v45  ;;  %v1508_v44 = vld [vmem:[#allocation20] sm:$0xff]  ;;  %v989_v45 = vld [vmem:[#allocation18 + $0x18] sm:$0xff] }
 0x225   : > { %v1026_v47 = vmax.f32 %v1025_v46, 0.0  ;;  %v1512_v46 = vld [vmem:[#allocation21] sm:$0xff] }
 0x227   : > { %v1031_v48 = vadd.f32 1e-05, %v1026_v47  ;;  %v1509_v47 = vld [vmem:[#allocation20 + $0x8] sm:$0xff] }
 0x229   : > { %6334 = vrsqrt.f32 %v1031_v48  ;;  %v1510_v48 = vld [vmem:[#allocation20 + $0x10] sm:$0xff] }
 0x233   : > { %v6335_v50 = vpop.eup %6334 }
 0x234   : > { %v1033_v52 = vmul.f32 %v6335_v50, %v1027_v49  ;;  %v1034_v55 = vmul.f32 %v6335_v50, %v1028_v51  ;;  %v1036_v0 = vmul.f32 %v6335_v50, %v1030_v57  ;;  %v1035_v1 = vmul.f32 %v6335_v50, %v1029_v58  ;;  %v1513_v49 = vld [vmem:[#allocation21 + $0x8] sm:$0xff]  ;;  %v1514_v50 = vld [vmem:[#allocation21 + $0x10] sm:$0xff]  ;;  %v1511_v51 = vld [vmem:[#allocation20 + $0x18] sm:$0xff] }
 0x289   : > { %v1064_v53 = vpop.permute.xlu1 %1063  ;;  %v1040_v54 = vpop.permute.xlu0 %1039 }
 0x28a   : > { %v1057_v56 = vmul.f32 %v1040_v54, %v1033_v52  ;;  %v1515_v52 = vld [vmem:[#allocation21 + $0x18] sm:$0xff] }
 0x28c   : > { %v7822_v62 = vadd.f32 %v1064_v53, %v1057_v56  ;;  %v1085_v53 = vlaneseq }
 0x28d   : > { %v1069_v59 = vpop.permute.xlu1 %1068  ;;  %v1045_v60 = vpop.permute.xlu0 %1044 }
 0x28e   : > { %v1058_v61 = vmul.f32 %v1045_v60, %v1034_v55  ;;  %v7860_v54 = vand.u32 127, %v1085_v53 }
 0x290   : > { %v7824_v63 = vadd.f32 %v1069_v59, %v1058_v61  ;;  %vm5165_vm3 = vcmp.ne.s32.totalorder %v7860_v54, 0  ;;  %vm5166_vm5 = vcmp.ne.s32.totalorder %v7860_v54, 15  ;;  %vm5167_vm10 = vcmp.ne.s32.totalorder %v7860_v54, 23  ;;  %v2233_v54 = vld [vmem:[#allocation17 + $0x88] sm:$0xff] }
 0x291   : > { %v1055_v2 = vpop.permute.xlu1 %1054  ;;  %v1050_v3 = vpop.permute.xlu0 %1049  ;;  %vm7863_vm4 = vmpackc.low %vm5165_vm3, %vm5165_vm3 }
 0x292   : > { %v6094_v4 = vpack.i.bf16 %v7824_v63, %v7822_v62  ;;  %v1060_v5 = vmul.f32 %v1055_v2, %v1036_v0  ;;  %v1059_v6 = vmul.f32 %v1050_v3, %v1035_v1  ;;  %v5640_v2 = vpack.c.bf16 %v7824_v63, %v7822_v62  ;;  %vm7882_vm6 = vmpackc.low %vm5166_vm5, %vm5166_vm5 }
 0x293   : > { %vm8124_vm11 = vmpackc.low %vm5167_vm10, %vm5167_vm10 }
 0x294   : > { %6095 = vrot.lane.b32.xlu0 %v6094_v4, %s7104_s28  ;;  %v973_v4 = vld [vmem:[#allocation17 + $0x8] sm:$0xff] }
 0x295   : > { %v1079_v7 = vpop.permute.xlu1 %1078  ;;  %v1074_v8 = vpop.permute.xlu0 %1073 }
 0x296   : > { %v7829_v11 = vadd.f32 %v1079_v7, %v1060_v5  ;;  %v7831_v12 = vadd.f32 %v1074_v8, %v1059_v6  ;;  %v974_v5 = vld [vmem:[#allocation17 + $0x10] sm:$0xff] }
 0x298   : > { %v6099_v13 = vpack.i.bf16 %v7829_v11, %v7831_v12  ;;  %v5644_v8 = vpack.c.bf16 %v7829_v11, %v7831_v12 }
 0x29a   : > { %6100 = vrot.lane.b32.xlu1 %v6099_v13, %s7104_s28 }
 0x306   : > { %v6096_v14 = vpop.permute.xlu0 %6095 }
 0x307   : > { %v6098_v16 = vunpack.i.h.bf16 %v6096_v14  ;;  %v6097_v17 = vunpack.i.l.bf16 %v6096_v14 }
 0x309   : > { %v1091_v18 = vsel %vm1088_vm1, %v6097_v17, %v7822_v62  ;;  %v1094_v19 = vsel %vm1088_vm1, %v6098_v16, %v7824_v63 }
 0x30a   : > { %v6104_v20 = vpack.i.bf16 %v1094_v19, %v1091_v18 }
 0x30c   : > { %v6101_v22 = vpop.permute.xlu1 %6100  ;;  %6105 = vrot.lane.b32.xlu0 %v6104_v20, %s7104_s28  ;;  %v980_v20 = vld [vmem:[#allocation17 + $0x38] sm:$0xff] }
 0x30d   : > { %v6103_v23 = vunpack.i.h.bf16 %v6101_v22  ;;  %v6102_v24 = vunpack.i.l.bf16 %v6101_v22  ;;  %v982_v22 = vld [vmem:[#allocation17 + $0x40] sm:$0xff] }
 0x30f   : > { %v1097_v25 = vsel %vm1088_vm1, %v6102_v24, %v7831_v12  ;;  %v1100_v26 = vsel %vm1088_vm1, %v6103_v23, %v7829_v11  ;;  %v983_v23 = vld [vmem:[#allocation17 + $0x48] sm:$0xff]  ;;  %v984_v24 = vld [vmem:[#allocation17 + $0x50] sm:$0xff] }
 0x310   : > { %v6109_v27 = vpack.i.bf16 %v1100_v26, %v1097_v25  ;;  %v985_v25 = vld [vmem:[#allocation17 + $0x58] sm:$0xff] }
 0x312   : > { %6110 = vrot.lane.b32.xlu1 %v6109_v27, %s7104_s28 }
 0x37e   : > { %v6106_v28 = vpop.permute.xlu0 %6105 }
 0x37f   : > { %v6108_v29 = vunpack.i.h.bf16 %v6106_v28  ;;  %v6107_v30 = vunpack.i.l.bf16 %v6106_v28 }
 0x381   : > { %v1109_v31 = vsel %vm1088_vm1, %v6107_v30, %v7822_v62  ;;  %v1110_v32 = vsel %vm1088_vm1, %v6108_v29, %v7824_v63  ;;  %v975_v62 = vld [vmem:[#allocation17 + $0x18] sm:$0xff]  ;;  %v977_v63 = vld [vmem:[#allocation17 + $0x20] sm:$0xff] }
 0x382   : > { %v6114_v33 = vpack.i.bf16 %v1110_v32, %v1109_v31 }
 0x384   : > { %v6111_v35 = vpop.permute.xlu1 %6110  ;;  %6115 = vrot.lane.b32.xlu0 %v6114_v33, %s7105_s25 }
 0x385   : > { %v6113_v36 = vunpack.i.h.bf16 %v6111_v35  ;;  %v6112_v37 = vunpack.i.l.bf16 %v6111_v35 }
 0x387   : > { %v1111_v38 = vsel %vm1088_vm1, %v6112_v37, %v7831_v12  ;;  %v1112_v39 = vsel %vm1088_vm1, %v6113_v36, %v7829_v11  ;;  %v978_v11 = vld [vmem:[#allocation17 + $0x28] sm:$0xff]  ;;  %v979_v12 = vld [vmem:[#allocation17 + $0x30] sm:$0xff] }
 0x388   : > { %6125 = vrot.lane.b32.xlu0 %v6114_v33, %s7106_s2  ;;  %v6119_v40 = vpack.i.bf16 %v1112_v39, %v1111_v38 }
 0x38a   : > { %6120 = vrot.lane.b32.xlu1 %v6119_v40, %s7105_s25 }
 0x38c   : > { %1448 = vperm.xlu0 %6092, %v986_v41  }
 0x38e   : > { %6130 = vrot.lane.b32.xlu1 %v6119_v40, %s7106_s2 }
 0x390   : > { %1458 = vperm.xlu0 %6092, %v988_v42  }
 0x392   : > { %1453 = vperm.xlu1 %6093, %v987_v43  }
 0x394   : > { %1581 = vperm.xlu0 %6092, %v1508_v44  }
 0x396   : > { %1463 = vperm.xlu1 %6093, %v989_v45  }
 0x398   : > { %1605 = vperm.xlu0 %6092, %v1512_v46  }
 0x39a   : > { %1586 = vperm.xlu1 %6093, %v1509_v47   ;;  %v1500_v47 = vshrl.u32 %v1085_v53, 7 }
 0x39c   : > { %1591 = vperm.xlu0 %6092, %v1510_v48  }
 0x39e   : > { %1610 = vperm.xlu1 %6093, %v1513_v49  }
 0x3a0   : > { %1615 = vperm.xlu0 %6092, %v1514_v50  }
 0x3a2   : > { %1596 = vperm.xlu1 %6093, %v1511_v51   ;;  %v1501_v51 = vsub.s32 0, %v1500_v47 }
 0x3a6   : > { %1620 = vperm.xlu1 %6093, %v1515_v52   ;;  %v7906_v52 = vld [vmem:[%s796_s1] sm:$0x1]  ;;  %s951_s1 = scalar_lea.vmem [#allocation31], %s7725_s13 }
 0x3f6   : > { %v6116_v55 = vpop.permute.xlu0 %6115 }
 0x3f7   : > { %v6118_v56 = vunpack.i.h.bf16 %v6116_v55  ;;  %v6117_v57 = vunpack.i.l.bf16 %v6116_v55  ;;  %v7909_v55 = vrot.slane %v7906_v52, %v1501_v51 }
 0x3f9   : > { %v5628_v59 = vpack.c.bf16 %v6118_v56, %v6117_v57 }
 0x3fa   : > { %v6126_v3 = vpop.permute.xlu0 %6125 }
 0x3fb   : > { %5630 = vmatprep.subr.msk.bf16.mxu0 %vm7863_vm4, %v5628_v59  ;;  %v6128_v6 = vunpack.i.h.bf16 %v6126_v3  ;;  %v6127_v7 = vunpack.i.l.bf16 %v6126_v3 }
 0x3fc   : > { %v6121_v60 = vpop.permute.xlu1 %6120  ;;  %5633 = vmatpush3.bf16.msk.msra.mxu0 %vm7863_vm4, %v5628_v59 }
 0x3fd   : > { %v6123_v61 = vunpack.i.h.bf16 %v6121_v60  ;;  %v6122_v0 = vunpack.i.l.bf16 %v6121_v60  ;;  %v5648_v16 = vpack.c.bf16 %v6128_v6, %v6127_v7 }
 0x3ff   : > { %v5634_v1 = vpack.c.bf16 %v6123_v61, %v6122_v0 }
 0x400   : > { %v6131_v13 = vpop.permute.xlu1 %6130 }
 0x401   : > { %5636 = vmatprep.subr.msk.bf16.mxu0 %vm7863_vm4, %v5634_v1  ;;  %v6133_v17 = vunpack.i.h.bf16 %v6131_v13  ;;  %v6132_v18 = vunpack.i.l.bf16 %v6131_v13 }
 0x402   : > { %5639 = vmatpush3.bf16.msk.msra.mxu0 %vm7863_vm4, %v5634_v1 }
 0x403   : > { %5641 = vmatprep.subr.bf16.mxu0 %v5640_v2  ;;  %v5654_v19 = vpack.c.bf16 %v6133_v17, %v6132_v18 }
 0x405   : > { %5342 = vmatmul.mubr.msk.f32.vlgmr.msra.gmra.mrb[0].mxu0 %vm1150_vm2, %v973_v4 }
 0x406   : > { %5643 = vmatpush3.bf16.msra.mxu0 %v5640_v2  ;;  %5344 = vmatprep.mubr.msk.f32.mxu0 %vm1150_vm2, %v974_v5 }
 0x407   : > { %5645 = vmatprep.subr.bf16.mxu0 %v5644_v8 }
 0x409   : > { %5345 = vmatmul.mubr.msk.f32.gmra.mrb[2].mxu0 %vm1150_vm2, %v975_v62 }
 0x40a   : > { %5647 = vmatpush3.bf16.msra.mxu0 %v5644_v8  ;;  %5355 = vmatprep.mubr.msk.f32.mxu0 %vm1150_vm2, %v977_v63 }
 0x40b   : > { %5650 = vmatprep.subr.msk.bf16.mxu0 %vm7882_vm6, %v5648_v16  ;;  %v1449_v27 = vpop.permute.xlu0 %1448 }
 0x40d   : > { %5356 = vmatmul.mubr.msk.f32.vlgmr.msra.gmra.mrb[0].mxu0 %vm1150_vm2, %v978_v11 }
 0x40e   : > { %5653 = vmatpush3.bf16.msk.msra.mxu0 %vm7882_vm6, %v5648_v16  ;;  %5358 = vmatprep.mubr.msk.f32.mxu0 %vm1150_vm2, %v979_v12 }
 0x40f   : > { %5656 = vmatprep.subr.msk.bf16.mxu0 %vm7882_vm6, %v5654_v19  ;;  %v1459_v36 = vpop.permute.xlu0 %1458 }
 0x411   : > { %5359 = vmatmul.mubr.msk.f32.gmra.mrb[2].mxu0 %vm1150_vm2, %v980_v20  ;;  %v1454_v26 = vpop.permute.xlu1 %1453 }
 0x412   : > { %5659 = vmatpush3.bf16.msk.msra.mxu0 %vm7882_vm6, %v5654_v19  ;;  %5369 = vmatprep.mubr.msk.f32.mxu0 %vm1150_vm2, %v982_v22 }
 0x413   : > { %v1582_v47 = vpop.permute.xlu0 %1581 }
 0x415   : > { %5370 = vmatmul.mubr.msk.f32.vlgmr.msra.gmra.mrb[0].mxu0 %vm1150_vm2, %v983_v23  ;;  %v1464_v33 = vpop.permute.xlu1 %1463 }
 0x416   : > { %5372 = vmatprep.mubr.msk.f32.mxu0 %vm1150_vm2, %v984_v24 }
 0x417   : > { %v1606_v51 = vpop.permute.xlu0 %1605 }
 0x419   : > { %5373 = vmatmul.mubr.msk.f32.gmra.mrb[2].mxu0 %vm1150_vm2, %v985_v25 }
 0x4e8   : > { %v5371_v28 = vpop.f32.mrb[0].mxu0 }
 0x4e9   : > { %v1467_v29 = vadd.f32 %v5371_v28, %v1454_v26  ;;  %v1423_v30 = vpop.f32.mrb[1].mxu0 }
 0x4ea   : > { %v1466_v31 = vadd.f32 %v1449_v27, %v1423_v30 }
 0x4eb   : > { %v4980_v32 = vmul.f32 -1.442695, %v1467_v29 }
 0x4ec   : > { %v4979_v34 = vmul.f32 -1.442695, %v1466_v31  ;;  %v5374_v35 = vpop.f32.mrb[2].mxu0 }
 0x4ed   : > { %6336 = vpow2.f32 %v4980_v32  ;;  %v1469_v37 = vadd.f32 %v5374_v35, %v1464_v33  ;;  %v1433_v38 = vpop.f32.mrb[3].mxu0 }
 0x4ee   : > { %6338 = vpow2.f32 %v4979_v34  ;;  %v1468_v39 = vadd.f32 %v1459_v36, %v1433_v38 }
 0x4ef   : > { %v4982_v40 = vmul.f32 -1.442695, %v1469_v37 }
 0x4f0   : > { %v4981_v41 = vmul.f32 -1.442695, %v1468_v39 }
 0x4f1   : > { %6340 = vpow2.f32 %v4982_v40 }
 0x4f2   : > { %6342 = vpow2.f32 %v4981_v41 }
 0x4f7   : > { %v6337_v42 = vpop.eup %6336 }
 0x4f8   : > { %v6339_v43 = vpop.eup %6338  ;;  %v1483_v44 = vadd.f32 1.0, %v6337_v42 }
 0x4f9   : > { %v1482_v45 = vadd.f32 1.0, %v6339_v43 }
 0x4fa   : > { %6344 = vrcp.f32 %v1483_v44 }
 0x4fb   : > { %v6341_v46 = vpop.eup %6340  ;;  %6346 = vrcp.f32 %v1482_v45 }
 0x4fc   : > { %v6343_v48 = vpop.eup %6342  ;;  %v1485_v49 = vadd.f32 1.0, %v6341_v46 }
 0x4fd   : > { %v1484_v50 = vadd.f32 1.0, %v6343_v48  ;;  %v1587_v48 = vpop.permute.xlu1 %1586 }
 0x4fe   : > { %6348 = vrcp.f32 %v1485_v49 }
 0x4ff   : > { %6350 = vrcp.f32 %v1484_v50 }
 0x504   : > { %v6345_v56 = vpop.eup %6344 }
 0x505   : > { %v6347_v57 = vpop.eup %6346  ;;  %v1495_v59 = vmul.f32 %v6345_v56, %v1467_v29  ;;  %v1611_v56 = vpop.permute.xlu1 %1610 }
 0x506   : > { %v1494_v60 = vmul.f32 %v6347_v57, %v1466_v31  ;;  %v1592_v57 = vpop.permute.xlu0 %1591 }
 0x507   : > { %v1505_v61 = vmul.f32 %v7909_v55, %v1495_v59 }
 0x508   : > { %v6349_v53 = vpop.eup %6348  ;;  %v1504_v0 = vmul.f32 %v7909_v55, %v1494_v60 }
 0x509   : > { %v6351_v1 = vpop.eup %6350  ;;  %v1535_v2 = vsel %vm990_vm0, %v1505_v61, 0.0  ;;  %v1548_v3 = vmul.f32 %v1505_v61, %v1505_v61  ;;  %v1497_v4 = vmul.f32 %v6349_v53, %v1469_v37  ;;  %v1597_v59 = vpop.permute.xlu1 %1596 }
 0x50a   : > { %v1534_v5 = vsel %vm990_vm0, %v1504_v0, 0.0  ;;  %v1547_v6 = vmul.f32 %v1504_v0, %v1504_v0  ;;  %v1496_v7 = vmul.f32 %v6351_v1, %v1468_v39 }
 0x50b   : > { %v1552_v8 = vsel %vm990_vm0, %v1548_v3, 0.0  ;;  %v1536_v13 = vadd.f32 %v1535_v2, %v1534_v5  ;;  %v1507_v62 = vmul.f32 %v7909_v55, %v1497_v4 }
 0x50c   : > { %v1551_v63 = vsel %vm990_vm0, %v1547_v6, 0.0  ;;  %v1506_v16 = vmul.f32 %v7909_v55, %v1496_v7 }
 0x50d   : > { %v1553_v17 = vadd.f32 %v1552_v8, %v1551_v63  ;;  %v1550_v18 = vmul.f32 %v1507_v62, %v1507_v62  ;;  %v1539_v20 = vsel %vm990_vm0, %v1507_v62, 0.0  ;;  %v1621_v7 = vpop.permute.xlu1 %1620 }
 0x50e   : > { %v1537_v11 = vsel %vm990_vm0, %v1506_v16, 0.0  ;;  %v1549_v12 = vmul.f32 %v1506_v16, %v1506_v16 }
 0x50f   : > { %v1538_v19 = vadd.f32 %v1537_v11, %v1536_v13  ;;  %v1556_v25 = vsel %vm990_vm0, %v1550_v18, 0.0 }
 0x510   : > { %v1554_v22 = vsel %vm990_vm0, %v1549_v12, 0.0 }
 0x511   : > { %v1540_v23 = vadd.f32 %v1539_v20, %v1538_v19  ;;  %v1555_v24 = vadd.f32 %v1554_v22, %v1553_v17 }
 0x513   : > { %v1541_v26 = vrot.slane %v1540_v23, 4  ;;  %v1557_v27 = vadd.f32 %v1556_v25, %v1555_v24 }
 0x515   : > { %v1542_v28 = vadd.f32 %v1541_v26, %v1540_v23  ;;  %v1558_v29 = vrot.slane %v1557_v27, 4 }
 0x517   : > { %v1543_v30 = vrot.slane %v1542_v28, 2  ;;  %v1559_v31 = vadd.f32 %v1558_v29, %v1557_v27 }
 0x519   : > { %v1544_v32 = vadd.f32 %v1543_v30, %v1542_v28  ;;  %v1560_v33 = vrot.slane %v1559_v31, 2 }
 0x51b   : > { %v1545_v34 = vrot.slane %v1544_v32, 1  ;;  %v1561_v35 = vadd.f32 %v1560_v33, %v1559_v31 }
 0x51d   : > { %v1546_v36 = vadd.f32 %v1545_v34, %v1544_v32  ;;  %v1562_v37 = vrot.slane %v1561_v35, 1 }
 0x51f   : > { %v1563_v38 = vadd.f32 %v1562_v37, %v1561_v35  ;;  %v1564_v39 = vmul.f32 0.03125, %v1546_v36 }
 0x521   : > { %v1565_v40 = vmul.f32 0.03125, %v1563_v38  ;;  %v1566_v41 = vmul.f32 %v1564_v39, %v1564_v39  ;;  %v1571_v42 = vsub.f32 %v1506_v16, %v1564_v39  ;;  %v1572_v43 = vsub.f32 %v1507_v62, %v1564_v39 }
 0x522   : > { %v1569_v44 = vsub.f32 %v1504_v0, %v1564_v39  ;;  %v1570_v45 = vsub.f32 %v1505_v61, %v1564_v39  ;;  %v1616_v61 = vpop.permute.xlu0 %1615  ;;  %v1516_v39 = vld [vmem:[#allocation23] sm:$0xff] }
 0x523   : > { %v1567_v46 = vsub.f32 %v1565_v40, %v1566_v41  ;;  %5383 = vmatprep.mubr.msk.f32.mxu1 %vm1150_vm2, %v1516_v39 }
 0x525   : > { %v1568_v49 = vmax.f32 %v1567_v46, 0.0  ;;  %v2220_v46 = vld [vmem:[#allocation14 + $0x38] sm:$0xff] }
 0x527   : > { %v1573_v50 = vadd.f32 1e-05, %v1568_v49  ;;  %v2224_v49 = vld [vmem:[#allocation15 + $0x30] sm:$0xff] }
 0x529   : > { %6352 = vrsqrt.f32 %v1573_v50 }
 0x533   : > { %v6353_v60 = vpop.eup %6352 }
 0x534   : > { %v1577_v53 = vmul.f32 %v6353_v60, %v1571_v42  ;;  %v1578_v1 = vmul.f32 %v6353_v60, %v1572_v43  ;;  %v1575_v2 = vmul.f32 %v6353_v60, %v1569_v44  ;;  %v1576_v3 = vmul.f32 %v6353_v60, %v1570_v45  ;;  %v2218_v42 = vld [vmem:[#allocation14 + $0x28] sm:$0xff]  ;;  %v2217_v43 = vld [vmem:[#allocation14 + $0x20] sm:$0xff] }
 0x535   : > { %v2223_v44 = vld [vmem:[#allocation15 + $0x28] sm:$0xff]  ;;  %v2222_v45 = vld [vmem:[#allocation15 + $0x20] sm:$0xff] }
 0x536   : > { %v1601_v4 = vmul.f32 %v1592_v57, %v1577_v53  ;;  %v1602_v5 = vmul.f32 %v1597_v59, %v1578_v1  ;;  %v1599_v6 = vmul.f32 %v1582_v47, %v1575_v2  ;;  %v1600_v0 = vmul.f32 %v1587_v48, %v1576_v3  ;;  %v2219_v47 = vld [vmem:[#allocation14 + $0x30] sm:$0xff]  ;;  %v2225_v48 = vld [vmem:[#allocation15 + $0x38] sm:$0xff] }
 0x538   : > { %v7923_v8 = vadd.f32 %v1616_v61, %v1601_v4  ;;  %v7925_v13 = vadd.f32 %v1621_v7, %v1602_v5  ;;  %v7927_v62 = vadd.f32 %v1606_v51, %v1599_v6  ;;  %v7929_v63 = vadd.f32 %v1611_v56, %v1600_v0  ;;  %v1517_v4 = vld [vmem:[#allocation23 + $0x8] sm:$0xff]  ;;  %v1518_v5 = vld [vmem:[#allocation23 + $0x10] sm:$0xff] }
 0x53a   : > { %v6139_v16 = vpack.i.bf16 %v7925_v13, %v7923_v8  ;;  %v6134_v17 = vpack.i.bf16 %v7929_v63, %v7927_v62  ;;  %v5672_v2 = vpack.c.bf16 %v7929_v63, %v7927_v62  ;;  %v5676_v61 = vpack.c.bf16 %v7925_v13, %v7923_v8 }
 0x53c   : > { %6140 = vrot.lane.b32.xlu1 %v6139_v16, %s7104_s28  ;;  %6135 = vrot.lane.b32.xlu0 %v6134_v17, %s7104_s28 }
 0x5ae   : > { %v6141_v18 = vpop.permute.xlu1 %6140  ;;  %v6136_v11 = vpop.permute.xlu0 %6135 }
 0x5af   : > { %v6143_v12 = vunpack.i.h.bf16 %v6141_v18  ;;  %v6142_v19 = vunpack.i.l.bf16 %v6141_v18  ;;  %v6138_v20 = vunpack.i.h.bf16 %v6136_v11  ;;  %v6137_v22 = vunpack.i.l.bf16 %v6136_v11  ;;  %v1522_v11 = vld [vmem:[#allocation23 + $0x28] sm:$0xff] }
 0x5b1   : > { %v1635_v23 = vsel %vm1088_vm1, %v6142_v19, %v7923_v8  ;;  %v1638_v24 = vsel %vm1088_vm1, %v6143_v12, %v7925_v13  ;;  %v1629_v25 = vsel %vm1088_vm1, %v6137_v22, %v7927_v62  ;;  %v1632_v26 = vsel %vm1088_vm1, %v6138_v20, %v7929_v63  ;;  %v2118_v12 = vld [vmem:[%s7749_s24 + $0x8] sm:$0xff] }
 0x5b2   : > { %v6149_v27 = vpack.i.bf16 %v1638_v24, %v1635_v23  ;;  %v6144_v28 = vpack.i.bf16 %v1632_v26, %v1629_v25  ;;  %v1524_v20 = vld [vmem:[#allocation23 + $0x38] sm:$0xff]  ;;  %v1526_v22 = vld [vmem:[#allocation23 + $0x40] sm:$0xff]  ;;  %v1527_v24 = vld [vmem:[#allocation23 + $0x48] sm:$0xff] }
 0x5b3   : > { %v1528_v25 = vld [vmem:[#allocation23 + $0x50] sm:$0xff]  ;;  %v1529_v26 = vld [vmem:[#allocation23 + $0x58] sm:$0xff] }
 0x5b4   : > { %6150 = vrot.lane.b32.xlu1 %v6149_v27, %s7104_s28  ;;  %6145 = vrot.lane.b32.xlu0 %v6144_v28, %s7104_s28  ;;  %s8640_s28 = scalar_lea.sflag [#allocation30], %s7738_s5 }
 0x626   : > { %v6151_v29 = vpop.permute.xlu1 %6150  ;;  %v6146_v30 = vpop.permute.xlu0 %6145 }
 0x627   : > { %v6153_v31 = vunpack.i.h.bf16 %v6151_v29  ;;  %v6152_v32 = vunpack.i.l.bf16 %v6151_v29  ;;  %v6148_v33 = vunpack.i.h.bf16 %v6146_v30  ;;  %v6147_v34 = vunpack.i.l.bf16 %v6146_v30 }
 0x629   : > { %v1649_v35 = vsel %vm1088_vm1, %v6152_v32, %v7923_v8  ;;  %v1650_v36 = vsel %vm1088_vm1, %v6153_v31, %v7925_v13  ;;  %v1647_v37 = vsel %vm1088_vm1, %v6147_v34, %v7927_v62  ;;  %v1648_v38 = vsel %vm1088_vm1, %v6148_v33, %v7929_v63  ;;  %v1519_v62 = vld [vmem:[#allocation23 + $0x18] sm:$0xff]  ;;  %v1521_v63 = vld [vmem:[#allocation23 + $0x20] sm:$0xff]  ;;  %v1523_v8 = vld [vmem:[#allocation23 + $0x30] sm:$0xff] }
 0x62a   : > { %v6159_v40 = vpack.i.bf16 %v1650_v36, %v1649_v35  ;;  %v6154_v41 = vpack.i.bf16 %v1648_v38, %v1647_v37  ;;  %v2117_v13 = vld [vmem:[%s7749_s24] sm:$0xff] }
 0x62b   : > { %v5698_v23 = vpack.c.bf16 %v2118_v12, %v2117_v13 }
 0x62c   : > { %6160 = vrot.lane.b32.xlu1 %v6159_v40, %s7105_s25  ;;  %6155 = vrot.lane.b32.xlu0 %v6154_v41, %s7105_s25 }
 0x630   : > { %6170 = vrot.lane.b32.xlu1 %v6159_v40, %s7106_s2  ;;  %6165 = vrot.lane.b32.xlu0 %v6154_v41, %s7106_s2 }
 0x634   : > { %2299 = vperm.xlu1 %6093, %v2218_v42   ;;  %2294 = vperm.xlu0 %6092, %v2217_v43  }
 0x638   : > { %2323 = vperm.xlu1 %6093, %v2223_v44   ;;  %2318 = vperm.xlu0 %6092, %v2222_v45  }
 0x63c   : > { %2309 = vperm.xlu1 %6093, %v2220_v46   ;;  %2304 = vperm.xlu0 %6092, %v2219_v47  }
 0x640   : > { %2333 = vperm.xlu1 %6093, %v2225_v48   ;;  %2328 = vperm.xlu0 %6092, %v2224_v49  }
 0x69e   : > { %v6161_v50 = vpop.permute.xlu1 %6160  ;;  %v6156_v51 = vpop.permute.xlu0 %6155 }
 0x69f   : > { %v6163_v56 = vunpack.i.h.bf16 %v6161_v50  ;;  %v6162_v57 = vunpack.i.l.bf16 %v6161_v50  ;;  %v6158_v59 = vunpack.i.h.bf16 %v6156_v51  ;;  %v6157_v60 = vunpack.i.l.bf16 %v6156_v51 }
 0x6a1   : > { %v5660_v53 = vpack.c.bf16 %v6158_v59, %v6157_v60  ;;  %v5666_v1 = vpack.c.bf16 %v6163_v56, %v6162_v57 }
 0x6a2   : > { %v6166_v3 = vpop.permute.xlu0 %6165  ;;  %v6171_v7 = vpop.permute.xlu1 %6170 }
 0x6a3   : > { %5662 = vmatprep.subr.msk.bf16.mxu1 %vm7863_vm4, %v5660_v53  ;;  %v6168_v6 = vunpack.i.h.bf16 %v6166_v3  ;;  %v6167_v0 = vunpack.i.l.bf16 %v6166_v3  ;;  %v6173_v16 = vunpack.i.h.bf16 %v6171_v7  ;;  %v6172_v17 = vunpack.i.l.bf16 %v6171_v7 }
 0x6a4   : > { %5665 = vmatpush3.bf16.msk.msra.mxu1 %vm7863_vm4, %v5660_v53 }
 0x6a5   : > { %5668 = vmatprep.subr.msk.bf16.mxu1 %vm7863_vm4, %v5666_v1  ;;  %v5680_v18 = vpack.c.bf16 %v6168_v6, %v6167_v0  ;;  %v5686_v19 = vpack.c.bf16 %v6173_v16, %v6172_v17 }
 0x6a8   : > { %5671 = vmatpush3.bf16.msk.msra.mxu1 %vm7863_vm4, %v5666_v1 }
 0x6a9   : > { %5673 = vmatprep.subr.bf16.mxu1 %v5672_v2 }
 0x6ab   : > { %5384 = vmatmul.mubr.msk.f32.vlgmr.msra.gmra.mrb[0].mxu1 %vm1150_vm2, %v1517_v4 }
 0x6ac   : > { %5675 = vmatpush3.bf16.msra.mxu1 %v5672_v2  ;;  %5386 = vmatprep.mubr.msk.f32.mxu1 %vm1150_vm2, %v1518_v5 }
 0x6ad   : > { %5677 = vmatprep.subr.bf16.mxu1 %v5676_v61 }
 0x6af   : > { %5387 = vmatmul.mubr.msk.f32.gmra.mrb[2].mxu1 %vm1150_vm2, %v1519_v62 }
 0x6b0   : > { %5679 = vmatpush3.bf16.msra.mxu1 %v5676_v61  ;;  %5397 = vmatprep.mubr.msk.f32.mxu1 %vm1150_vm2, %v1521_v63 }
 0x6b1   : > { %5682 = vmatprep.subr.msk.bf16.mxu1 %vm7882_vm6, %v5680_v18 }
 0x6b3   : > { %5398 = vmatmul.mubr.msk.f32.vlgmr.msra.gmra.mrb[0].mxu1 %vm1150_vm2, %v1522_v11 }
 0x6b4   : > { %5685 = vmatpush3.bf16.msk.msra.mxu1 %vm7882_vm6, %v5680_v18  ;;  %5400 = vmatprep.mubr.msk.f32.mxu1 %vm1150_vm2, %v1523_v8 }
 0x6b5   : > { %5688 = vmatprep.subr.msk.bf16.mxu1 %vm7882_vm6, %v5686_v19 }
 0x6b7   : > { %5401 = vmatmul.mubr.msk.f32.gmra.mrb[2].mxu1 %vm1150_vm2, %v1524_v20 }
 0x6b8   : > { %5691 = vmatpush3.bf16.msk.msra.mxu1 %vm7882_vm6, %v5686_v19  ;;  %5411 = vmatprep.mubr.msk.f32.mxu1 %vm1150_vm2, %v1526_v22 }
 0x6b9   : > { %5699 = vmatprep.subr.bf16.mxu1 %v5698_v23 }
 0x6bb   : > { %5412 = vmatmul.mubr.msk.f32.vlgmr.msra.gmra.mrb[0].mxu1 %vm1150_vm2, %v1527_v24  ;;  %v2295_v24 = vpop.permute.xlu0 %2294 }
 0x6bc   : > { %5701 = vmatpush3.bf16.msra.mxu1 %v5698_v23  ;;  %5414 = vmatprep.mubr.msk.f32.mxu1 %vm1150_vm2, %v1528_v25  ;;  %v2300_v23 = vpop.permute.xlu1 %2299 }
 0x6bf   : > { %5415 = vmatmul.mubr.msk.f32.gmra.mrb[2].mxu1 %vm1150_vm2, %v1529_v26 }
 0x6c0   : > { %5432 = vmatprep.mubr.msk.f32.mxu1 %vm990_vm0, %v7787_v9  ;;  %v5152_v9 = vld [vmem:[%s821_s18] ss:$0 sm:$0xff]  ;;  %s8719_s18 = sld [smem:[#allocation67_spill]] }
 0x6c3   : > { %5433 = vmatmul.mubr.msk.f32.vlgmr.msra.gmra.mrb[4].mxu1 %vm990_vm0, %v7790_v10  ;;  %v5153_v10 = vld [vmem:[%s829_s26] ss:$0 sm:$0xff]  ;;  %s4543_s26 = sshll.u32 %s945_s29, 4  ;;  %s4544_s26 = int_to_ptr.vmem [resolvable:$true] %s4543_s26 }
 0x6c4   : > { %5435 = vmatprep.mubr.msk.f32.mxu1 %vm990_vm0, %v7801_v15  ;;  %s6887_s25 = scalar_lea.vmem %s4544_s26, 16 }
 0x6c5   : > { %p6888_p1 = scmp.ne.s32.totalorder %s4544_s26, %s6887_s25 }
 0x6c7   : > { %5436 = vmatmul.mubr.msk.f32.gmra.mrb[6].mxu1 %vm990_vm0, %v7810_v21  ;;  %p6889_p11 = pnand %p6888_p1, %p8720_p0 }
 0x6c9   : > { %p6890_p7 = pneg %p6889_p11 }
 0x78e   : > { %v8001_v14 = vpop.f32.mrb[0].mxu1 }
 0x78f   : > { %v8003_v27 = vpop.f32.mrb[1].mxu1 }
 0x792   : > { %v8005_v28 = vpop.f32.mrb[2].mxu1 }
 0x793   : > { %v8007_v29 = vpop.f32.mrb[3].mxu1 }
 0x796   : > { %v8011_v30 = vpop.f32.mrb[4].mxu1 }
 0x797   : > { %v2248_v15 = vsel %vm2246_vm7, %v8011_v30, 0.0  ;;  %v2261_v21 = vmul.f32 %v8011_v30, %v8011_v30  ;;  %v4483_v31 = vadd.f32 %v8011_v30, %v5152_v9  ;;  %v8020_v32 = vpop.f32.mrb[5].mxu1 }
 0x798   : > { %v2247_v33 = vsel %vm2246_vm7, %v8020_v32, 0.0  ;;  %v2260_v34 = vmul.f32 %v8020_v32, %v8020_v32  ;;  %v4482_v35 = vadd.f32 %v5152_v9, %v8020_v32 }
 0x799   : > { %v2265_v36 = vsel %vm2246_vm7, %v2261_v21, 0.0  ;;  %v4494_v37 = vadd.f32 %v5153_v10, %v4483_v31  ;;  %v2249_v38 = vadd.f32 %v2248_v15, %v2247_v33 }
 0x79a   : > { %v2264_v39 = vsel %vm2246_vm7, %v2260_v34, 0.0  ;;  %v4493_v40 = vadd.f32 %v5153_v10, %v4482_v35  ;;  %v5437_v41 = vpop.f32.mrb[6].mxu1 }
 0x79b   : > { %4498 = vst.msk [vmem:[%s8031_s3 + $0x8] sm:$0xff] %vm2246_vm7, %v4494_v37  ;;  %v2266_v42 = vadd.f32 %v2265_v36, %v2264_v39  ;;  %v4485_v43 = vadd.f32 %v5437_v41, %v5152_v9  ;;  %v2207_v44 = vpop.f32.mrb[7].mxu1  ;;  %v2263_v45 = vmul.f32 %v5437_v41, %v5437_v41  ;;  %v2252_v51 = vsel %vm2246_vm7, %v5437_v41, 0.0 }
 0x79c   : > { %4497 = vst.msk [vmem:[%s8031_s3] sm:$0xff] %vm2246_vm7, %v4493_v40  ;;  %v2250_v46 = vsel %vm2246_vm7, %v2207_v44, 0.0  ;;  %v2262_v47 = vmul.f32 %v2207_v44, %v2207_v44  ;;  %v4484_v48 = vadd.f32 %v5152_v9, %v2207_v44  ;;  %v2324_v9 = vpop.permute.xlu1 %2323 }
 0x79d   : > { %v4496_v49 = vadd.f32 %v5153_v10, %v4485_v43  ;;  %v2251_v50 = vadd.f32 %v2250_v46, %v2249_v38  ;;  %v2269_v53 = vsel %vm2246_vm7, %v2263_v45, 0.0 }
 0x79e   : > { %v2267_v56 = vsel %vm2246_vm7, %v2262_v47, 0.0  ;;  %v4495_v57 = vadd.f32 %v5153_v10, %v4484_v48  ;;  %v2319_v10 = vpop.permute.xlu0 %2318 }
 0x79f   : > { %4500 = vst.msk [vmem:[%s8031_s3 + $0x18] sm:$0xff] %vm2246_vm7, %v4496_v49  ;;  %v2253_v59 = vadd.f32 %v2252_v51, %v2251_v50  ;;  %v2268_v60 = vadd.f32 %v2267_v56, %v2266_v42 }
 0x7a0   : > { %4499 = vst.msk [vmem:[%s8031_s3 + $0x10] sm:$0xff] %vm2246_vm7, %v4495_v57  ;;  %v2310_v15 = vpop.permute.xlu1 %2309 }
 0x7a1   : > { %v2254_v1 = vrot.slane %v2253_v59, 4  ;;  %v2270_v2 = vadd.f32 %v2269_v53, %v2268_v60 }
 0x7a2   : > { %v2305_v21 = vpop.permute.xlu0 %2304 }
 0x7a3   : > { %v2255_v3 = vadd.f32 %v2254_v1, %v2253_v59  ;;  %v2271_v4 = vrot.slane %v2270_v2, 4 }
 0x7a4   : > { %v2334_v39 = vpop.permute.xlu1 %2333 }
 0x7a5   : > { %v2256_v5 = vrot.slane %v2255_v3, 2  ;;  %v2272_v6 = vadd.f32 %v2271_v4, %v2270_v2  ;;  %v1530_v4 = vld [vmem:[#allocation24] sm:$0xff] }
 0x7a6   : > { %v2329_v40 = vpop.permute.xlu0 %2328 }
 0x7a7   : > { %v2257_v0 = vadd.f32 %v2256_v5, %v2255_v3  ;;  %v2273_v61 = vrot.slane %v2272_v6, 2  ;;  %v1531_v3 = vld [vmem:[#allocation24 + $0x8] sm:$0xff]  ;;  %v1533_v5 = vld [vmem:[#allocation24 + $0x18] sm:$0xff] }
 0x7a9   : > { %v2258_v7 = vrot.slane %v2257_v0, 1  ;;  %v2274_v62 = vadd.f32 %v2273_v61, %v2272_v6  ;;  %v1532_v6 = vld [vmem:[#allocation24 + $0x10] sm:$0xff]  ;;  %v7110_v61 = vmov 0.0  }
 0x7aa   : > { %5425 = vmatprep.mubr.msk.f32.mxu0 %vm7109_vm9, %v7110_v61 }
 0x7ab   : > { %v2259_v63 = vadd.f32 %v2258_v7, %v2257_v0  ;;  %v2275_v16 = vrot.slane %v2274_v62, 1  ;;  %v7108_v0 = vmov 0.0|0.0  }
 0x7ac   : > { %5692 = vmatprep.subr.bf16.mxu0 %v7108_v0 }
 0x7ad   : > { %v2276_v17 = vadd.f32 %v2275_v16, %v2274_v62  ;;  %v2277_v18 = vmul.f32 0.03125, %v2259_v63 }
 0x7af   : > { %v2278_v11 = vmul.f32 0.03125, %v2276_v17  ;;  %v2279_v8 = vmul.f32 %v2277_v18, %v2277_v18  ;;  %v2284_v13 = vsub.f32 %v2207_v44, %v2277_v18  ;;  %v2285_v12 = vsub.f32 %v5437_v41, %v2277_v18 }
 0x7b0   : > { %v2282_v19 = vsub.f32 %v8020_v32, %v2277_v18  ;;  %v2283_v20 = vsub.f32 %v8011_v30, %v2277_v18 }
 0x7b1   : > { %v2280_v22 = vsub.f32 %v2278_v11, %v2279_v8 }
 0x7b3   : > { %v2281_v25 = vmax.f32 %v2280_v22, 0.0  ;;  %v2243_v22 = vld [vmem:[#allocation18 + $0x28] sm:$0xff] }
 0x7b5   : > { %v2286_v26 = vadd.f32 1e-05, %v2281_v25  ;;  %v2244_v25 = vld [vmem:[#allocation18 + $0x30] sm:$0xff] }
 0x7b7   : > { %6354 = vrsqrt.f32 %v2286_v26 }
 0x7c1   : > { %v6355_v31 = vpop.eup %6354 }
 0x7c2   : > { %v8047_v33 = vmul.f32 %v6355_v31, %v2284_v13  ;;  %v8049_v34 = vmul.f32 %v6355_v31, %v2285_v12  ;;  %v8051_v35 = vmul.f32 %v6355_v31, %v2282_v19  ;;  %v8053_v32 = vmul.f32 %v6355_v31, %v2283_v20  ;;  %v2760_v31 = vld [vmem:[#allocation20 + $0x20] sm:$0xff] }
 0x7c4   : > { %v2314_v30 = vmul.f32 %v2305_v21, %v8047_v33  ;;  %v2315_v36 = vmul.f32 %v2310_v15, %v8049_v34  ;;  %v2312_v37 = vmul.f32 %v2295_v24, %v8051_v35  ;;  %v2313_v38 = vmul.f32 %v2300_v23, %v8053_v32  ;;  %v2242_v23 = vld [vmem:[#allocation18 + $0x20] sm:$0xff]  ;;  %v2245_v24 = vld [vmem:[#allocation18 + $0x38] sm:$0xff]  ;;  %v2761_v21 = vld [vmem:[#allocation20 + $0x28] sm:$0xff] }
 0x7c6   : > { %v8059_v41 = vadd.f32 %v2329_v40, %v2314_v30  ;;  %v8061_v42 = vadd.f32 %v2334_v39, %v2315_v36  ;;  %v8063_v43 = vadd.f32 %v2319_v10, %v2312_v37  ;;  %v8065_v44 = vadd.f32 %v2324_v9, %v2313_v38 }
 0x7c8   : > { %v6179_v45 = vpack.i.bf16 %v8061_v42, %v8059_v41  ;;  %v6174_v46 = vpack.i.bf16 %v8065_v44, %v8063_v43 }
 0x7ca   : > { %6180 = vrot.lane.b32.xlu1 %v6179_v45, %s7107_s7  ;;  %6175 = vrot.lane.b32.xlu0 %v6174_v46, %s7107_s7  ;;  %v2766_v45 = vld [vmem:[#allocation21 + $0x28] sm:$0xff] }
 0x83c   : > { %v6181_v47 = vpop.permute.xlu1 %6180  ;;  %v6176_v48 = vpop.permute.xlu0 %6175 }
 0x83d   : > { %v6183_v49 = vunpack.i.h.bf16 %v6181_v47  ;;  %v6182_v50 = vunpack.i.l.bf16 %v6181_v47  ;;  %v6178_v51 = vunpack.i.h.bf16 %v6176_v48  ;;  %v6177_v56 = vunpack.i.l.bf16 %v6176_v48  ;;  %v2763_v47 = vld [vmem:[#allocation20 + $0x38] sm:$0xff]  ;;  %v2762_v48 = vld [vmem:[#allocation20 + $0x30] sm:$0xff] }
 0x83f   : > { %v2349_v57 = vsel %vm2340_vm8, %v6182_v50, %v8059_v41  ;;  %v2352_v59 = vsel %vm2340_vm8, %v6183_v49, %v8061_v42  ;;  %v2343_v60 = vsel %vm2340_vm8, %v6177_v56, %v8063_v43  ;;  %v2346_v53 = vsel %vm2340_vm8, %v6178_v51, %v8065_v44  ;;  %v2768_v49 = vld [vmem:[#allocation21 + $0x38] sm:$0xff]  ;;  %v2767_v50 = vld [vmem:[#allocation21 + $0x30] sm:$0xff] }
 0x840   : > { %v6189_v1 = vpack.i.bf16 %v2352_v59, %v2349_v57  ;;  %v6184_v2 = vpack.i.bf16 %v2346_v53, %v2343_v60  ;;  %v3375_v57 = vld [vmem:[#allocation14 + $0x48] sm:$0xff]  ;;  %v3374_v59 = vld [vmem:[#allocation14 + $0x40] sm:$0xff] }
 0x842   : > { %6190 = vrot.lane.b32.xlu1 %v6189_v1, %s7107_s7  ;;  %6185 = vrot.lane.b32.xlu0 %v6184_v2, %s7107_s7 }
 0x846   : > { %1989 = vperm.xlu1 %6093, %v1531_v3   ;;  %1984 = vperm.xlu0 %6092, %v1530_v4   ;;  %v3380_v3 = vld [vmem:[#allocation15 + $0x48] sm:$0xff]  ;;  %v3379_v4 = vld [vmem:[#allocation15 + $0x40] sm:$0xff] }
 0x84a   : > { %1999 = vperm.xlu1 %6093, %v1533_v5   ;;  %1994 = vperm.xlu0 %6092, %v1532_v6   ;;  %v3377_v5 = vld [vmem:[#allocation14 + $0x58] sm:$0xff]  ;;  %v3376_v6 = vld [vmem:[#allocation14 + $0x50] sm:$0xff] }
 0x8b4   : > { %v6191_v7 = vpop.permute.xlu1 %6190  ;;  %v6186_v62 = vpop.permute.xlu0 %6185 }
 0x8b5   : > { %v6193_v63 = vunpack.i.h.bf16 %v6191_v7  ;;  %v6192_v16 = vunpack.i.l.bf16 %v6191_v7  ;;  %v6188_v17 = vunpack.i.h.bf16 %v6186_v62  ;;  %v6187_v18 = vunpack.i.l.bf16 %v6186_v62 }
 0x8b7   : > { %v2363_v11 = vsel %vm2340_vm8, %v6192_v16, %v8059_v41  ;;  %v2364_v8 = vsel %vm2340_vm8, %v6193_v63, %v8061_v42  ;;  %v2361_v13 = vsel %vm2340_vm8, %v6187_v18, %v8063_v43  ;;  %v2362_v12 = vsel %vm2340_vm8, %v6188_v17, %v8065_v44  ;;  %v3382_v17 = vld [vmem:[#allocation15 + $0x58] sm:$0xff]  ;;  %v3381_v18 = vld [vmem:[#allocation15 + $0x50] sm:$0xff] }
 0x8b8   : > { %v6199_v19 = vpack.i.bf16 %v2364_v8, %v2363_v11  ;;  %v6194_v20 = vpack.i.bf16 %v2362_v12, %v2361_v13 }
 0x8ba   : > { %6200 = vrot.lane.b32.xlu1 %v6199_v19, %s7111_s9  ;;  %6195 = vrot.lane.b32.xlu0 %v6194_v20, %s7111_s9 }
 0x8be   : > { %6210 = vrot.lane.b32.xlu1 %v6199_v19, %s7106_s2  ;;  %6205 = vrot.lane.b32.xlu0 %v6194_v20, %s7106_s2 }
 0x8c2   : > { %2704 = vperm.xlu1 %6093, %v2243_v22   ;;  %2699 = vperm.xlu0 %6092, %v2242_v23  }
 0x8c5   : > { %v1990_v26 = vpop.permute.xlu1 %1989  ;;  %v1985_v9 = vpop.permute.xlu0 %1984 }
 0x8c6   : > { %v2003_v10 = vadd.f32 %v8001_v14, %v1990_v26  ;;  %v2002_v15 = vadd.f32 %v1985_v9, %v8003_v27  ;;  %2714 = vperm.xlu1 %6093, %v2245_v24   ;;  %2709 = vperm.xlu0 %6092, %v2244_v25   ;;  %v2765_v14 = vld [vmem:[#allocation21 + $0x20] sm:$0xff] }
 0x8c7   : > { %v2038_v26 = vld [vmem:[#allocation26] sm:$0x1] }
 0x8c8   : > { %v5012_v30 = vmul.f32 -1.442695, %v2003_v10  ;;  %v5011_v36 = vmul.f32 -1.442695, %v2002_v15  ;;  %v2227_v9 = vld [vmem:[#allocation17 + $0x60] sm:$0xff] }
 0x8c9   : > { %v2000_v37 = vpop.permute.xlu1 %1999  ;;  %v1995_v38 = vpop.permute.xlu0 %1994 }
 0x8ca   : > { %6356 = vpow2.f32 %v5012_v30  ;;  %v2005_v39 = vadd.f32 %v8005_v28, %v2000_v37  ;;  %v2004_v40 = vadd.f32 %v1995_v38, %v8007_v29  ;;  %2841 = vperm.xlu1 %6093, %v2761_v21   ;;  %2836 = vperm.xlu0 %6092, %v2760_v31  }
 0x8cb   : > { %6358 = vpow2.f32 %v5011_v36 }
 0x8cc   : > { %v5014_v46 = vmul.f32 -1.442695, %v2005_v39  ;;  %v5013_v27 = vmul.f32 -1.442695, %v2004_v40 }
 0x8ce   : > { %6360 = vpow2.f32 %v5014_v46  ;;  %2865 = vperm.xlu1 %6093, %v2766_v45   ;;  %2860 = vperm.xlu0 %6092, %v2765_v14   ;;  %v2229_v45 = vld [vmem:[#allocation17 + $0x70] sm:$0xff] }
 0x8cf   : > { %6362 = vpow2.f32 %v5013_v27  ;;  %v5718_v27 = vpack.c.bf16 %v8061_v42, %v8059_v41  ;;  %v2234_v41 = vld [vmem:[#allocation17 + $0x90] sm:$0xff] }
 0x8d2   : > { %2851 = vperm.xlu1 %6093, %v2763_v47   ;;  %2846 = vperm.xlu0 %6092, %v2762_v48   ;;  %v8423_v48 = vld [vmem:[%s804_s0] sm:$0x1] }
 0x8d4   : > { %v6357_v28 = vpop.eup %6356 }
 0x8d5   : > { %v6359_v51 = vpop.eup %6358  ;;  %v2019_v29 = vadd.f32 1.0, %v6357_v28 }
 0x8d6   : > { %v2018_v56 = vadd.f32 1.0, %v6359_v51  ;;  %2875 = vperm.xlu1 %6093, %v2768_v49   ;;  %2870 = vperm.xlu0 %6092, %v2767_v50   ;;  %v2235_v51 = vld [vmem:[#allocation17 + $0x98] sm:$0xff] }
 0x8d7   : > { %6364 = vrcp.f32 %v2019_v29  ;;  %v2237_v29 = vld [vmem:[#allocation17 + $0xa0] sm:$0xff] }
 0x8d8   : > { %v6361_v60 = vpop.eup %6360  ;;  %6366 = vrcp.f32 %v2018_v56  ;;  %v2238_v56 = vld [vmem:[#allocation17 + $0xa8] sm:$0xff] }
 0x8d9   : > { %v6363_v53 = vpop.eup %6362  ;;  %v2021_v1 = vadd.f32 1.0, %v6361_v60  ;;  %v2040_v60 = vstv %s2039_s23 }
 0x8da   : > { %v2020_v2 = vadd.f32 1.0, %v6363_v53  ;;  %3410 = vperm.xlu1 %6093, %v3375_v57   ;;  %3405 = vperm.xlu0 %6092, %v3374_v59   ;;  %v2239_v57 = vld [vmem:[#allocation17 + $0xb0] sm:$0xff]  ;;  %v2240_v59 = vld [vmem:[#allocation17 + $0xb8] sm:$0xff] }
 0x8db   : > { %6368 = vrcp.f32 %v2021_v1 }
 0x8dc   : > { %6370 = vrcp.f32 %v2020_v2 }
 0x8de   : > { %3434 = vperm.xlu1 %6093, %v3380_v3   ;;  %3429 = vperm.xlu0 %6092, %v3379_v4  }
 0x8e1   : > { %v6365_v7 = vpop.eup %6364 }
 0x8e2   : > { %v6367_v62 = vpop.eup %6366  ;;  %v2031_v63 = vmul.f32 %v6365_v7, %v2003_v10  ;;  %3420 = vperm.xlu1 %6093, %v3377_v5   ;;  %3415 = vperm.xlu0 %6092, %v3376_v6  }
 0x8e3   : > { %v2030_v16 = vmul.f32 %v6367_v62, %v2002_v15 }
 0x8e4   : > { %v2035_v11 = vmul.f32 %v2031_v63, %v7909_v55 }
 0x8e5   : > { %v6369_v8 = vpop.eup %6368  ;;  %v2034_v13 = vmul.f32 %v2030_v16, %v7909_v55 }
 0x8e6   : > { %v6371_v12 = vpop.eup %6370  ;;  %v2033_v19 = vmul.f32 %v6369_v8, %v2005_v39  ;;  %3444 = vperm.xlu1 %6093, %v3382_v17   ;;  %3439 = vperm.xlu0 %6092, %v3381_v18  }
 0x8e7   : > { %v5693_v20 = vpack.c.bf16 %v2035_v11, %v2034_v13  ;;  %v2032_v22 = vmul.f32 %v6371_v12, %v2004_v40  ;;  %v2228_v40 = vld [vmem:[#allocation17 + $0x68] sm:$0xff] }
 0x8e8   : > { %v2037_v23 = vmul.f32 %v2033_v19, %v7909_v55 }
 0x8e9   : > { %v2036_v24 = vmul.f32 %v2032_v22, %v7909_v55  ;;  %5694 = vmatpush3.bf16.msra.mxu0 %v5693_v20  ;;  %v5714_v55 = vpack.c.bf16 %v8065_v44, %v8063_v43  ;;  %v2230_v43 = vld [vmem:[#allocation17 + $0x78] sm:$0xff]  ;;  %v2232_v44 = vld [vmem:[#allocation17 + $0x80] sm:$0xff] }
 0x8ea   : > { %5695 = vmatprep.subr.bf16.mxu0 %v7108_v0 }
 0x8eb   : > { %v5696_v25 = vpack.c.bf16 %v2037_v23, %v2036_v24 }
 0x8ed   : > { %5697 = vmatpush3.bf16.msra.mxu0 %v5696_v25 }
 0x8f0   : > { %5426 = vmatmul.mubr.msk.f32.vlgmr.msra.gmra.mrb[4].mxu0 %vm1150_vm2, %v2038_v26 }
 0x8f1   : > { %5446 = vmatprep.mubr.msk.f32.mxu0 %vm1150_vm2, %v2227_v9 }
 0x92c   : > { %v6201_v10 = vpop.permute.xlu1 %6200  ;;  %v6196_v15 = vpop.permute.xlu0 %6195 }
 0x92d   : > { %v6203_v21 = vunpack.i.h.bf16 %v6201_v10  ;;  %v6202_v31 = vunpack.i.l.bf16 %v6201_v10  ;;  %v6198_v30 = vunpack.i.h.bf16 %v6196_v15  ;;  %v6197_v36 = vunpack.i.l.bf16 %v6196_v15 }
 0x92f   : > { %v5702_v37 = vpack.c.bf16 %v6198_v30, %v6197_v36  ;;  %v5708_v38 = vpack.c.bf16 %v6203_v21, %v6202_v31  ;;  %v8154_v21 = vld [vmem:[%s804_s0] ss:$0 sm:$0xff]  ;;  %s8437_s0 = sshll.u32 %s8699_s22, 4 }
 0x930   : > { %v6206_v39 = vpop.permute.xlu0 %6205  ;;  %v6211_v47 = vpop.permute.xlu1 %6210  ;;  %s8443_s17 = scalar_lea.hbm %s8719_s18, %s8437_s0 }
 0x931   : > { %5704 = vmatprep.subr.msk.bf16.mxu0 %vm7863_vm4, %v5702_v37  ;;  %v6208_v14 = vunpack.i.h.bf16 %v6206_v39  ;;  %v6207_v46 = vunpack.i.l.bf16 %v6206_v39  ;;  %v6213_v49 = vunpack.i.h.bf16 %v6211_v47  ;;  %v6212_v50 = vunpack.i.l.bf16 %v6211_v47 }
 0x932   : > { %5707 = vmatpush3.bf16.msk.msra.mxu0 %vm7863_vm4, %v5702_v37 }
 0x933   : > { %5710 = vmatprep.subr.msk.bf16.mxu0 %vm7863_vm4, %v5708_v38  ;;  %v5722_v28 = vpack.c.bf16 %v6208_v14, %v6207_v46  ;;  %v5728_v42 = vpack.c.bf16 %v6213_v49, %v6212_v50 }
 0x936   : > { %5713 = vmatpush3.bf16.msk.msra.mxu0 %vm7863_vm4, %v5708_v38 }
 0x937   : > { %5715 = vmatprep.subr.bf16.mxu0 %v5714_v55 }
 0x939   : > { %5447 = vmatmul.mubr.msk.f32.vlgmr.msra.gmra.mrb[6].mxu0 %vm1150_vm2, %v2228_v40 }
 0x93a   : > { %5717 = vmatpush3.bf16.msra.mxu0 %v5714_v55  ;;  %5449 = vmatprep.mubr.msk.f32.mxu0 %vm1150_vm2, %v2229_v45 }
 0x93b   : > { %5719 = vmatprep.subr.bf16.mxu0 %v5718_v27 }
 0x93d   : > { %5450 = vmatmul.mubr.msk.f32.gmra.mrb[8].mxu0 %vm1150_vm2, %v2230_v43 }
 0x93e   : > { %5721 = vmatpush3.bf16.msra.mxu0 %v5718_v27  ;;  %5460 = vmatprep.mubr.msk.f32.mxu0 %vm1150_vm2, %v2232_v44 }
 0x93f   : > { %5724 = vmatprep.subr.msk.bf16.mxu0 %vm8124_vm11, %v5722_v28 }
 0x941   : > { %5461 = vmatmul.mubr.msk.f32.vlgmr.msra.gmra.mrb[6].mxu0 %vm1150_vm2, %v2233_v54  ;;  %v2705_v4 = vpop.permute.xlu1 %2704  ;;  %v2700_v5 = vpop.permute.xlu0 %2699 }
 0x942   : > { %5727 = vmatpush3.bf16.msk.msra.mxu0 %vm8124_vm11, %v5722_v28  ;;  %5463 = vmatprep.mubr.msk.f32.mxu0 %vm1150_vm2, %v2234_v41 }
 0x943   : > { %5730 = vmatprep.subr.msk.bf16.mxu0 %vm8124_vm11, %v5728_v42 }
 0x945   : > { %5464 = vmatmul.mubr.msk.f32.gmra.mrb[8].mxu0 %vm1150_vm2, %v2235_v51  ;;  %v2715_v17 = vpop.permute.xlu1 %2714  ;;  %v2710_v8 = vpop.permute.xlu0 %2709 }
 0x946   : > { %5733 = vmatpush3.bf16.msk.msra.mxu0 %vm8124_vm11, %v5728_v42  ;;  %5474 = vmatprep.mubr.msk.f32.mxu0 %vm1150_vm2, %v2237_v29 }
 0x947   : > { %5766 = vmatprep.subr.bf16.mxu0 %v7108_v0 }
 0x949   : > { %5475 = vmatmul.mubr.msk.f32.vlgmr.msra.gmra.mrb[6].mxu0 %vm1150_vm2, %v2238_v56  ;;  %v2842_v41 = vpop.permute.xlu1 %2841  ;;  %v2837_v42 = vpop.permute.xlu0 %2836 }
 0x94a   : > { %5477 = vmatprep.mubr.msk.f32.mxu0 %vm1150_vm2, %v2239_v57 }
 0x94d   : > { %5478 = vmatmul.mubr.msk.f32.gmra.mrb[8].mxu0 %vm1150_vm2, %v2240_v59 }
 0x94e   : > { %5530 = vmatprep.mubr.msk.f32.mxu0 %vm7109_vm9, %v7110_v61 }
 0x9c3   : > { %v2110_v53 = vpop.f32.mrb[4].mxu0 }
 0x9c4   : > { %v2111_v1 = vadd.f32 %v2110_v53, %v2040_v60  ;;  %v5427_v2 = vpop.f32.mrb[5].mxu0 }
 0x9c6   : > { %v2114_v3 = vmul.f32 %v2111_v1, %v7906_v52 }
 0x9c8   : > { %2116 = vst.msk [vmem:[%s945_s29] sm:$0x1] %vm2115_vm12, %v2114_v3 }
 0xa1c   : > { %v5476_v6 = vpop.f32.mrb[6].mxu0 }
 0xa1d   : > { %v2718_v7 = vadd.f32 %v5476_v6, %v2705_v4  ;;  %v2674_v62 = vpop.f32.mrb[7].mxu0  ;;  %v2866_v4 = vpop.permute.xlu1 %2865 }
 0xa1e   : > { %v2717_v63 = vadd.f32 %v2700_v5, %v2674_v62  ;;  %v2861_v5 = vpop.permute.xlu0 %2860 }
 0xa1f   : > { %v5049_v16 = vmul.f32 -1.442695, %v2718_v7 }
 0xa20   : > { %v5048_v18 = vmul.f32 -1.442695, %v2717_v63  ;;  %v5479_v11 = vpop.f32.mrb[8].mxu0 }
 0xa21   : > { %6372 = vpow2.f32 %v5049_v16  ;;  %v2720_v13 = vadd.f32 %v5479_v11, %v2715_v17  ;;  %v2684_v12 = vpop.f32.mrb[9].mxu0 }
 0xa22   : > { %6374 = vpow2.f32 %v5048_v18  ;;  %v2719_v19 = vadd.f32 %v2710_v8, %v2684_v12  ;;  %v2852_v18 = vpop.permute.xlu1 %2851  ;;  %v2847_v11 = vpop.permute.xlu0 %2846 }
 0xa23   : > { %v5051_v52 = vmul.f32 -1.442695, %v2720_v13 }
 0xa24   : > { %v5050_v20 = vmul.f32 -1.442695, %v2719_v19 }
 0xa25   : > { %6376 = vpow2.f32 %v5051_v52 }
 0xa26   : > { %6378 = vpow2.f32 %v5050_v20 }
 0xa2b   : > { %v6373_v22 = vpop.eup %6372 }
 0xa2c   : > { %v6375_v23 = vpop.eup %6374  ;;  %v2734_v24 = vadd.f32 1.0, %v6373_v22  ;;  %v2876_v22 = vpop.permute.xlu1 %2875 }
 0xa2d   : > { %v2733_v25 = vadd.f32 1.0, %v6375_v23  ;;  %v2871_v23 = vpop.permute.xlu0 %2870 }
 0xa2e   : > { %6380 = vrcp.f32 %v2734_v24 }
 0xa2f   : > { %v6377_v26 = vpop.eup %6376  ;;  %6382 = vrcp.f32 %v2733_v25 }
 0xa30   : > { %v6379_v9 = vpop.eup %6378  ;;  %v2736_v10 = vadd.f32 1.0, %v6377_v26 }
 0xa31   : > { %v2735_v15 = vadd.f32 1.0, %v6379_v9 }
 0xa32   : > { %6384 = vrcp.f32 %v2736_v10 }
 0xa33   : > { %6386 = vrcp.f32 %v2735_v15 }
 0xa38   : > { %v6381_v31 = vpop.eup %6380 }
 0xa39   : > { %v6383_v30 = vpop.eup %6382  ;;  %v2746_v36 = vmul.f32 %v6381_v31, %v2718_v7 }
 0xa3a   : > { %v2745_v37 = vmul.f32 %v6383_v30, %v2717_v63 }
 0xa3b   : > { %v8157_v38 = vmul.f32 %v8154_v21, %v2746_v36 }
 0xa3c   : > { %v6385_v55 = vpop.eup %6384  ;;  %v8160_v39 = vmul.f32 %v8154_v21, %v2745_v37  ;;  %v3411_v37 = vpop.permute.xlu1 %3410 }
 0xa3d   : > { %v6387_v40 = vpop.eup %6386  ;;  %v2790_v45 = vsel %vm2246_vm7, %v8157_v38, 0.0  ;;  %v2803_v14 = vmul.f32 %v8157_v38, %v8157_v38  ;;  %v2748_v46 = vmul.f32 %v6385_v55, %v2720_v13  ;;  %v3406_v55 = vpop.permute.xlu0 %3405 }
 0xa3e   : > { %v2789_v27 = vsel %vm2246_vm7, %v8160_v39, 0.0  ;;  %v2802_v47 = vmul.f32 %v8160_v39, %v8160_v39  ;;  %v2747_v43 = vmul.f32 %v6387_v40, %v2719_v19 }
 0xa3f   : > { %v2807_v44 = vsel %vm2246_vm7, %v2803_v14, 0.0  ;;  %v2791_v49 = vadd.f32 %v2790_v45, %v2789_v27  ;;  %v2758_v50 = vmul.f32 %v8154_v21, %v2748_v46 }
 0xa40   : > { %v2806_v28 = vsel %vm2246_vm7, %v2802_v47, 0.0  ;;  %v2757_v54 = vmul.f32 %v8154_v21, %v2747_v43  ;;  %v3435_v14 = vpop.permute.xlu1 %3434 }
 0xa41   : > { %v2808_v51 = vadd.f32 %v2807_v44, %v2806_v28  ;;  %v2805_v29 = vmul.f32 %v2758_v50, %v2758_v50  ;;  %v2794_v60 = vsel %vm2246_vm7, %v2758_v50, 0.0  ;;  %v3430_v46 = vpop.permute.xlu0 %3429 }
 0xa42   : > { %v2792_v56 = vsel %vm2246_vm7, %v2757_v54, 0.0  ;;  %v2804_v57 = vmul.f32 %v2757_v54, %v2757_v54 }
 0xa43   : > { %v2793_v59 = vadd.f32 %v2792_v56, %v2791_v49  ;;  %v2811_v3 = vsel %vm2246_vm7, %v2805_v29, 0.0  ;;  %v3423_v56 = vmul.f32 %v3406_v55, %v8051_v35 }
 0xa44   : > { %v2809_v53 = vsel %vm2246_vm7, %v2804_v57, 0.0  ;;  %v3421_v27 = vpop.permute.xlu1 %3420 }
 0xa45   : > { %v2795_v1 = vadd.f32 %v2794_v60, %v2793_v59  ;;  %v2810_v2 = vadd.f32 %v2809_v53, %v2808_v51  ;;  %v3416_v47 = vpop.permute.xlu0 %3415  ;;  %v3426_v57 = vmul.f32 %v3421_v27, %v8049_v34 }
 0xa46   : > { %v3425_v59 = vmul.f32 %v3416_v47, %v8047_v33 }
 0xa47   : > { %v2796_v6 = vrot.slane %v2795_v1, 4  ;;  %v2812_v7 = vadd.f32 %v2811_v3, %v2810_v2 }
 0xa48   : > { %v3445_v60 = vpop.permute.xlu1 %3444 }
 0xa49   : > { %v2797_v62 = vadd.f32 %v2796_v6, %v2795_v1  ;;  %v2813_v63 = vrot.slane %v2812_v7, 4  ;;  %v3440_v53 = vpop.permute.xlu0 %3439 }
 0xa4a   : > { %v8198_v35 = vadd.f32 %v3440_v53, %v3425_v59 }
 0xa4b   : > { %v2798_v16 = vrot.slane %v2797_v62, 2  ;;  %v2814_v17 = vadd.f32 %v2813_v63, %v2812_v7 }
 0xa4d   : > { %v2799_v8 = vadd.f32 %v2798_v16, %v2797_v62  ;;  %v2815_v13 = vrot.slane %v2814_v17, 2 }
 0xa4f   : > { %v2800_v12 = vrot.slane %v2799_v8, 1  ;;  %v2816_v19 = vadd.f32 %v2815_v13, %v2814_v17 }
 0xa51   : > { %v2801_v52 = vadd.f32 %v2800_v12, %v2799_v8  ;;  %v2817_v20 = vrot.slane %v2816_v19, 1 }
 0xa53   : > { %v2818_v24 = vadd.f32 %v2817_v20, %v2816_v19  ;;  %v2819_v25 = vmul.f32 0.03125, %v2801_v52 }
 0xa55   : > { %v2820_v26 = vmul.f32 0.03125, %v2818_v24  ;;  %v2821_v9 = vmul.f32 %v2819_v25, %v2819_v25  ;;  %v2826_v10 = vsub.f32 %v2757_v54, %v2819_v25  ;;  %v2827_v15 = vsub.f32 %v2758_v50, %v2819_v25 }
 0xa56   : > { %v2824_v31 = vsub.f32 %v8160_v39, %v2819_v25  ;;  %v2825_v30 = vsub.f32 %v8157_v38, %v2819_v25  ;;  %v3424_v38 = vmul.f32 %v3411_v37, %v8053_v32  ;;  %v8196_v32 = vadd.f32 %v3445_v60, %v3426_v57 }
 0xa57   : > { %v2822_v36 = vsub.f32 %v2820_v26, %v2821_v9 }
 0xa59   : > { %v2823_v40 = vmax.f32 %v2822_v36, 0.0 }
 0xa5b   : > { %v2828_v45 = vadd.f32 1e-05, %v2823_v40 }
 0xa5d   : > { %6388 = vrsqrt.f32 %v2828_v45 }
 0xa67   : > { %v6389_v43 = vpop.eup %6388 }
 0xa68   : > { %v2832_v44 = vmul.f32 %v6389_v43, %v2826_v10  ;;  %v2833_v49 = vmul.f32 %v6389_v43, %v2827_v15  ;;  %v2830_v28 = vmul.f32 %v6389_v43, %v2824_v31  ;;  %v2831_v54 = vmul.f32 %v6389_v43, %v2825_v30 }
 0xa6a   : > { %v2856_v50 = vmul.f32 %v2847_v11, %v2832_v44  ;;  %v2857_v51 = vmul.f32 %v2852_v18, %v2833_v49  ;;  %v2854_v39 = vmul.f32 %v2837_v42, %v2830_v28  ;;  %v2855_v29 = vmul.f32 %v2842_v41, %v2831_v54  ;;  %v2770_v49 = vld [vmem:[#allocation23 + $0x60] sm:$0xff] }
 0xa6b   : > { %v8192_v42 = vadd.f32 %v3435_v14, %v3424_v38  ;;  %v8194_v41 = vadd.f32 %v3430_v46, %v3423_v56  ;;  %5488 = vmatprep.mubr.msk.f32.mxu1 %vm1150_vm2, %v2770_v49  ;;  %v2778_v49 = vld [vmem:[#allocation23 + $0x98] sm:$0xff] }
 0xa6c   : > { %v8184_v1 = vadd.f32 %v2871_v23, %v2856_v50  ;;  %v8186_v2 = vadd.f32 %v2876_v22, %v2857_v51  ;;  %v8188_v3 = vadd.f32 %v2861_v5, %v2854_v39  ;;  %v8190_v6 = vadd.f32 %v2866_v4, %v2855_v29 }
 0xa6d   : > { %v6229_v4 = vpack.i.bf16 %v8196_v32, %v8198_v35  ;;  %v6224_v5 = vpack.i.bf16 %v8192_v42, %v8194_v41 }
 0xa6e   : > { %v6219_v33 = vpack.i.bf16 %v8186_v2, %v8184_v1  ;;  %v6214_v34 = vpack.i.bf16 %v8190_v6, %v8188_v3 }
 0xa70   : > { %6220 = vrot.lane.b32.xlu1 %v6219_v33, %s7107_s7  ;;  %6215 = vrot.lane.b32.xlu0 %v6214_v34, %s7107_s7 }
 0xa74   : > { %6230 = vrot.lane.b32.xlu1 %v6229_v4, %s7107_s7  ;;  %6225 = vrot.lane.b32.xlu0 %v6224_v5, %s7107_s7  ;;  %v3400_v4 = vld [vmem:[#allocation18 + $0x48] sm:$0xff]  ;;  %v3399_v5 = vld [vmem:[#allocation18 + $0x40] sm:$0xff] }
 0xae2   : > { %v6221_v7 = vpop.permute.xlu1 %6220  ;;  %v6216_v62 = vpop.permute.xlu0 %6215 }
 0xae3   : > { %v6223_v63 = vunpack.i.h.bf16 %v6221_v7  ;;  %v6222_v16 = vunpack.i.l.bf16 %v6221_v7  ;;  %v6218_v17 = vunpack.i.h.bf16 %v6216_v62  ;;  %v6217_v18 = vunpack.i.l.bf16 %v6216_v62  ;;  %v3402_v7 = vld [vmem:[#allocation18 + $0x58] sm:$0xff]  ;;  %v3401_v62 = vld [vmem:[#allocation18 + $0x50] sm:$0xff] }
 0xae5   : > { %v2890_v11 = vsel %vm2340_vm8, %v6222_v16, %v8184_v1  ;;  %v2893_v8 = vsel %vm2340_vm8, %v6223_v63, %v8186_v2  ;;  %v2884_v13 = vsel %vm2340_vm8, %v6217_v18, %v8188_v3  ;;  %v2887_v12 = vsel %vm2340_vm8, %v6218_v17, %v8190_v6  ;;  %v3864_v63 = vld [vmem:[#allocation20 + $0x48] sm:$0xff]  ;;  %v3863_v16 = vld [vmem:[#allocation20 + $0x40] sm:$0xff] }
 0xae6   : > { %v6231_v19 = vpop.permute.xlu1 %6230  ;;  %v6226_v52 = vpop.permute.xlu0 %6225  ;;  %v6239_v20 = vpack.i.bf16 %v2893_v8, %v2890_v11  ;;  %v6234_v22 = vpack.i.bf16 %v2887_v12, %v2884_v13  ;;  %v3869_v17 = vld [vmem:[#allocation21 + $0x48] sm:$0xff]  ;;  %v3868_v18 = vld [vmem:[#allocation21 + $0x40] sm:$0xff]  ;;  %v3866_v11 = vld [vmem:[#allocation20 + $0x58] sm:$0xff] }
 0xae7   : > { %v6233_v23 = vunpack.i.h.bf16 %v6231_v19  ;;  %v6232_v24 = vunpack.i.l.bf16 %v6231_v19  ;;  %v6228_v25 = vunpack.i.h.bf16 %v6226_v52  ;;  %v6227_v26 = vunpack.i.l.bf16 %v6226_v52  ;;  %v3865_v8 = vld [vmem:[#allocation20 + $0x50] sm:$0xff]  ;;  %v3871_v13 = vld [vmem:[#allocation21 + $0x58] sm:$0xff] }
 0xae8   : > { %6240 = vrot.lane.b32.xlu1 %v6239_v20, %s7107_s7  ;;  %6235 = vrot.lane.b32.xlu0 %v6234_v22, %s7107_s7  ;;  %v3870_v12 = vld [vmem:[#allocation21 + $0x50] sm:$0xff] }
 0xae9   : > { %v3459_v9 = vsel %vm2340_vm8, %v6232_v24, %v8198_v35  ;;  %v3462_v10 = vsel %vm2340_vm8, %v6233_v23, %v8196_v32  ;;  %v3453_v15 = vsel %vm2340_vm8, %v6227_v26, %v8194_v41  ;;  %v3456_v31 = vsel %vm2340_vm8, %v6228_v25, %v8192_v42 }
 0xaea   : > { %v6249_v30 = vpack.i.bf16 %v3462_v10, %v3459_v9  ;;  %v6244_v36 = vpack.i.bf16 %v3456_v31, %v3453_v15  ;;  %v5746_v9 = vpack.c.bf16 %v8190_v6, %v8188_v3  ;;  %v2771_v15 = vld [vmem:[#allocation23 + $0x68] sm:$0xff]  ;;  %v2772_v31 = vld [vmem:[#allocation23 + $0x70] sm:$0xff] }
 0xaec   : > { %6250 = vrot.lane.b32.xlu1 %v6249_v30, %s7107_s7  ;;  %6245 = vrot.lane.b32.xlu0 %v6244_v36, %s7107_s7 }
 0xb5a   : > { %v6241_v37 = vpop.permute.xlu1 %6240  ;;  %v6236_v55 = vpop.permute.xlu0 %6235 }
 0xb5b   : > { %v6243_v40 = vunpack.i.h.bf16 %v6241_v37  ;;  %v6242_v45 = vunpack.i.l.bf16 %v6241_v37  ;;  %v6238_v14 = vunpack.i.h.bf16 %v6236_v55  ;;  %v6237_v46 = vunpack.i.l.bf16 %v6236_v55 }
 0xb5c   : > { %v5750_v37 = vpack.c.bf16 %v8186_v2, %v8184_v1 }
 0xb5d   : > { %v2904_v27 = vsel %vm2340_vm8, %v6242_v45, %v8184_v1  ;;  %v2905_v47 = vsel %vm2340_vm8, %v6243_v40, %v8186_v2  ;;  %v2902_v43 = vsel %vm2340_vm8, %v6237_v46, %v8188_v3  ;;  %v2903_v44 = vsel %vm2340_vm8, %v6238_v14, %v8190_v6  ;;  %v2773_v40 = vld [vmem:[#allocation23 + $0x78] sm:$0xff]  ;;  %v2775_v3 = vld [vmem:[#allocation23 + $0x80] sm:$0xff]  ;;  %v2777_v1 = vld [vmem:[#allocation23 + $0x90] sm:$0xff] }
 0xb5e   : > { %v6251_v28 = vpop.permute.xlu1 %6250  ;;  %v6246_v54 = vpop.permute.xlu0 %6245  ;;  %v6259_v50 = vpack.i.bf16 %v2905_v47, %v2904_v27  ;;  %v6254_v51 = vpack.i.bf16 %v2903_v44, %v2902_v43  ;;  %v2776_v27 = vld [vmem:[#allocation23 + $0x88] sm:$0xff] }
 0xb5f   : > { %v6253_v39 = vunpack.i.h.bf16 %v6251_v28  ;;  %v6252_v29 = vunpack.i.l.bf16 %v6251_v28  ;;  %v6248_v38 = vunpack.i.h.bf16 %v6246_v54  ;;  %v6247_v56 = vunpack.i.l.bf16 %v6246_v54  ;;  %v2780_v28 = vld [vmem:[#allocation23 + $0xa0] sm:$0xff] }
 0xb60   : > { %6260 = vrot.lane.b32.xlu1 %v6259_v50, %s7111_s9  ;;  %6255 = vrot.lane.b32.xlu0 %v6254_v51, %s7111_s9 }
 0xb61   : > { %v3473_v57 = vsel %vm2340_vm8, %v6252_v29, %v8198_v35  ;;  %v3474_v59 = vsel %vm2340_vm8, %v6253_v39, %v8196_v32  ;;  %v3471_v60 = vsel %vm2340_vm8, %v6247_v56, %v8194_v41  ;;  %v3472_v53 = vsel %vm2340_vm8, %v6248_v38, %v8192_v42  ;;  %v2781_v39 = vld [vmem:[#allocation23 + $0xa8] sm:$0xff]  ;;  %v2782_v29 = vld [vmem:[#allocation23 + $0xb0] sm:$0xff]  ;;  %v2783_v56 = vld [vmem:[#allocation23 + $0xb8] sm:$0xff] }
 0xb62   : > { %v6279_v33 = vpack.i.bf16 %v3474_v59, %v3473_v57  ;;  %v6274_v34 = vpack.i.bf16 %v3472_v53, %v3471_v60  ;;  %v3384_v57 = vld [vmem:[#allocation17 + $0xc0] sm:$0xff]  ;;  %v5784_v59 = vpack.c.bf16 %v8192_v42, %v8194_v41  ;;  %v3385_v53 = vld [vmem:[#allocation17 + $0xc8] sm:$0xff]  ;;  %v3387_v42 = vld [vmem:[#allocation17 + $0xd8] sm:$0xff] }
 0xb63   : > { %v3389_v41 = vld [vmem:[#allocation17 + $0xe0] sm:$0xff] }
 0xb64   : > { %6270 = vrot.lane.b32.xlu1 %v6259_v50, %s7106_s2  ;;  %6265 = vrot.lane.b32.xlu0 %v6254_v51, %s7106_s2 }
 0xb68   : > { %6280 = vrot.lane.b32.xlu1 %v6279_v33, %s7111_s9  ;;  %6275 = vrot.lane.b32.xlu0 %v6274_v34, %s7111_s9 }
 0xb6c   : > { %6290 = vrot.lane.b32.xlu1 %v6279_v33, %s7106_s2  ;;  %6285 = vrot.lane.b32.xlu0 %v6274_v34, %s7106_s2  ;;  %v3386_v33 = vld [vmem:[#allocation17 + $0xd0] sm:$0xff] }
 0xb70   : > { %3813 = vperm.xlu1 %6093, %v3400_v4   ;;  %3808 = vperm.xlu0 %6092, %v3399_v5   ;;  %v5788_v5 = vpack.c.bf16 %v8196_v32, %v8198_v35  ;;  %v3391_v32 = vld [vmem:[#allocation17 + $0xf0] sm:$0xff] }
 0xb74   : > { %3823 = vperm.xlu1 %6093, %v3402_v7   ;;  %3818 = vperm.xlu0 %6092, %v3401_v62  }
 0xb78   : > { %3944 = vperm.xlu1 %6093, %v3864_v63   ;;  %3939 = vperm.xlu0 %6092, %v3863_v16  }
 0xb7c   : > { %3968 = vperm.xlu1 %6093, %v3869_v17   ;;  %3963 = vperm.xlu0 %6092, %v3868_v18   ;;  %v3390_v17 = vld [vmem:[#allocation17 + $0xe8] sm:$0xff]  ;;  %v3392_v18 = vld [vmem:[#allocation17 + $0xf8] sm:$0xff] }
 0xb80   : > { %3954 = vperm.xlu1 %6093, %v3866_v11   ;;  %3949 = vperm.xlu0 %6092, %v3865_v8   ;;  %v3394_v11 = vld [vmem:[#allocation17 + $0x100] sm:$0xff]  ;;  %v3395_v8 = vld [vmem:[#allocation17 + $0x108] sm:$0xff] }
 0xb84   : > { %3978 = vperm.xlu1 %6093, %v3871_v13   ;;  %3973 = vperm.xlu0 %6092, %v3870_v12   ;;  %v3396_v13 = vld [vmem:[#allocation17 + $0x110] sm:$0xff]  ;;  %v3397_v12 = vld [vmem:[#allocation17 + $0x118] sm:$0xff] }
 0xbd2   : > { %v6261_v19 = vpop.permute.xlu1 %6260  ;;  %v6256_v52 = vpop.permute.xlu0 %6255 }
 0xbd3   : > { %v6263_v20 = vunpack.i.h.bf16 %v6261_v19  ;;  %v6262_v22 = vunpack.i.l.bf16 %v6261_v19  ;;  %v6258_v23 = vunpack.i.h.bf16 %v6256_v52  ;;  %v6257_v24 = vunpack.i.l.bf16 %v6256_v52 }
 0xbd5   : > { %v5734_v25 = vpack.c.bf16 %v6258_v23, %v6257_v24  ;;  %v5740_v26 = vpack.c.bf16 %v6263_v20, %v6262_v22 }
 0xbd6   : > { %v6266_v10 = vpop.permute.xlu0 %6265  ;;  %v6271_v55 = vpop.permute.xlu1 %6270 }
 0xbd7   : > { %5736 = vmatprep.subr.msk.bf16.mxu1 %vm7863_vm4, %v5734_v25  ;;  %v6268_v30 = vunpack.i.h.bf16 %v6266_v10  ;;  %v6267_v36 = vunpack.i.l.bf16 %v6266_v10  ;;  %v6273_v6 = vunpack.i.h.bf16 %v6271_v55  ;;  %v6272_v45 = vunpack.i.l.bf16 %v6271_v55 }
 0xbd8   : > { %5739 = vmatpush3.bf16.msk.msra.mxu1 %vm7863_vm4, %v5734_v25 }
 0xbd9   : > { %5742 = vmatprep.subr.msk.bf16.mxu1 %vm7863_vm4, %v5740_v26  ;;  %v5754_v14 = vpack.c.bf16 %v6268_v30, %v6267_v36  ;;  %v5760_v2 = vpack.c.bf16 %v6273_v6, %v6272_v45 }
 0xbda   : > { %v6276_v46 = vpop.permute.xlu0 %6275  ;;  %v6281_v44 = vpop.permute.xlu1 %6280 }
 0xbdb   : > { %v6278_v47 = vunpack.i.h.bf16 %v6276_v46  ;;  %v6277_v43 = vunpack.i.l.bf16 %v6276_v46  ;;  %v6283_v54 = vunpack.i.h.bf16 %v6281_v44  ;;  %v6282_v50 = vunpack.i.l.bf16 %v6281_v44 }
 0xbdc   : > { %5745 = vmatpush3.bf16.msk.msra.mxu1 %vm7863_vm4, %v5740_v26 }
 0xbdd   : > { %5747 = vmatprep.subr.bf16.mxu1 %v5746_v9  ;;  %v5772_v51 = vpack.c.bf16 %v6278_v47, %v6277_v43  ;;  %v5778_v38 = vpack.c.bf16 %v6283_v54, %v6282_v50 }
 0xbde   : > { %v6286_v60 = vpop.permute.xlu0 %6285  ;;  %v6291_v7 = vpop.permute.xlu1 %6290 }
 0xbdf   : > { %5489 = vmatmul.mubr.msk.f32.vlgmr.msra.gmra.mrb[8].mxu1 %vm1150_vm2, %v2771_v15  ;;  %v6288_v34 = vunpack.i.h.bf16 %v6286_v60  ;;  %v6287_v4 = vunpack.i.l.bf16 %v6286_v60  ;;  %v6293_v62 = vunpack.i.h.bf16 %v6291_v7  ;;  %v6292_v63 = vunpack.i.l.bf16 %v6291_v7 }
 0xbe0   : > { %5749 = vmatpush3.bf16.msra.mxu1 %v5746_v9  ;;  %5491 = vmatprep.mubr.msk.f32.mxu1 %vm1150_vm2, %v2772_v31 }
 0xbe1   : > { %5751 = vmatprep.subr.bf16.mxu1 %v5750_v37  ;;  %v5792_v16 = vpack.c.bf16 %v6288_v34, %v6287_v4  ;;  %v5798_v35 = vpack.c.bf16 %v6293_v62, %v6292_v63 }
 0xbe3   : > { %5492 = vmatmul.mubr.msk.f32.gmra.mrb[10].mxu1 %vm1150_vm2, %v2773_v40 }
 0xbe4   : > { %5753 = vmatpush3.bf16.msra.mxu1 %v5750_v37  ;;  %5502 = vmatprep.mubr.msk.f32.mxu1 %vm1150_vm2, %v2775_v3 }
 0xbe5   : > { %5756 = vmatprep.subr.msk.bf16.mxu1 %vm8124_vm11, %v5754_v14 }
 0xbe7   : > { %5503 = vmatmul.mubr.msk.f32.vlgmr.msra.gmra.mrb[8].mxu1 %vm1150_vm2, %v2776_v27 }
 0xbe8   : > { %5759 = vmatpush3.bf16.msk.msra.mxu1 %vm8124_vm11, %v5754_v14  ;;  %5505 = vmatprep.mubr.msk.f32.mxu1 %vm1150_vm2, %v2777_v1 }
 0xbe9   : > { %5762 = vmatprep.subr.msk.bf16.mxu1 %vm8124_vm11, %v5760_v2 }
 0xbeb   : > { %5506 = vmatmul.mubr.msk.f32.gmra.mrb[10].mxu1 %vm1150_vm2, %v2778_v49 }
 0xbec   : > { %5765 = vmatpush3.bf16.msk.msra.mxu1 %vm8124_vm11, %v5760_v2  ;;  %5516 = vmatprep.mubr.msk.f32.mxu1 %vm1150_vm2, %v2780_v28 }
 0xbed   : > { %5774 = vmatprep.subr.msk.bf16.mxu1 %vm7863_vm4, %v5772_v51 }
 0xbef   : > { %5517 = vmatmul.mubr.msk.f32.vlgmr.msra.gmra.mrb[8].mxu1 %vm1150_vm2, %v2781_v39  ;;  %v3814_v23 = vpop.permute.xlu1 %3813  ;;  %v3809_v24 = vpop.permute.xlu0 %3808 }
 0xbf0   : > { %5777 = vmatpush3.bf16.msk.msra.mxu1 %vm7863_vm4, %v5772_v51  ;;  %5519 = vmatprep.mubr.msk.f32.mxu1 %vm1150_vm2, %v2782_v29 }
 0xbf1   : > { %5780 = vmatprep.subr.msk.bf16.mxu1 %vm7863_vm4, %v5778_v38 }
 0xbf3   : > { %5520 = vmatmul.mubr.msk.f32.gmra.mrb[10].mxu1 %vm1150_vm2, %v2783_v56  ;;  %v3824_v31 = vpop.permute.xlu1 %3823  ;;  %v3819_v37 = vpop.permute.xlu0 %3818 }
 0xbf4   : > { %5783 = vmatpush3.bf16.msk.msra.mxu1 %vm7863_vm4, %v5778_v38  ;;  %5541 = vmatprep.mubr.msk.f32.mxu1 %vm1150_vm2, %v3384_v57 }
 0xbf5   : > { %5785 = vmatprep.subr.bf16.mxu1 %v5784_v59 }
 0xbf7   : > { %5542 = vmatmul.mubr.msk.f32.vlgmr.msra.gmra.mrb[12].mxu1 %vm1150_vm2, %v3385_v53 }
 0xbf8   : > { %5787 = vmatpush3.bf16.msra.mxu1 %v5784_v59  ;;  %5544 = vmatprep.mubr.msk.f32.mxu1 %vm1150_vm2, %v3386_v33 }
 0xbf9   : > { %5789 = vmatprep.subr.bf16.mxu1 %v5788_v5 }
 0xbfb   : > { %5545 = vmatmul.mubr.msk.f32.gmra.mrb[14].mxu1 %vm1150_vm2, %v3387_v42 }
 0xbfc   : > { %5791 = vmatpush3.bf16.msra.mxu1 %v5788_v5  ;;  %5555 = vmatprep.mubr.msk.f32.mxu1 %vm1150_vm2, %v3389_v41 }
 0xbfd   : > { %5794 = vmatprep.subr.msk.bf16.mxu1 %vm8124_vm11, %v5792_v16 }
 0xbff   : > { %5556 = vmatmul.mubr.msk.f32.vlgmr.msra.gmra.mrb[12].mxu1 %vm1150_vm2, %v3390_v17 }
 0xc00   : > { %5797 = vmatpush3.bf16.msk.msra.mxu1 %vm8124_vm11, %v5792_v16  ;;  %5558 = vmatprep.mubr.msk.f32.mxu1 %vm1150_vm2, %v3391_v32 }
 0xc01   : > { %5800 = vmatprep.subr.msk.bf16.mxu1 %vm8124_vm11, %v5798_v35 }
 0xc03   : > { %5559 = vmatmul.mubr.msk.f32.gmra.mrb[14].mxu1 %vm1150_vm2, %v3392_v18 }
 0xc04   : > { %5803 = vmatpush3.bf16.msk.msra.mxu1 %vm8124_vm11, %v5798_v35  ;;  %5569 = vmatprep.mubr.msk.f32.mxu1 %vm1150_vm2, %v3394_v11 }
 0xc05   : > { %5836 = vmatprep.subr.bf16.mxu1 %v7108_v0 }
 0xc07   : > { %5570 = vmatmul.mubr.msk.f32.vlgmr.msra.gmra.mrb[12].mxu1 %vm1150_vm2, %v3395_v8 }
 0xc08   : > { %5572 = vmatprep.mubr.msk.f32.mxu1 %vm1150_vm2, %v3396_v13 }
 0xc0b   : > { %5573 = vmatmul.mubr.msk.f32.gmra.mrb[14].mxu1 %vm1150_vm2, %v3397_v12 }
 0xc0c   : > { %5625 = vmatprep.mubr.msk.f32.mxu1 %vm7109_vm9, %v7110_v61 }
 0xcc2   : > { %v8323_v19 = vpop.f32.mrb[8].mxu1 }
 0xcc3   : > { %v8325_v52 = vpop.f32.mrb[9].mxu1 }
 0xcc6   : > { %v8327_v20 = vpop.f32.mrb[10].mxu1 }
 0xcc7   : > { %v8329_v22 = vpop.f32.mrb[11].mxu1 }
 0xcda   : > { %v5571_v25 = vpop.f32.mrb[12].mxu1 }
 0xcdb   : > { %v3827_v26 = vadd.f32 %v5571_v25, %v3814_v23  ;;  %v3783_v9 = vpop.f32.mrb[13].mxu1 }
 0xcdc   : > { %v3826_v10 = vadd.f32 %v3809_v24, %v3783_v9 }
 0xcdd   : > { %v5115_v15 = vmul.f32 -1.442695, %v3827_v26 }
 0xcde   : > { %v5114_v30 = vmul.f32 -1.442695, %v3826_v10  ;;  %v5574_v36 = vpop.f32.mrb[14].mxu1 }
 0xcdf   : > { %6390 = vpow2.f32 %v5115_v15  ;;  %v3829_v61 = vadd.f32 %v5574_v36, %v3824_v31  ;;  %v3793_v55 = vpop.f32.mrb[15].mxu1 }
 0xce0   : > { %6392 = vpow2.f32 %v5114_v30  ;;  %v3828_v40 = vadd.f32 %v3819_v37, %v3793_v55 }
 0xce1   : > { %v5117_v3 = vmul.f32 -1.442695, %v3829_v61 }
 0xce2   : > { %v5116_v6 = vmul.f32 -1.442695, %v3828_v40 }
 0xce3   : > { %6394 = vpow2.f32 %v5117_v3 }
 0xce4   : > { %6396 = vpow2.f32 %v5116_v6 }
 0xce9   : > { %v6391_v45 = vpop.eup %6390 }
 0xcea   : > { %v6393_v14 = vpop.eup %6392  ;;  %v3843_v46 = vadd.f32 1.0, %v6391_v45 }
 0xceb   : > { %v3842_v27 = vadd.f32 1.0, %v6393_v14 }
 0xcec   : > { %6398 = vrcp.f32 %v3843_v46  ;;  %v3945_v46 = vpop.permute.xlu1 %3944 }
 0xced   : > { %v6395_v1 = vpop.eup %6394  ;;  %6400 = vrcp.f32 %v3842_v27  ;;  %v3940_v27 = vpop.permute.xlu0 %3939 }
 0xcee   : > { %v6397_v2 = vpop.eup %6396  ;;  %v3845_v47 = vadd.f32 1.0, %v6395_v1 }
 0xcef   : > { %v3844_v43 = vadd.f32 1.0, %v6397_v2 }
 0xcf0   : > { %6402 = vrcp.f32 %v3845_v47  ;;  %v3969_v47 = vpop.permute.xlu1 %3968 }
 0xcf1   : > { %6404 = vrcp.f32 %v3844_v43  ;;  %v3964_v43 = vpop.permute.xlu0 %3963 }
 0xcf6   : > { %v6399_v44 = vpop.eup %6398 }
 0xcf7   : > { %v6401_v49 = vpop.eup %6400  ;;  %v3855_v28 = vmul.f32 %v6399_v44, %v3827_v26  ;;  %v3955_v44 = vpop.permute.xlu1 %3954 }
 0xcf8   : > { %v3854_v54 = vmul.f32 %v6401_v49, %v3826_v10  ;;  %v3950_v49 = vpop.permute.xlu0 %3949 }
 0xcf9   : > { %v3859_v50 = vmul.f32 %v8154_v21, %v3855_v28 }
 0xcfa   : > { %v6403_v51 = vpop.eup %6402  ;;  %v3858_v39 = vmul.f32 %v8154_v21, %v3854_v54 }
 0xcfb   : > { %v6405_v29 = vpop.eup %6404  ;;  %v3893_v38 = vsel %vm2246_vm7, %v3859_v50, 0.0  ;;  %v3906_v56 = vmul.f32 %v3859_v50, %v3859_v50  ;;  %v3857_v57 = vmul.f32 %v6403_v51, %v3829_v61 }
 0xcfc   : > { %v3892_v59 = vsel %vm2246_vm7, %v3858_v39, 0.0  ;;  %v3905_v60 = vmul.f32 %v3858_v39, %v3858_v39  ;;  %v3856_v53 = vmul.f32 %v6405_v29, %v3828_v40 }
 0xcfd   : > { %v3910_v33 = vsel %vm2246_vm7, %v3906_v56, 0.0  ;;  %v3894_v34 = vadd.f32 %v3893_v38, %v3892_v59  ;;  %v3861_v4 = vmul.f32 %v8154_v21, %v3857_v57 }
 0xcfe   : > { %v3909_v5 = vsel %vm2246_vm7, %v3905_v60, 0.0  ;;  %v3860_v7 = vmul.f32 %v8154_v21, %v3856_v53  ;;  %v3974_v60 = vpop.permute.xlu0 %3973 }
 0xcff   : > { %v3911_v42 = vadd.f32 %v3910_v33, %v3909_v5  ;;  %v3908_v41 = vmul.f32 %v3861_v4, %v3861_v4  ;;  %v3897_v17 = vsel %vm2246_vm7, %v3861_v4, 0.0 }
 0xd00   : > { %v3895_v62 = vsel %vm2246_vm7, %v3860_v7, 0.0  ;;  %v3907_v63 = vmul.f32 %v3860_v7, %v3860_v7 }
 0xd01   : > { %v3896_v16 = vadd.f32 %v3895_v62, %v3894_v34  ;;  %v3914_v11 = vsel %vm2246_vm7, %v3908_v41, 0.0 }
 0xd02   : > { %v3912_v32 = vsel %vm2246_vm7, %v3907_v63, 0.0 }
 0xd03   : > { %v3898_v35 = vadd.f32 %v3897_v17, %v3896_v16  ;;  %v3913_v18 = vadd.f32 %v3912_v32, %v3911_v42 }
 0xd05   : > { %v3899_v8 = vrot.slane %v3898_v35, 4  ;;  %v3915_v13 = vadd.f32 %v3914_v11, %v3913_v18 }
 0xd07   : > { %v3900_v12 = vadd.f32 %v3899_v8, %v3898_v35  ;;  %v3916_v23 = vrot.slane %v3915_v13, 4 }
 0xd09   : > { %v3901_v24 = vrot.slane %v3900_v12, 2  ;;  %v3917_v25 = vadd.f32 %v3916_v23, %v3915_v13  ;;  %v2785_v23 = vld [vmem:[#allocation24 + $0x20] sm:$0xff] }
 0xd0b   : > { %v3902_v26 = vadd.f32 %v3901_v24, %v3900_v12  ;;  %v3918_v9 = vrot.slane %v3917_v25, 2  ;;  %v2786_v12 = vld [vmem:[#allocation24 + $0x28] sm:$0xff]  ;;  %v2788_v24 = vld [vmem:[#allocation24 + $0x38] sm:$0xff] }
 0xd0d   : > { %v3903_v10 = vrot.slane %v3902_v26, 1  ;;  %v3919_v15 = vadd.f32 %v3918_v9, %v3917_v25  ;;  %v2787_v25 = vld [vmem:[#allocation24 + $0x30] sm:$0xff] }
 0xd0f   : > { %v3904_v31 = vadd.f32 %v3903_v10, %v3902_v26  ;;  %v3920_v30 = vrot.slane %v3919_v15, 1 }
 0xd11   : > { %v3921_v36 = vadd.f32 %v3920_v30, %v3919_v15  ;;  %v3922_v37 = vmul.f32 0.03125, %v3904_v31 }
 0xd13   : > { %v3923_v61 = vmul.f32 0.03125, %v3921_v36  ;;  %v3924_v55 = vmul.f32 %v3922_v37, %v3922_v37  ;;  %v3929_v40 = vsub.f32 %v3860_v7, %v3922_v37  ;;  %v3930_v3 = vsub.f32 %v3861_v4, %v3922_v37 }
 0xd14   : > { %v3927_v6 = vsub.f32 %v3858_v39, %v3922_v37  ;;  %v3928_v45 = vsub.f32 %v3859_v50, %v3922_v37  ;;  %v3979_v50 = vpop.permute.xlu1 %3978 }
 0xd15   : > { %v3925_v14 = vsub.f32 %v3923_v61, %v3924_v55 }
 0xd17   : > { %v3926_v1 = vmax.f32 %v3925_v14, 0.0  ;;  %v3891_v14 = vld [vmem:[#allocation24 + $0x58] sm:$0xff] }
 0xd19   : > { %v3931_v2 = vadd.f32 1e-05, %v3926_v1 }
 0xd1b   : > { %6406 = vrsqrt.f32 %v3931_v2 }
 0xd25   : > { %v6407_v28 = vpop.eup %6406 }
 0xd26   : > { %v3935_v54 = vmul.f32 %v6407_v28, %v3929_v40  ;;  %v3936_v51 = vmul.f32 %v6407_v28, %v3930_v3  ;;  %v3933_v29 = vmul.f32 %v6407_v28, %v3927_v6  ;;  %v3934_v38 = vmul.f32 %v6407_v28, %v3928_v45  ;;  %v3889_v6 = vld [vmem:[#allocation24 + $0x48] sm:$0xff]  ;;  %v3888_v45 = vld [vmem:[#allocation24 + $0x40] sm:$0xff] }
 0xd28   : > { %v3959_v56 = vmul.f32 %v3950_v49, %v3935_v54  ;;  %v3960_v57 = vmul.f32 %v3955_v44, %v3936_v51  ;;  %v3957_v59 = vmul.f32 %v3940_v27, %v3933_v29  ;;  %v3958_v39 = vmul.f32 %v3945_v46, %v3934_v38  ;;  %v3890_v46 = vld [vmem:[#allocation24 + $0x50] sm:$0xff] }
 0xd2a   : > { %v8343_v53 = vadd.f32 %v3974_v60, %v3959_v56  ;;  %v8345_v33 = vadd.f32 %v3979_v50, %v3960_v57  ;;  %v8347_v34 = vadd.f32 %v3964_v43, %v3957_v59  ;;  %v8349_v4 = vadd.f32 %v3969_v47, %v3958_v39 }
 0xd2c   : > { %v6299_v5 = vpack.i.bf16 %v8345_v33, %v8343_v53  ;;  %v6294_v7 = vpack.i.bf16 %v8349_v4, %v8347_v34 }
 0xd2e   : > { %6300 = vrot.lane.b32.xlu1 %v6299_v5, %s7107_s7  ;;  %6295 = vrot.lane.b32.xlu0 %v6294_v7, %s7107_s7 }
 0xda0   : > { %v6301_v42 = vpop.permute.xlu1 %6300  ;;  %v6296_v41 = vpop.permute.xlu0 %6295 }
 0xda1   : > { %v6303_v62 = vunpack.i.h.bf16 %v6301_v42  ;;  %v6302_v63 = vunpack.i.l.bf16 %v6301_v42  ;;  %v6298_v16 = vunpack.i.h.bf16 %v6296_v41  ;;  %v6297_v17 = vunpack.i.l.bf16 %v6296_v41 }
 0xda3   : > { %v3996_v32 = vsel %vm2340_vm8, %v6303_v62, %v8345_v33  ;;  %v3993_v35 = vsel %vm2340_vm8, %v6302_v63, %v8343_v53  ;;  %v3990_v18 = vsel %vm2340_vm8, %v6298_v16, %v8349_v4  ;;  %v3987_v11 = vsel %vm2340_vm8, %v6297_v17, %v8347_v34 }
 0xda4   : > { %v6309_v8 = vpack.i.bf16 %v3996_v32, %v3993_v35  ;;  %v6304_v13 = vpack.i.bf16 %v3990_v18, %v3987_v11 }
 0xda6   : > { %6310 = vrot.lane.b32.xlu1 %v6309_v8, %s7107_s7  ;;  %6305 = vrot.lane.b32.xlu0 %v6304_v13, %s7107_s7  ;;  %v3294_v8 = vld [vmem:[#allocation26 + $0x1] sm:$0x1] }
 0xda7   : > { %v3873_v13 = vld [vmem:[#allocation23 + $0xc0] sm:$0xff] }
 0xdaa   : > { %3244 = vperm.xlu1 %6093, %v2786_v12   ;;  %3239 = vperm.xlu0 %6092, %v2785_v23  }
 0xdae   : > { %3254 = vperm.xlu1 %6093, %v2788_v24   ;;  %3249 = vperm.xlu0 %6092, %v2787_v25  }
 0xe18   : > { %v6311_v26 = vpop.permute.xlu1 %6310  ;;  %v6306_v9 = vpop.permute.xlu0 %6305 }
 0xe19   : > { %v6313_v10 = vunpack.i.h.bf16 %v6311_v26  ;;  %v6312_v15 = vunpack.i.l.bf16 %v6311_v26  ;;  %v6308_v31 = vunpack.i.h.bf16 %v6306_v9  ;;  %v6307_v30 = vunpack.i.l.bf16 %v6306_v9 }
 0xe1b   : > { %v4008_v36 = vsel %vm2340_vm8, %v6313_v10, %v8345_v33  ;;  %v4007_v37 = vsel %vm2340_vm8, %v6312_v15, %v8343_v53  ;;  %v4006_v61 = vsel %vm2340_vm8, %v6308_v31, %v8349_v4  ;;  %v4005_v55 = vsel %vm2340_vm8, %v6307_v30, %v8347_v34 }
 0xe1c   : > { %v6319_v40 = vpack.i.bf16 %v4008_v36, %v4007_v37  ;;  %v6314_v3 = vpack.i.bf16 %v4006_v61, %v4005_v55  ;;  %v5816_v31 = vpack.c.bf16 %v8349_v4, %v8347_v34  ;;  %v3874_v36 = vld [vmem:[#allocation23 + $0xc8] sm:$0xff]  ;;  %v3875_v37 = vld [vmem:[#allocation23 + $0xd0] sm:$0xff]  ;;  %v3878_v34 = vld [vmem:[#allocation23 + $0xe0] sm:$0xff] }
 0xe1e   : > { %6320 = vrot.lane.b32.xlu1 %v6319_v40, %s7111_s9  ;;  %6315 = vrot.lane.b32.xlu0 %v6314_v3, %s7111_s9 }
 0xe22   : > { %6330 = vrot.lane.b32.xlu1 %v6319_v40, %s7106_s2  ;;  %6325 = vrot.lane.b32.xlu0 %v6314_v3, %s7106_s2  ;;  %v5820_v40 = vpack.c.bf16 %v8345_v33, %v8343_v53  ;;  %v3880_v53 = vld [vmem:[#allocation23 + $0xf0] sm:$0xff]  ;;  %s7112_s2 = smov [#allocation29]  }
 0xe23   : > { %s6891_s7 = sshll.u32 %s7112_s2, 4  ;;  %s6892_s7 = int_to_ptr.vmem [resolvable:$false] %s6891_s7 }
 0xe24   : > { %s6893_s9 = scalar_lea.vmem %s6892_s7, 32  ;;  %p6894_p6 = scmp.lt.s32.totalorder %s4544_s26, %s6892_s7 }
 0xe25   : > { %p6895_p8 = scmp.lt.s32.totalorder %s6893_s9, %s6887_s25 }
 0xe26   : > { %4347 = vperm.xlu1 %6093, %v3889_v6   ;;  %4342 = vperm.xlu0 %6092, %v3888_v45   ;;  %v3876_v6 = vld [vmem:[#allocation23 + $0xd8] sm:$0xff] }
 0xe27   : > { %p6896_p12 = por %p6895_p8, %p6894_p6 }
 0xe29   : > { %v3245_v27 = vpop.permute.xlu1 %3244  ;;  %v3240_v1 = vpop.permute.xlu0 %3239  ;;  %p6897_p5 = pnand %p6896_p12, %p6890_p7 }
 0xe2a   : > { %v3258_v2 = vadd.f32 %v8323_v19, %v3245_v27  ;;  %v3257_v47 = vadd.f32 %v3240_v1, %v8325_v52  ;;  %4357 = vperm.xlu1 %6093, %v3891_v14   ;;  %4352 = vperm.xlu0 %6092, %v3890_v46   ;;  %v3879_v14 = vld [vmem:[#allocation23 + $0xe8] sm:$0xff]  ;;  %v3881_v46 = vld [vmem:[#allocation23 + $0xf8] sm:$0xff]  ;;  %v3883_v27 = vld [vmem:[#allocation23 + $0x100] sm:$0xff] }
 0xe2b   : > { %v3884_v1 = vld [vmem:[#allocation23 + $0x108] sm:$0xff] }
 0xe2c   : > { %v5081_v43 = vmul.f32 -1.442695, %v3258_v2  ;;  %v5080_v44 = vmul.f32 -1.442695, %v3257_v47 }
 0xe2d   : > { %v3255_v49 = vpop.permute.xlu1 %3254  ;;  %v3250_v28 = vpop.permute.xlu0 %3249 }
 0xe2e   : > { %6408 = vpow2.f32 %v5081_v43  ;;  %v3260_v54 = vadd.f32 %v8327_v20, %v3255_v49  ;;  %v3259_v51 = vadd.f32 %v3250_v28, %v8329_v22  ;;  %v3296_v43 = vstv %s5084_s19 }
 0xe2f   : > { %6410 = vpow2.f32 %v5080_v44 }
 0xe30   : > { %v5083_v29 = vmul.f32 -1.442695, %v3260_v54  ;;  %v5082_v38 = vmul.f32 -1.442695, %v3259_v51 }
 0xe32   : > { %6412 = vpow2.f32 %v5083_v29 }
 0xe33   : > { %6414 = vpow2.f32 %v5082_v38 }
 0xe38   : > { %v6409_v56 = vpop.eup %6408 }
 0xe39   : > { %v6411_v19 = vpop.eup %6410  ;;  %v3274_v57 = vadd.f32 1.0, %v6409_v56 }
 0xe3a   : > { %v3273_v52 = vadd.f32 1.0, %v6411_v19 }
 0xe3b   : > { %6416 = vrcp.f32 %v3274_v57 }
 0xe3c   : > { %v6413_v59 = vpop.eup %6412  ;;  %6418 = vrcp.f32 %v3273_v52 }
 0xe3d   : > { %v6415_v39 = vpop.eup %6414  ;;  %v3276_v50 = vadd.f32 1.0, %v6413_v59 }
 0xe3e   : > { %v3275_v60 = vadd.f32 1.0, %v6415_v39 }
 0xe3f   : > { %6420 = vrcp.f32 %v3276_v50 }
 0xe40   : > { %6422 = vrcp.f32 %v3275_v60 }
 0xe45   : > { %v6417_v20 = vpop.eup %6416 }
 0xe46   : > { %v6419_v5 = vpop.eup %6418  ;;  %v3286_v22 = vmul.f32 %v6417_v20, %v3258_v2  ;;  %v3885_v2 = vld [vmem:[#allocation23 + $0x110] sm:$0xff] }
 0xe47   : > { %v3285_v7 = vmul.f32 %v6419_v5, %v3257_v47  ;;  %v3886_v47 = vld [vmem:[#allocation23 + $0x118] sm:$0xff] }
 0xe48   : > { %v3290_v42 = vmul.f32 %v8154_v21, %v3286_v22 }
 0xe49   : > { %v6421_v41 = vpop.eup %6420  ;;  %v3289_v62 = vmul.f32 %v8154_v21, %v3285_v7 }
 0xe4a   : > { %v6423_v63 = vpop.eup %6422  ;;  %v3288_v16 = vmul.f32 %v6421_v41, %v3260_v54 }
 0xe4b   : > { %v5767_v17 = vpack.c.bf16 %v3290_v42, %v3289_v62  ;;  %v3287_v32 = vmul.f32 %v6423_v63, %v3259_v51 }
 0xe4c   : > { %v3292_v35 = vmul.f32 %v8154_v21, %v3288_v16 }
 0xe4d   : > { %v3291_v18 = vmul.f32 %v8154_v21, %v3287_v32  ;;  %5768 = vmatpush3.bf16.msra.mxu0 %v5767_v17 }
 0xe4e   : > { %5769 = vmatprep.subr.bf16.mxu0 %v7108_v0 }
 0xe4f   : > { %v5770_v11 = vpack.c.bf16 %v3292_v35, %v3291_v18 }
 0xe51   : > { %5771 = vmatpush3.bf16.msra.mxu0 %v5770_v11 }
 0xe54   : > { %5531 = vmatmul.mubr.msk.f32.vlgmr.msra.gmra.mrb[10].mxu0 %vm1150_vm2, %v3294_v8 }
 0xe55   : > { %5583 = vmatprep.mubr.msk.f32.mxu0 %vm1150_vm2, %v3873_v13 }
 0xe90   : > { %v6321_v12 = vpop.permute.xlu1 %6320  ;;  %v6316_v23 = vpop.permute.xlu0 %6315 }
 0xe91   : > { %v6323_v24 = vunpack.i.h.bf16 %v6321_v12  ;;  %v6322_v25 = vunpack.i.l.bf16 %v6321_v12  ;;  %v6318_v26 = vunpack.i.h.bf16 %v6316_v23  ;;  %v6317_v9 = vunpack.i.l.bf16 %v6316_v23 }
 0xe93   : > { %v5804_v10 = vpack.c.bf16 %v6318_v26, %v6317_v9  ;;  %v5810_v15 = vpack.c.bf16 %v6323_v24, %v6322_v25 }
 0xe94   : > { %v6326_v30 = vpop.permute.xlu0 %6325  ;;  %v6331_v3 = vpop.permute.xlu1 %6330 }
 0xe95   : > { %5806 = vmatprep.subr.msk.bf16.mxu0 %vm7863_vm4, %v5804_v10  ;;  %v6328_v61 = vunpack.i.h.bf16 %v6326_v30  ;;  %v6327_v55 = vunpack.i.l.bf16 %v6326_v30  ;;  %v6333_v4 = vunpack.i.h.bf16 %v6331_v3  ;;  %v6332_v58 = vunpack.i.l.bf16 %v6331_v3 }
 0xe96   : > { %5809 = vmatpush3.bf16.msk.msra.mxu0 %vm7863_vm4, %v5804_v10 }
 0xe97   : > { %5812 = vmatprep.subr.msk.bf16.mxu0 %vm7863_vm4, %v5810_v15  ;;  %v5824_v45 = vpack.c.bf16 %v6328_v61, %v6327_v55  ;;  %v5830_v33 = vpack.c.bf16 %v6333_v4, %v6332_v58 }
 0xe9a   : > { %5815 = vmatpush3.bf16.msk.msra.mxu0 %vm7863_vm4, %v5810_v15 }
 0xe9b   : > { %5817 = vmatprep.subr.bf16.mxu0 %v5816_v31 }
 0xe9d   : > { %5584 = vmatmul.mubr.msk.f32.vlgmr.msra.gmra.mrb[12].mxu0 %vm1150_vm2, %v3874_v36 }
 0xe9e   : > { %5819 = vmatpush3.bf16.msra.mxu0 %v5816_v31  ;;  %5586 = vmatprep.mubr.msk.f32.mxu0 %vm1150_vm2, %v3875_v37  ;;  %v4397_v37 = vld [vmem:[#allocation26 + $0x2] sm:$0x1] }
 0xe9f   : > { %5821 = vmatprep.subr.bf16.mxu0 %v5820_v40 }
 0xea1   : > { %5587 = vmatmul.mubr.msk.f32.gmra.mrb[14].mxu0 %vm1150_vm2, %v3876_v6 }
 0xea2   : > { %5823 = vmatpush3.bf16.msra.mxu0 %v5820_v40  ;;  %5597 = vmatprep.mubr.msk.f32.mxu0 %vm1150_vm2, %v3878_v34 }
 0xea3   : > { %5826 = vmatprep.subr.msk.bf16.mxu0 %vm8124_vm11, %v5824_v45 }
 0xea5   : > { %5598 = vmatmul.mubr.msk.f32.vlgmr.msra.gmra.mrb[12].mxu0 %vm1150_vm2, %v3879_v14  ;;  %v4348_v51 = vpop.permute.xlu1 %4347  ;;  %v4343_v29 = vpop.permute.xlu0 %4342 }
 0xea6   : > { %5829 = vmatpush3.bf16.msk.msra.mxu0 %vm8124_vm11, %v5824_v45  ;;  %5600 = vmatprep.mubr.msk.f32.mxu0 %vm1150_vm2, %v3880_v53 }
 0xea7   : > { %5832 = vmatprep.subr.msk.bf16.mxu0 %vm8124_vm11, %v5830_v33 }
 0xea9   : > { %5601 = vmatmul.mubr.msk.f32.gmra.mrb[14].mxu0 %vm1150_vm2, %v3881_v46  ;;  %v4358_v59 = vpop.permute.xlu1 %4357  ;;  %v4353_v60 = vpop.permute.xlu0 %4352 }
 0xeaa   : > { %5835 = vmatpush3.bf16.msk.msra.mxu0 %vm8124_vm11, %v5830_v33  ;;  %5611 = vmatprep.mubr.msk.f32.mxu0 %vm1150_vm2, %v3883_v27 }
 0xead   : > { %5612 = vmatmul.mubr.msk.f32.vlgmr.msra.gmra.mrb[12].mxu0 %vm1150_vm2, %v3884_v1 }
 0xeae   : > { %5614 = vmatprep.mubr.msk.f32.mxu0 %vm1150_vm2, %v3885_v2 }
 0xeb1   : > { %5615 = vmatmul.mubr.msk.f32.gmra.mrb[14].mxu0 %vm1150_vm2, %v3886_v47 }
 0xf27   : > { %v3366_v44 = vpop.f32.mrb[10].mxu0 }
 0xf28   : > { %v3367_v49 = vadd.f32 %v3366_v44, %v3296_v43  ;;  %v5532_v28 = vpop.f32.mrb[11].mxu0 }
 0xf2a   : > { %v3370_v54 = vmul.f32 %v8423_v48, %v3367_v49 }
 0xf2c   : > { %3372 = vst.msk [vmem:[%s951_s1] sm:$0x1] %vm3371_vm13, %v3370_v54 }
 0xf80   : > { %v5613_v38 = vpop.f32.mrb[12].mxu0 }
 0xf81   : > { %v4361_v56 = vadd.f32 %v5613_v38, %v4348_v51  ;;  %v4317_v19 = vpop.f32.mrb[13].mxu0 }
 0xf82   : > { %v4360_v57 = vadd.f32 %v4343_v29, %v4317_v19 }
 0xf83   : > { %v5147_v52 = vmul.f32 -1.442695, %v4361_v56 }
 0xf84   : > { %v5146_v39 = vmul.f32 -1.442695, %v4360_v57  ;;  %v5616_v50 = vpop.f32.mrb[14].mxu0 }
 0xf85   : > { %6424 = vpow2.f32 %v5147_v52  ;;  %v4363_v20 = vadd.f32 %v5616_v50, %v4358_v59  ;;  %v4327_v5 = vpop.f32.mrb[15].mxu0 }
 0xf86   : > { %6426 = vpow2.f32 %v5146_v39  ;;  %v4362_v22 = vadd.f32 %v4353_v60, %v4327_v5 }
 0xf87   : > { %v5149_v7 = vmul.f32 -1.442695, %v4363_v20 }
 0xf88   : > { %v5148_v42 = vmul.f32 -1.442695, %v4362_v22 }
 0xf89   : > { %6428 = vpow2.f32 %v5149_v7 }
 0xf8a   : > { %6430 = vpow2.f32 %v5148_v42 }
 0xf8f   : > { %v6425_v41 = vpop.eup %6424 }
 0xf90   : > { %v6427_v62 = vpop.eup %6426  ;;  %v4377_v63 = vadd.f32 1.0, %v6425_v41 }
 0xf91   : > { %v4376_v16 = vadd.f32 1.0, %v6427_v62 }
 0xf92   : > { %6432 = vrcp.f32 %v4377_v63 }
 0xf93   : > { %v6429_v17 = vpop.eup %6428  ;;  %6434 = vrcp.f32 %v4376_v16 }
 0xf94   : > { %v6431_v32 = vpop.eup %6430  ;;  %v4379_v35 = vadd.f32 1.0, %v6429_v17 }
 0xf95   : > { %v4378_v18 = vadd.f32 1.0, %v6431_v32 }
 0xf96   : > { %6436 = vrcp.f32 %v4379_v35 }
 0xf97   : > { %6438 = vrcp.f32 %v4378_v18 }
 0xf9c   : > { %v6433_v11 = vpop.eup %6432 }
 0xf9d   : > { %v6435_v8 = vpop.eup %6434  ;;  %v4389_v13 = vmul.f32 %v6433_v11, %v4361_v56 }
 0xf9e   : > { %v4388_v12 = vmul.f32 %v6435_v8, %v4360_v57 }
 0xf9f   : > { %v4393_v23 = vmul.f32 %v8154_v21, %v4389_v13 }
 0xfa0   : > { %v6437_v24 = vpop.eup %6436  ;;  %v4392_v25 = vmul.f32 %v8154_v21, %v4388_v12 }
 0xfa1   : > { %v6439_v26 = vpop.eup %6438  ;;  %v4391_v9 = vmul.f32 %v6437_v24, %v4363_v20 }
 0xfa2   : > { %v5837_v10 = vpack.c.bf16 %v4393_v23, %v4392_v25  ;;  %v4390_v15 = vmul.f32 %v6439_v26, %v4362_v22 }
 0xfa3   : > { %v4395_v31 = vmul.f32 %v8154_v21, %v4391_v9 }
 0xfa4   : > { %v4394_v30 = vmul.f32 %v8154_v21, %v4390_v15  ;;  %5838 = vmatpush3.bf16.msra.mxu1 %v5837_v10 }
 0xfa5   : > { %5839 = vmatprep.subr.bf16.mxu1 %v7108_v0 }
 0xfa6   : > { %v5840_v36 = vpack.c.bf16 %v4395_v31, %v4394_v30 }
 0xfa8   : > { %5841 = vmatpush3.bf16.msra.mxu1 %v5840_v36 }
 0xfab   : > { %5626 = vmatmul.mubr.msk.f32.vlgmr.msra.gmra.mrb[16].mxu1 %vm1150_vm2, %v4397_v37 }
 0xfac   : > { %6900 = shalt.err (!%p6897_p5)
}
 0xfad   : > { %s6901_s23 = scalar_lea.hbm %s8443_s17, 16  ;;  %s6905_s4 = scalar_lea.hbm %s8719_s18, 32 }
 0xfae   : > { %p6902_p4 = scmp.ne.s32.totalorder %s8443_s17, %s6901_s23  ;;  %p6906_p10 = scmp.lt.u32.totalorder %s8443_s17, %s8719_s18 }
 0xfaf   : > { %p6907_p2 = scmp.lt.u32.totalorder %s6905_s4, %s6901_s23  ;;  %p6909_p1 = scmp.lt.u32.totalorder %s6901_s23, %s8443_s17 }
 0xfb0   : > { %p6903_p3 = pnand %p6902_p4, %p8720_p0 }
 0xfb1   : > { %p6908_p9 = por %p6907_p2, %p6906_p10 }
 0xfb2   : > { %p6904_p13 = pneg %p6903_p3 }
 0xfb3   : > { %p6910_p11 = por %p6909_p1, %p6908_p9 }
 0xfb5   : > { %p6911_p7 = pnand %p6910_p11, %p6904_p13 }
 0xfb7   : > { %6914 = shalt.err (!%p6911_p7)
}
 0xfb8   : > { %5943 = dma.vmem_to_hbm [thread:$0]  (%p8720_p0), %s4544_s26, 16, %s8443_s17, %s8640_s28  }
 0xfb9   : > { %s5164_s25 = sshll.u32 %s8699_s22, 9  ;;  %s4527_s7 = sshll.u32 %s8031_s3, 4  ;;  %s8474_s7 = int_to_ptr.vmem [resolvable:$true] %s4527_s7 }
 0xfba   : > { %s8721_s19 = sld [smem:[#allocation66_spill]]  ;;  %s4502_s23 = scalar_lea.sflag [#allocation4], %s7725_s13 }
 0xfbb   : > { %s6915_s24 = scalar_lea.vmem %s8474_s7, 512  ;;  %s7113_s2 = smov [#allocation28]  }
 0xfbc   : > { %p6916_p6 = scmp.ne.s32.totalorder %s8474_s7, %s6915_s24  ;;  %s6919_s17 = sshll.u32 %s7113_s2, 4  ;;  %s6920_s17 = int_to_ptr.vmem [resolvable:$false] %s6919_s17 }
 0xfbd   : > { %s6921_s22 = scalar_lea.vmem %s6920_s17, 1024  ;;  %p6922_p5 = scmp.lt.s32.totalorder %s8474_s7, %s6920_s17 }
 0xfbe   : > { %p6917_p8 = pnand %p6916_p6, %p8720_p0  ;;  %p6923_p4 = scmp.lt.s32.totalorder %s6921_s22, %s6915_s24 }
 0xfc0   : > { %s8472_s4 = scalar_lea.hbm %s8721_s19, %s5164_s25  ;;  %p6918_p12 = pneg %p6917_p8 }
 0xfc1   : > { %p6924_p3 = por %p6923_p4, %p6922_p5 }
 0xfc3   : > { %p6925_p13 = pnand %p6924_p3, %p6918_p12 }
 0xfc5   : > { %6928 = shalt.err (!%p6925_p13)
}
 0xfc6   : > { %s6929_s3 = scalar_lea.hbm %s8472_s4, 512  ;;  %s6933_s9 = scalar_lea.hbm %s8721_s19, 1024 }
 0xfc7   : > { %p6930_p10 = scmp.ne.s32.totalorder %s8472_s4, %s6929_s3  ;;  %p6934_p1 = scmp.lt.u32.totalorder %s8472_s4, %s8721_s19 }
 0xfc8   : > { %p6935_p11 = scmp.lt.u32.totalorder %s6933_s9, %s6929_s3  ;;  %p6937_p6 = scmp.lt.u32.totalorder %s6929_s3, %s8472_s4 }
 0xfc9   : > { %p6931_p2 = pnand %p6930_p10, %p8720_p0 }
 0xfca   : > { %p6936_p7 = por %p6935_p11, %p6934_p1 }
 0xfcb   : > { %p6932_p9 = pneg %p6931_p2 }
 0xfcc   : > { %p6938_p8 = por %p6937_p6, %p6936_p7 }
 0xfce   : > { %p6939_p12 = pnand %p6938_p8, %p6932_p9 }
 0xfd0   : > { %6942 = shalt.err (!%p6939_p12)
}
 0xfd1   : > { %s7114_s24 = smov 128   ;;  %s7115_s17 = smov 8  }
 0xfd2   : > { %5942 = dma.vmem_to_hbm [thread:$0]  (%p8720_p0), %s8474_s7, 512, %s8472_s4, %s4502_s23, %s7114_s24, %s7114_s24, %s7115_s17  }
 0xfd3   : > { %s8722_s25 = sld [smem:[#allocation68_spill]]  ;;  %s4556_s3 = sshll.u32 %s951_s1, 4  ;;  %s4557_s3 = int_to_ptr.vmem [resolvable:$true] %s4556_s3 }
 0xfd4   : > { %s6943_s29 = scalar_lea.vmem %s4557_s3, 16  ;;  %s7116_s2 = smov [#allocation31]  }
 0xfd5   : > { %p6944_p5 = scmp.ne.s32.totalorder %s4557_s3, %s6943_s29  ;;  %s6947_s28 = sshll.u32 %s7116_s2, 4  ;;  %s6948_s28 = int_to_ptr.vmem [resolvable:$false] %s6947_s28 }
 0xfd6   : > { %s6949_s6 = scalar_lea.vmem %s6948_s28, 32  ;;  %p6950_p13 = scmp.lt.s32.totalorder %s4557_s3, %s6948_s28 }
 0xfd7   : > { %p6945_p4 = pnand %p6944_p5, %p8720_p0  ;;  %p6951_p10 = scmp.lt.s32.totalorder %s6949_s6, %s6943_s29 }
 0xfd9   : > { %s8504_s9 = scalar_lea.hbm %s8722_s25, %s8437_s0  ;;  %p6946_p3 = pneg %p6945_p4 }
 0xfda   : > { %p6952_p2 = por %p6951_p10, %p6950_p13 }
 0xfdc   : > { %p6953_p9 = pnand %p6952_p2, %p6946_p3 }
 0xfde   : > { %6956 = shalt.err (!%p6953_p9)
}
 0xfdf   : > { %s6957_s1 = scalar_lea.hbm %s8504_s9, 16  ;;  %s6961_s23 = scalar_lea.hbm %s8722_s25, 32 }
 0xfe0   : > { %p6958_p1 = scmp.ne.s32.totalorder %s8504_s9, %s6957_s1  ;;  %p6962_p6 = scmp.lt.u32.totalorder %s8504_s9, %s8722_s25 }
 0xfe1   : > { %p6963_p8 = scmp.lt.u32.totalorder %s6961_s23, %s6957_s1  ;;  %p6965_p5 = scmp.lt.u32.totalorder %s6957_s1, %s8504_s9 }
 0xfe2   : > { %p6959_p11 = pnand %p6958_p1, %p8720_p0 }
 0xfe3   : > { %p6964_p12 = por %p6963_p8, %p6962_p6 }
 0xfe4   : > { %p6960_p7 = pneg %p6959_p11 }
 0xfe5   : > { %p6966_p4 = por %p6965_p5, %p6964_p12 }
 0xfe7   : > { %p6967_p3 = pnand %p6966_p4, %p6960_p7 }
 0xfe9   : > { %6970 = shalt.err (!%p6967_p3)
}
 0xfea   : > { %s8723_s6 = scalar_lea.sflag [#allocation30], %s7738_s5  ;;  %s5150_s17 = sld [smem:[#allocation27 + $0x2]] }
 0xfeb   : > { %5944 = dma.vmem_to_hbm [thread:$0]  (%p8720_p0), %s4557_s3, 16, %s8504_s9, %s8723_s6  }
 0xfec   : > { %s957_s22 = scalar_lea.vmem [#allocation32], %s7725_s13  ;;  %s8724_s1 = sld [smem:[#allocation69_spill]] }
 0xfed   : > { %s4569_s26 = sshll.u32 %s957_s22, 4  ;;  %s4515_s5 = scalar_lea.sflag [#allocation33], %s7725_s13  ;;  %s8535_s26 = int_to_ptr.vmem [resolvable:$true] %s4569_s26 }
 0xfee   : > { %s6971_s9 = scalar_lea.vmem %s8535_s26, 16  ;;  %s7117_s3 = smov [#allocation32]  }
 0xfef   : > { %p6972_p13 = scmp.ne.s32.totalorder %s8535_s26, %s6971_s9  ;;  %s6975_s4 = sshll.u32 %s7117_s3, 4  ;;  %s6976_s4 = int_to_ptr.vmem [resolvable:$false] %s6975_s4 }
 0xff0   : > { %v4399_v0 = vstv %s5150_s17  ;;  %s6977_s23 = scalar_lea.vmem %s6976_s4, 32  ;;  %p6978_p9 = scmp.lt.s32.totalorder %s8535_s26, %s6976_s4 }
 0xff1   : > { %p6973_p10 = pnand %p6972_p13, %p8720_p0  ;;  %p6979_p1 = scmp.lt.s32.totalorder %s6977_s23, %s6971_s9 }
 0xff2   : > { %s8533_s7 = scalar_lea.hbm %s8724_s1, %s8437_s0 }
 0xff3   : > { %p6974_p2 = pneg %p6973_p10  ;;  %p6980_p11 = por %p6979_p1, %p6978_p9 }
 0xff5   : > { %p6981_p7 = pnand %p6980_p11, %p6974_p2 }
0x107e   : > { %v4469_v21 = vpop.f32.mrb[16].mxu1 }
0x107f   : > { %v4470_v61 = vadd.f32 %v4469_v21, %v4399_v0  ;;  %v5627_v55 = vpop.f32.mrb[17].mxu1 }
0x1081   : > { %v4473_v40 = vmul.f32 %v8423_v48, %v4470_v61 }
0x1083   : > { %4474 = vst.msk [vmem:[%s957_s22] sm:$0x1] %vm3371_vm13, %v4473_v40 }
0x1084   : > { %6984 = shalt.err (!%p6981_p7)
}
0x1085   : > { %s6985_s13 = scalar_lea.hbm %s8533_s7, 16  ;;  %s6989_s28 = scalar_lea.hbm %s8724_s1, 32 }
0x1086   : > { %p6986_p6 = scmp.ne.s32.totalorder %s8533_s7, %s6985_s13  ;;  %p6990_p5 = scmp.lt.u32.totalorder %s8533_s7, %s8724_s1 }
0x1087   : > { %p6991_p4 = scmp.lt.u32.totalorder %s6989_s28, %s6985_s13  ;;  %p6993_p13 = scmp.lt.u32.totalorder %s6985_s13, %s8533_s7 }
0x1088   : > { %p6987_p8 = pnand %p6986_p6, %p8720_p0 }
0x1089   : > { %p6992_p3 = por %p6991_p4, %p6990_p5 }
0x108a   : > { %p6988_p12 = pneg %p6987_p8 }
0x108b   : > { %p6994_p10 = por %p6993_p13, %p6992_p3 }
0x108d   : > { %p6995_p2 = pnand %p6994_p10, %p6988_p12 }
0x108f   : > { %6998 = shalt.err (!%p6995_p2)
}
0x1090   : > { %5945 = dma.vmem_to_hbm [thread:$0]  (%p8720_p0), %s8535_s26, 16, %s8533_s7, %s4515_s5  }
0x1091 PF: > { %s8725_s22 = sld [smem:[#allocation47_spill]]  ;;  %s8726_s29 = sld [smem:[#allocation54_spill]] }
0x1092   : > { %p8728_p1 = scmp.ge.s32.totalorder %s7081_s21, 2 }
0x1097   : > { %s4581_s2 = sand.u32 1, %s8725_s22   ;;  %p8727_p9 = scmp.ne.s32.totalorder %s8726_s29, 0 }
0x1098   : > { %s4582_s9 = scalar_lea.sflag [#allocation4], %s4581_s2 }
0x1099   : > { %p6001_p11 = pnand %p8728_p1, %p8727_p9 }
0x109b   : > { %7056 = dma.done.wait (!%p6001_p11), %s4582_s9, 512  }
0x109c   : > { %7058 = vsyncadd (!%p6001_p11), %s4582_s9, 4294966784  ;;  %s8729_s3 = sadd.s32 4294967294, %s7081_s21  }
0x109d   : > { %s4590_s4 = sand.u32 1, %s8729_s3  }
0x109e   : > { %s4591_s23 = scalar_lea.sflag [#allocation30], %s4590_s4 }
0x109f   : > { %7060 = dma.done.wait (!%p6001_p11), %s4591_s23, 32  }
0x10a0   : > { %7062 = vsyncadd (!%p6001_p11), %s4591_s23, 4294967264  ;;  %s4607_s20 = scalar_lea.sflag [#allocation33], %s4581_s2 }
0x10a1   : > { %7064 = dma.done.wait (!%p6001_p11), %s4607_s20, 16  }
0x10a2   : > { %7066 = vsyncadd (!%p6001_p11), %s4607_s20, 4294967280  ;;  %s8730_s21 = sld [smem:[#allocation51_spill]]  ;;  %s8731_s26 = sld [smem:[#allocation48_spill]] }
0x10a3   : > { %s8732_s20 = sld [smem:[#allocation52_spill]]  ;;  %s8733_s0 = smov %s7073_s30 }
0x10a8   : > { %p53_p0 = scmp.ge.s32.totalorder %s8730_s21, 4   ;;  %s8734_s30 = smov %s8731_s26 }
0x10aa   :  { %55 = sbr.rel (!%p53_p0) target bundleno = 36 (0x24), region = 310 }
0x10b1   :  { %4611 = vsyncpa [#allocation3], 1 }
0x10b2   :  { %4613 = vsyncpa [#allocation3 + $0x1], 1 }
0x10b3   :  { %4614 = vsyncpa [#allocation7], 1 }
0x10b4   :  { %4616 = vsyncpa [#allocation7 + $0x1], 1 }
0x10b5   :  { %4617 = vsyncpa [#allocation10], 1 }
0x10b6   :  { %4619 = vsyncpa [#allocation10 + $0x1], 1 }
0x10b7   :  { %4620 = vsyncpa [#allocation13], 1 }
0x10b8   :  { %4622 = vsyncpa [#allocation13 + $0x1], 1 }
0x10b9   :  { %4623 = vsyncpa [#allocation16], 1 }
0x10ba   :  { %4624 = vsyncpa [#allocation19], 1 }
0x10bb   :  { %4625 = vsyncpa [#allocation22], 1 }
0x10bc   :  { %4626 = vsyncpa [#allocation25], 1 }
0x10bd   :  { %4627 = vsyncpa [#allocation4], 1 }
0x10be   :  { %4629 = vsyncpa [#allocation4 + $0x1], 1 }
0x10bf   :  { %4630 = vsyncpa [#allocation30], 1 }
0x10c0   :  { %4632 = vsyncpa [#allocation30 + $0x1], 1 }
0x10c1   :  { %4633 = vsyncpa [#allocation33], 1 }
0x10c2   :  { %4635 = vsyncpa [#allocation33 + $0x1], 1 }
0x10c3   :  { %4636 = vsyncpa [#allocation5], 1 }
0x10c4   :  { %4638 = vsyncpa [#allocation5 + $0x1], 1 }

</bundles_post_ra>
